<compile_context>
chip_gen: v6e
topology: v6e:2x2x1
jax: 0.10.0
libtpu: 0.0.40
codegen_flags: <defaults>
</compile_context>

<pallas_src>
import math
import functools
import numpy as np
import jax
import jax.numpy as jnp
from jax import lax
from jax.experimental import pallas as pl
from jax.experimental.pallas import tpu as pltpu

# ----------------------------- sizes ---------------------------------------
B = 2            # batch
S = 8            # feature sequence length
TOK = 8          # token sequence length -> max_len = TOK - 1 = 7
F = 16           # feature_dim
E = 32           # embedding_dim
H = 32           # hidden_dim
V = 32           # vocab_size
N_LAYERS = 2     # GRU layers

GBLK = ((3 * H + 127) // 128) * 128      # 128-lane-aligned stride per gate block
WSLAB_W = 3 * GBLK                       # width of all parameter slabs (384)


# ----------------------------- Pallas kernel --------------------------------
def basic_weather_gru_kernel(
    feat_ref, tok_ref, whi_ref, wlo_ref, vec_ref,   # inputs
    out_ref,                                        # output
    h1_scr,                                         # scratch
    *, batch, enc_len, dec_len, hidden, vocab, wlayout, vlayout,
):
    B_, S_, T_, H_, V_ = batch, enc_len, dec_len, hidden, vocab
    H3 = 3 * H_
    GB = ((H3 + 127) // 128) * 128

    # ---- static-offset slab accessors (one DMA per slab, many cheap slices) --
    def wpair(name):
        r, nr, nc = wlayout[name]
        return whi_ref[r:r + nr, :nc], wlo_ref[r:r + nr, :nc]

    def vec(name):
        r, nc = vlayout[name]
        return vec_ref[r:r + 1, :nc]

    # ---- ~float32-accurate matmul from 3 single-pass bf16 MXU dots ----------
    # (equivalent to lax.Precision.HIGH: drops only the lo*lo term)
    def dot3v(a, w_hi, w_lo):
        a_hi = a.astype(jnp.bfloat16)
        a_lo = (a - a_hi.astype(jnp.float32)).astype(jnp.bfloat16)
        acc = jnp.dot(a_hi, w_hi, preferred_element_type=jnp.float32)
        acc = acc + jnp.dot(a_lo, w_hi, preferred_element_type=jnp.float32)
        acc = acc + jnp.dot(a_hi, w_lo, preferred_element_type=jnp.float32)
        return acc

    def dot3(a, name):
        w_hi, w_lo = wpair(name)
        return dot3v(a, w_hi, w_lo)

    def layernorm(x, gname, bname):
        mu = jnp.mean(x, axis=-1, keepdims=True)
        xc = x - mu
        var = jnp.mean(xc * xc, axis=-1, keepdims=True)
        return xc * lax.rsqrt(var + 1e-5) * vec(gname) + vec(bname)

    # ------------- batched, h-independent prologue (all hoisted) -------------
    x = jnp.clip(feat_ref[...], -10.0, 10.0)                           # [S*B, F]

    # feature_encoder: LN -> Linear -> ReLU -> (Dropout=id) -> LN -> Linear -> ReLU
    e1 = jnp.maximum(dot3(layernorm(x, "ln1_g", "ln1_b"), "w1") + vec("b1"), 0.0)
    enc = jnp.maximum(dot3(layernorm(e1, "ln2_g", "ln2_b"), "w2") + vec("b2"), 0.0)

    # feature_projection(features[:, 0]) -> tanh; shared initial hidden (both layers)
    h_init = jnp.tanh(dot3(layernorm(x[:B_], "lnp_g", "lnp_b"), "wp") + vec("bp"))

    # encoded_features[:, min(t, S-1)] for every decoder step (static selection)
    if T_ <= S_:
        enc_sel = enc[:T_ * B_]
    else:
        # TODO(synk): T > S tail path is dead for the current sizes and untested.
        tail = jnp.concatenate([enc[(S_ - 1) * B_: S_ * B_]] * (T_ - S_), axis=0)
        enc_sel = jnp.concatenate([enc, tail], axis=0)

    # in-kernel teacher-forcing embedding lookup as a one-hot MXU matmul
    onehot = (tok_ref[...] ==
              lax.broadcasted_iota(jnp.int32, (T_ * B_, V_), 1)).astype(jnp.float32)
    emb = dot3(onehot, "emb")                                          # [T*B, E]

    # combined decoder inputs for all steps (teacher forcing ratio = 1.0 -> known)
    xin = (emb + enc_sel) * 0.5                                        # [T*B, E]

    # layer-0 input-gate halves for ALL steps in one fused matmul
    gi0 = dot3(xin, "wih0") + vec("bih0")                              # [T*B, 3H]

    # ------------- recurrence: weights/bias hoisted out of the unrolled loop --
    wp_hi, wp_lo = wpair("w_pipe")                                     # [2H, 3*GB]
    b_pipe = jnp.broadcast_to(vec("b_pipe"), (B_, 3 * GB))             # [B, 3*GB]

    def cell(gi, gh, h):
        rz = jax.nn.sigmoid(gi[:, :2 * H_] + gh[:, :2 * H_])
        r, z = rz[:, :H_], rz[:, H_:]
        n = jnp.tanh(gi[:, 2 * H_:] + r * gh[:, 2 * H_:])
        return (1.0 - z) * n + z * h

    def pipe(h0, h1):
        # ONE dot per pipelined step:
        #   cols [0      : 3H      ] = h0 @ whh0 + bhh0   (layer-0 recurrent gates)
        #   cols [GB     : GB + 3H ] = h0 @ wih1 + bih1   (layer-1 input gates)
        #   cols [2GB    : 2GB + 3H] = h1 @ whh1 + bhh1   (layer-1 recurrent gates)
        g = dot3v(jnp.concatenate([h0, h1], axis=1), wp_hi, wp_lo) + b_pipe
        return g[:, :H3], g[:, GB:GB + H3], g[:, 2 * GB:2 * GB + H3]

    # warm-up: layer-0 step 0
    gh0, _, _ = pipe(h_init, h_init)
    h0 = cell(gi0[:B_], gh0, h_init)
    h1 = h_init

    # pipelined steps: layer-1 step t together with layer-0 step t+1
    for t in range(T_ - 1):
        gh0, gi1, gh1 = pipe(h0, h1)
        h1_new = cell(gi1, gh1, h1)
        h0 = cell(gi0[(t + 1) * B_:(t + 2) * B_], gh0, h0)
        h1 = h1_new
        h1_scr[t * B_:(t + 1) * B_, :] = h1_new        # off the critical path

    # drain: layer-1 step T-1
    _, gi1, gh1 = pipe(h0, h1)
    h1_scr[(T_ - 1) * B_:T_ * B_, :] = cell(gi1, gh1, h1)

    # ------------- batched output head + single dense store ------------------
    y = layernorm(h1_scr[...], "lno_g", "lno_b")                       # [T*B, H]
    out_ref[...] = dot3(y, "wo") + vec("bo")                           # [T*B, V]


# ----------------------------- wrapper --------------------------------------
def make_forward(wlayout, vlayout):
    @jax.jit
    def forward(features, tokens, w_hi, w_lo, vecs):
        Bx, Sx, Fx = features.shape
        max_len = tokens.shape[1] - 1

        # time-major flatten: row index = t * B + b (tiny transposes only; the
        # embedding gather itself happens inside the kernel)
        feat_flat = (jnp.transpose(features, (1, 0, 2))
                     .reshape(Sx * Bx, Fx).astype(jnp.float32))
        tok_flat = (jnp.transpose(tokens[:, :max_len], (1, 0))
                    .reshape(max_len * Bx, 1).astype(jnp.int32))

        kernel = functools.partial(
            basic_weather_gru_kernel,
            batch=Bx, enc_len=Sx, dec_len=max_len, hidden=H, vocab=V,
            wlayout=wlayout, vlayout=vlayout)

        out_flat = pl.pallas_call(
            kernel,
            out_shape=jax.ShapeDtypeStruct((max_len * Bx, V), jnp.float32),
            in_specs=[pl.BlockSpec(memory_space=pltpu.MemorySpace.VMEM)] * 5,
            out_specs=pl.BlockSpec(memory_space=pltpu.MemorySpace.VMEM),
            scratch_shapes=[
                pltpu.VMEM((max_len * Bx, H), jnp.float32),  # per-step layer-1 outputs
            ],
        )(feat_flat, tok_flat, w_hi, w_lo, vecs)

        return jnp.transpose(out_flat.reshape(max_len, Bx, V), (1, 0, 2))  # [B, T, V]
    return forward


# ----------------------------- parameter packing ----------------------------
def pack_kernel_params(p):
    """Host-side one-time packing of all parameters into three VMEM slabs:
       - bf16 weight slab HI / LO (3-pass bf16 split of the f32 weights),
         all weights stored transposed to [in, out] with gate order r|z|n,
       - f32 vector slab (biases + LayerNorm params, one 8-row-aligned row each).
       Returns (w_hi, w_lo, vecs, wlayout, vlayout)."""
    H3 = 3 * H

    def t32(w):
        return np.asarray(w, np.float32).T

    # block recurrent weight for the pipelined step (gate blocks 128-aligned):
    #   [h0_t | h1_{t-1}] @ w_pipe -> [gh0(step t+1) | gi1(step t) | gh1(step t)]
    w_pipe = np.zeros((2 * H, WSLAB_W), np.float32)
    w_pipe[:H, 0:H3] = t32(p["whh0"])
    w_pipe[:H, GBLK:GBLK + H3] = t32(p["wih1"])
    w_pipe[H:, 2 * GBLK:2 * GBLK + H3] = t32(p["whh1"])
    b_pipe = np.zeros((WSLAB_W,), np.float32)
    b_pipe[0:H3] = np.asarray(p["bhh0"], np.float32)
    b_pipe[GBLK:GBLK + H3] = np.asarray(p["bih1"], np.float32)
    b_pipe[2 * GBLK:2 * GBLK + H3] = np.asarray(p["bhh1"], np.float32)

    weights = [
        ("w_pipe", w_pipe),
        ("wih0", t32(p["wih0"])),
        ("w1", t32(p["w1"])), ("w2", t32(p["w2"])),
        ("wp", t32(p["wp"])), ("wo", t32(p["wo"])),
        ("emb", np.asarray(p["emb"], np.float32)),
    ]
    wlayout, wrows, r = {}, [], 0
    for name, w in weights:
        nr, nc = w.shape
        nr_pad = ((nr + 15) // 16) * 16          # bf16 sublane-tile alignment
        blk = np.zeros((nr_pad, WSLAB_W), np.float32)
        blk[:nr, :nc] = w
        wlayout[name] = (r, nr, nc)
        wrows.append(blk)
        r += nr_pad
    wslab32 = jnp.asarray(np.concatenate(wrows, axis=0))
    w_hi = wslab32.astype(jnp.bfloat16)
    w_lo = (wslab32 - w_hi.astype(jnp.float32)).astype(jnp.bfloat16)

    vectors = [
        ("b_pipe", b_pipe), ("bih0", p["bih0"]),
        ("ln1_g", p["ln1_g"]), ("ln1_b", p["ln1_b"]), ("b1", p["b1"]),
        ("ln2_g", p["ln2_g"]), ("ln2_b", p["ln2_b"]), ("b2", p["b2"]),
        ("lnp_g", p["lnp_g"]), ("lnp_b", p["lnp_b"]), ("bp", p["bp"]),
        ("lno_g", p["lno_g"]), ("lno_b", p["lno_b"]), ("bo", p["bo"]),
    ]
    vlayout = {}
    vslab = np.zeros((8 * len(vectors), WSLAB_W), np.float32)
    for i, (name, v) in enumerate(vectors):
        v = np.asarray(v, np.float32).reshape(-1)
        vslab[8 * i, :v.shape[0]] = v
        vlayout[name] = (8 * i, int(v.shape[0]))

    return w_hi, w_lo, jnp.asarray(vslab), wlayout, vlayout


# ----------------------------- parameters -----------------------------------
def init_params(key):
    """Deterministic synthetic parameters in PyTorch layout ([out, in] weights)."""
    ks = jax.random.split(key, 20)

    def lin(k, out_d, in_d):
        k1, k2 = jax.random.split(k)
        bound = 1.0 / math.sqrt(in_d)
        W = jax.random.uniform(k1, (out_d, in_d), jnp.float32, -bound, bound)
        b = jax.random.uniform(k2, (out_d,), jnp.float32, -bound, bound)
        return W, b

    def ln_params(k, d):
        k1, k2 = jax.random.split(k)
        g = 1.0 + 0.1 * jax.random.normal(k1, (d,), jnp.float32)
        b = 0.1 * jax.random.normal(k2, (d,), jnp.float32)
        return g, b

    bound = 1.0 / math.sqrt(H)
    u = lambda k, shape: jax.random.uniform(k, shape, jnp.float32, -bound, bound)

    p = {}
    p["ln1_g"], p["ln1_b"] = ln_params(ks[0], F)
    p["w1"], p["b1"] = lin(ks[1], E, F)
    p["ln2_g"], p["ln2_b"] = ln_params(ks[2], E)
    p["w2"], p["b2"] = lin(ks[3], E, E)
    p["lnp_g"], p["lnp_b"] = ln_params(ks[4], F)
    p["wp"], p["bp"] = lin(ks[5], H, F)
    p["emb"] = 0.1 * jax.random.normal(ks[6], (V, E), jnp.float32)
    p["wih0"], p["whh0"] = u(ks[7], (3 * H, E)), u(ks[8], (3 * H, H))
    p["bih0"], p["bhh0"] = u(ks[9], (3 * H,)), u(ks[10], (3 * H,))
    p["wih1"], p["whh1"] = u(ks[11], (3 * H, H)), u(ks[12], (3 * H, H))
    p["bih1"], p["bhh1"] = u(ks[13], (3 * H,)), u(ks[14], (3 * H,))
    p["lno_g"], p["lno_b"] = ln_params(ks[15], H)
    p["wo"], p["bo"] = lin(ks[16], V, H)
    return p


# ----------------------------- pure-JAX reference ----------------------------
def reference_forward(features, tokens, p):
    Bx, Sx, Fx = features.shape
    max_len = tokens.shape[1] - 1
    mm = lambda a, b: jnp.dot(a, b, precision=jax.lax.Precision.HIGHEST)

    def ln(x, g, b, eps=1e-5):
        mu = x.mean(-1, keepdims=True)
        var = ((x - mu) ** 2).mean(-1, keepdims=True)
        return (x - mu) / jnp.sqrt(var + eps) * g + b

    x = jnp.clip(features.astype(jnp.float32), -10.0, 10.0)
    xr = x.reshape(-1, Fx)
    e1 = jnp.maximum(mm(ln(xr, p["ln1_g"], p["ln1_b"]), p["w1"].T) + p["b1"], 0.0)
    enc = jnp.maximum(mm(ln(e1, p["ln2_g"], p["ln2_b"]), p["w2"].T) + p["b2"], 0.0)
    enc = enc.reshape(Bx, Sx, -1)

    h0 = jnp.tanh(mm(ln(x[:, 0], p["lnp_g"], p["lnp_b"]), p["wp"].T) + p["bp"])
    h = [h0, h0]

    def gru_cell(xi, hh, wih, whh, bih, bhh):
        gi = mm(xi, wih.T) + bih
        gh = mm(hh, whh.T) + bhh
        r = jax.nn.sigmoid(gi[:, :H] + gh[:, :H])
        z = jax.nn.sigmoid(gi[:, H:2 * H] + gh[:, H:2 * H])
        n = jnp.tanh(gi[:, 2 * H:] + r * gh[:, 2 * H:])
        return (1.0 - z) * n + z * hh

    outputs = []
    for t in range(max_len):
        emb = p["emb"][tokens[:, t]]                      # teacher forcing
        cur = enc[:, min(t, Sx - 1)]
        xin = (emb + cur) / 2.0
        h[0] = gru_cell(xin, h[0], p["wih0"], p["whh0"], p["bih0"], p["bhh0"])
        h[1] = gru_cell(h[0], h[1], p["wih1"], p["whh1"], p["bih1"], p["bhh1"])
        pred = mm(ln(h[1], p["lno_g"], p["lno_b"]), p["wo"].T) + p["bo"]
        outputs.append(pred)
    return jnp.stack(outputs, axis=1)                     # [B, max_len, V]


# ----------------------------- main ------------------------------------------
if __name__ == "__main__":
    key = jax.random.PRNGKey(0)
    kf, kt, kparam = jax.random.split(key, 3)
    features = jax.random.normal(kf, (B, S, F), jnp.float32)
    tokens = jax.random.randint(kt, (B, TOK), 0, V, dtype=jnp.int32)

    p = init_params(kparam)
    w_hi, w_lo, vecs, wlayout, vlayout = pack_kernel_params(p)

    # TODO(synk): NaN/Inf input validation (host-side raise) and the stochastic
    # teacher-forcing coin flip / dropout RNG have no in-kernel equivalent; the
    # deterministic (eval, teacher_forcing_ratio=1.0) path is implemented.
    fwd = make_forward(wlayout, vlayout)
    out = jax.block_until_ready(fwd(features, tokens, w_hi, w_lo, vecs))

    ref = reference_forward(features, tokens, p)
    max_diff = float(jnp.max(jnp.abs(out - ref)))

    assert out.shape == (B, TOK - 1, V), out.shape
    assert np.isfinite(np.asarray(out)).all()
    assert max_diff < 1e-3, f"kernel vs reference max diff {max_diff}"
    print("KERNEL_OK")
</pallas_src>

<mosaic_0001>
module attributes {stable_mosaic.version = 11 : i64} {
  func.func @basic_weather_gru_kernel(%arg0: memref<16x16xf32, #tpu.memory_space<vmem>>, %arg1: memref<14x1xi32, #tpu.memory_space<vmem>>, %arg2: memref<224x384xbf16, #tpu.memory_space<vmem>>, %arg3: memref<224x384xbf16, #tpu.memory_space<vmem>>, %arg4: memref<112x384xf32, #tpu.memory_space<vmem>>, %arg5: memref<14x32xf32, #tpu.memory_space<vmem>>, %arg6: memref<14x32xf32, #tpu.memory_space<vmem>>) attributes {dimension_semantics = [], scalar_prefetch = 0 : i64, scratch_operands = 1 : i64, tpu.core_type = #tpu.core_type<tc>} {
    %c0 = arith.constant 0 : index
    %c0_0 = arith.constant 0 : index
    %0 = vector.load %arg0[%c0, %c0_0] : memref<16x16xf32, #tpu.memory_space<vmem>>, vector<16x16xf32>
    %cst = arith.constant -1.000000e+01 : f32
    %cst_1 = arith.constant 1.000000e+01 : f32
    %1 = vector.broadcast %cst : f32 to vector<16x16xf32>
    %2 = arith.maximumf %1, %0 : vector<16x16xf32>
    %3 = vector.broadcast %cst_1 : f32 to vector<16x16xf32>
    %4 = arith.minimumf %3, %2 : vector<16x16xf32>
    %cst_2 = arith.constant dense<0.000000e+00> : vector<16xf32>
    %5 = vector.multi_reduction <add>, %4, %cst_2 [1] : vector<16x16xf32> to vector<16xf32>
    %6 = vector.shape_cast %5 : vector<16xf32> to vector<16x1xf32>
    %cst_3 = arith.constant 1.600000e+01 : f32
    %7 = vector.broadcast %cst_3 : f32 to vector<16x1xf32>
    %8 = arith.divf %6, %7 : vector<16x1xf32>
    %9 = vector.broadcast %8 : vector<16x1xf32> to vector<16x16xf32>
    %10 = arith.subf %4, %9 : vector<16x16xf32>
    %11 = arith.mulf %10, %10 : vector<16x16xf32>
    %cst_4 = arith.constant dense<0.000000e+00> : vector<16xf32>
    %12 = vector.multi_reduction <add>, %11, %cst_4 [1] : vector<16x16xf32> to vector<16xf32>
    %13 = vector.shape_cast %12 : vector<16xf32> to vector<16x1xf32>
    %cst_5 = arith.constant 1.600000e+01 : f32
    %14 = vector.broadcast %cst_5 : f32 to vector<16x1xf32>
    %15 = arith.divf %13, %14 : vector<16x1xf32>
    %cst_6 = arith.constant 9.99999974E-6 : f32
    %16 = vector.broadcast %cst_6 : f32 to vector<16x1xf32>
    %17 = arith.addf %15, %16 : vector<16x1xf32>
    %18 = math.rsqrt %17 : vector<16x1xf32>
    %19 = vector.broadcast %18 : vector<16x1xf32> to vector<16x16xf32>
    %20 = arith.mulf %10, %19 : vector<16x16xf32>
    %c16 = arith.constant 16 : index
    %c0_7 = arith.constant 0 : index
    %21 = vector.load %arg4[%c16, %c0_7] : memref<112x384xf32, #tpu.memory_space<vmem>>, vector<1x16xf32>
    %22 = vector.broadcast %21 : vector<1x16xf32> to vector<16x16xf32>
    %23 = arith.mulf %20, %22 : vector<16x16xf32>
    %c24 = arith.constant 24 : index
    %c0_8 = arith.constant 0 : index
    %24 = vector.load %arg4[%c24, %c0_8] : memref<112x384xf32, #tpu.memory_space<vmem>>, vector<1x16xf32>
    %25 = vector.broadcast %24 : vector<1x16xf32> to vector<16x16xf32>
    %26 = arith.addf %23, %25 : vector<16x16xf32>
    %c96 = arith.constant 96 : index
    %c0_9 = arith.constant 0 : index
    %27 = vector.load %arg2[%c96, %c0_9] : memref<224x384xbf16, #tpu.memory_space<vmem>>, vector<16x32xbf16>
    %c96_10 = arith.constant 96 : index
    %c0_11 = arith.constant 0 : index
    %28 = vector.load %arg3[%c96_10, %c0_11] : memref<224x384xbf16, #tpu.memory_space<vmem>>, vector<16x32xbf16>
    %29 = arith.truncf %26 : vector<16x16xf32> to vector<16x16xbf16>
    %30 = arith.extf %29 : vector<16x16xbf16> to vector<16x16xf32>
    %31 = arith.subf %26, %30 : vector<16x16xf32>
    %32 = arith.truncf %31 : vector<16x16xf32> to vector<16x16xbf16>
    %cst_12 = arith.constant dense<0.000000e+00> : vector<16x32xf32>
    %33 = tpu.matmul %29, %27, %cst_12 {dimension_numbers = #tpu.dot_dimension_numbers<[1], [0], [0], [1], [0, 0, 1, 1], [], []>} : vector<16x16xbf16>, vector<16x32xbf16>, vector<16x32xf32> -> vector<16x32xf32>
    %cst_13 = arith.constant dense<0.000000e+00> : vector<16x32xf32>
    %34 = tpu.matmul %32, %27, %cst_13 {dimension_numbers = #tpu.dot_dimension_numbers<[1], [0], [0], [1], [0, 0, 1, 1], [], []>} : vector<16x16xbf16>, vector<16x32xbf16>, vector<16x32xf32> -> vector<16x32xf32>
    %35 = arith.addf %33, %34 : vector<16x32xf32>
    %cst_14 = arith.constant dense<0.000000e+00> : vector<16x32xf32>
    %36 = tpu.matmul %29, %28, %cst_14 {dimension_numbers = #tpu.dot_dimension_numbers<[1], [0], [0], [1], [0, 0, 1, 1], [], []>} : vector<16x16xbf16>, vector<16x32xbf16>, vector<16x32xf32> -> vector<16x32xf32>
    %37 = arith.addf %35, %36 : vector<16x32xf32>
    %c32 = arith.constant 32 : index
    %c0_15 = arith.constant 0 : index
    %38 = vector.load %arg4[%c32, %c0_15] : memref<112x384xf32, #tpu.memory_space<vmem>>, vector<1x32xf32>
    %39 = vector.broadcast %38 : vector<1x32xf32> to vector<16x32xf32>
    %40 = arith.addf %37, %39 : vector<16x32xf32>
    %cst_16 = arith.constant 0.000000e+00 : f32
    %41 = vector.broadcast %cst_16 : f32 to vector<16x32xf32>
    %42 = arith.maximumf %40, %41 : vector<16x32xf32>
    %cst_17 = arith.constant dense<0.000000e+00> : vector<16xf32>
    %43 = vector.multi_reduction <add>, %42, %cst_17 [1] : vector<16x32xf32> to vector<16xf32>
    %44 = vector.shape_cast %43 : vector<16xf32> to vector<16x1xf32>
    %cst_18 = arith.constant 3.200000e+01 : f32
    %45 = vector.broadcast %cst_18 : f32 to vector<16x1xf32>
    %46 = arith.divf %44, %45 : vector<16x1xf32>
    %47 = vector.broadcast %46 : vector<16x1xf32> to vector<16x32xf32>
    %48 = arith.subf %42, %47 : vector<16x32xf32>
    %49 = arith.mulf %48, %48 : vector<16x32xf32>
    %cst_19 = arith.constant dense<0.000000e+00> : vector<16xf32>
    %50 = vector.multi_reduction <add>, %49, %cst_19 [1] : vector<16x32xf32> to vector<16xf32>
    %51 = vector.shape_cast %50 : vector<16xf32> to vector<16x1xf32>
    %cst_20 = arith.constant 3.200000e+01 : f32
    %52 = vector.broadcast %cst_20 : f32 to vector<16x1xf32>
    %53 = arith.divf %51, %52 : vector<16x1xf32>
    %cst_21 = arith.constant 9.99999974E-6 : f32
    %54 = vector.broadcast %cst_21 : f32 to vector<16x1xf32>
    %55 = arith.addf %53, %54 : vector<16x1xf32>
    %56 = math.rsqrt %55 : vector<16x1xf32>
    %57 = vector.broadcast %56 : vector<16x1xf32> to vector<16x32xf32>
    %58 = arith.mulf %48, %57 : vector<16x32xf32>
    %c40 = arith.constant 40 : index
    %c0_22 = arith.constant 0 : index
    %59 = vector.load %arg4[%c40, %c0_22] : memref<112x384xf32, #tpu.memory_space<vmem>>, vector<1x32xf32>
    %60 = vector.broadcast %59 : vector<1x32xf32> to vector<16x32xf32>
    %61 = arith.mulf %58, %60 : vector<16x32xf32>
    %c48 = arith.constant 48 : index
    %c0_23 = arith.constant 0 : index
    %62 = vector.load %arg4[%c48, %c0_23] : memref<112x384xf32, #tpu.memory_space<vmem>>, vector<1x32xf32>
    %63 = vector.broadcast %62 : vector<1x32xf32> to vector<16x32xf32>
    %64 = arith.addf %61, %63 : vector<16x32xf32>
    %c112 = arith.constant 112 : index
    %c0_24 = arith.constant 0 : index
    %65 = vector.load %arg2[%c112, %c0_24] : memref<224x384xbf16, #tpu.memory_space<vmem>>, vector<32x32xbf16>
    %c112_25 = arith.constant 112 : index
    %c0_26 = arith.constant 0 : index
    %66 = vector.load %arg3[%c112_25, %c0_26] : memref<224x384xbf16, #tpu.memory_space<vmem>>, vector<32x32xbf16>
    %67 = arith.truncf %64 : vector<16x32xf32> to vector<16x32xbf16>
    %68 = arith.extf %67 : vector<16x32xbf16> to vector<16x32xf32>
    %69 = arith.subf %64, %68 : vector<16x32xf32>
    %70 = arith.truncf %69 : vector<16x32xf32> to vector<16x32xbf16>
    %cst_27 = arith.constant dense<0.000000e+00> : vector<16x32xf32>
    %71 = tpu.matmul %67, %65, %cst_27 {dimension_numbers = #tpu.dot_dimension_numbers<[1], [0], [0], [1], [0, 0, 1, 1], [], []>} : vector<16x32xbf16>, vector<32x32xbf16>, vector<16x32xf32> -> vector<16x32xf32>
    %cst_28 = arith.constant dense<0.000000e+00> : vector<16x32xf32>
    %72 = tpu.matmul %70, %65, %cst_28 {dimension_numbers = #tpu.dot_dimension_numbers<[1], [0], [0], [1], [0, 0, 1, 1], [], []>} : vector<16x32xbf16>, vector<32x32xbf16>, vector<16x32xf32> -> vector<16x32xf32>
    %73 = arith.addf %71, %72 : vector<16x32xf32>
    %cst_29 = arith.constant dense<0.000000e+00> : vector<16x32xf32>
    %74 = tpu.matmul %67, %66, %cst_29 {dimension_numbers = #tpu.dot_dimension_numbers<[1], [0], [0], [1], [0, 0, 1, 1], [], []>} : vector<16x32xbf16>, vector<32x32xbf16>, vector<16x32xf32> -> vector<16x32xf32>
    %75 = arith.addf %73, %74 : vector<16x32xf32>
    %c56 = arith.constant 56 : index
    %c0_30 = arith.constant 0 : index
    %76 = vector.load %arg4[%c56, %c0_30] : memref<112x384xf32, #tpu.memory_space<vmem>>, vector<1x32xf32>
    %77 = vector.broadcast %76 : vector<1x32xf32> to vector<16x32xf32>
    %78 = arith.addf %75, %77 : vector<16x32xf32>
    %cst_31 = arith.constant 0.000000e+00 : f32
    %79 = vector.broadcast %cst_31 : f32 to vector<16x32xf32>
    %80 = arith.maximumf %78, %79 : vector<16x32xf32>
    %81 = vector.extract_strided_slice %4 {offsets = [0, 0], sizes = [2, 16], strides = [1, 1]} : vector<16x16xf32> to vector<2x16xf32>
    %cst_32 = arith.constant dense<0.000000e+00> : vector<2xf32>
    %82 = vector.multi_reduction <add>, %81, %cst_32 [1] : vector<2x16xf32> to vector<2xf32>
    %83 = vector.shape_cast %82 : vector<2xf32> to vector<2x1xf32>
    %cst_33 = arith.constant 1.600000e+01 : f32
    %84 = vector.broadcast %cst_33 : f32 to vector<2x1xf32>
    %85 = arith.divf %83, %84 : vector<2x1xf32>
    %86 = vector.broadcast %85 : vector<2x1xf32> to vector<2x16xf32>
    %87 = arith.subf %81, %86 : vector<2x16xf32>
    %88 = arith.mulf %87, %87 : vector<2x16xf32>
    %cst_34 = arith.constant dense<0.000000e+00> : vector<2xf32>
    %89 = vector.multi_reduction <add>, %88, %cst_34 [1] : vector<2x16xf32> to vector<2xf32>
    %90 = vector.shape_cast %89 : vector<2xf32> to vector<2x1xf32>
    %cst_35 = arith.constant 1.600000e+01 : f32
    %91 = vector.broadcast %cst_35 : f32 to vector<2x1xf32>
    %92 = arith.divf %90, %91 : vector<2x1xf32>
    %cst_36 = arith.constant 9.99999974E-6 : f32
    %93 = vector.broadcast %cst_36 : f32 to vector<2x1xf32>
    %94 = arith.addf %92, %93 : vector<2x1xf32>
    %95 = math.rsqrt %94 : vector<2x1xf32>
    %96 = vector.broadcast %95 : vector<2x1xf32> to vector<2x16xf32>
    %97 = arith.mulf %87, %96 : vector<2x16xf32>
    %c64 = arith.constant 64 : index
    %c0_37 = arith.constant 0 : index
    %98 = vector.load %arg4[%c64, %c0_37] : memref<112x384xf32, #tpu.memory_space<vmem>>, vector<1x16xf32>
    %99 = vector.broadcast %98 : vector<1x16xf32> to vector<2x16xf32>
    %100 = arith.mulf %97, %99 : vector<2x16xf32>
    %c72 = arith.constant 72 : index
    %c0_38 = arith.constant 0 : index
    %101 = vector.load %arg4[%c72, %c0_38] : memref<112x384xf32, #tpu.memory_space<vmem>>, vector<1x16xf32>
    %102 = vector.broadcast %101 : vector<1x16xf32> to vector<2x16xf32>
    %103 = arith.addf %100, %102 : vector<2x16xf32>
    %c144 = arith.constant 144 : index
    %c0_39 = arith.constant 0 : index
    %104 = vector.load %arg2[%c144, %c0_39] : memref<224x384xbf16, #tpu.memory_space<vmem>>, vector<16x32xbf16>
    %c144_40 = arith.constant 144 : index
    %c0_41 = arith.constant 0 : index
    %105 = vector.load %arg3[%c144_40, %c0_41] : memref<224x384xbf16, #tpu.memory_space<vmem>>, vector<16x32xbf16>
    %106 = arith.truncf %103 : vector<2x16xf32> to vector<2x16xbf16>
    %107 = arith.extf %106 : vector<2x16xbf16> to vector<2x16xf32>
    %108 = arith.subf %103, %107 : vector<2x16xf32>
    %109 = arith.truncf %108 : vector<2x16xf32> to vector<2x16xbf16>
    %cst_42 = arith.constant dense<0.000000e+00> : vector<2x32xf32>
    %110 = tpu.matmul %106, %104, %cst_42 {dimension_numbers = #tpu.dot_dimension_numbers<[1], [0], [0], [1], [0, 0, 1, 1], [], []>} : vector<2x16xbf16>, vector<16x32xbf16>, vector<2x32xf32> -> vector<2x32xf32>
    %cst_43 = arith.constant dense<0.000000e+00> : vector<2x32xf32>
    %111 = tpu.matmul %109, %104, %cst_43 {dimension_numbers = #tpu.dot_dimension_numbers<[1], [0], [0], [1], [0, 0, 1, 1], [], []>} : vector<2x16xbf16>, vector<16x32xbf16>, vector<2x32xf32> -> vector<2x32xf32>
    %112 = arith.addf %110, %111 : vector<2x32xf32>
    %cst_44 = arith.constant dense<0.000000e+00> : vector<2x32xf32>
    %113 = tpu.matmul %106, %105, %cst_44 {dimension_numbers = #tpu.dot_dimension_numbers<[1], [0], [0], [1], [0, 0, 1, 1], [], []>} : vector<2x16xbf16>, vector<16x32xbf16>, vector<2x32xf32> -> vector<2x32xf32>
    %114 = arith.addf %112, %113 : vector<2x32xf32>
    %c80 = arith.constant 80 : index
    %c0_45 = arith.constant 0 : index
    %115 = vector.load %arg4[%c80, %c0_45] : memref<112x384xf32, #tpu.memory_space<vmem>>, vector<1x32xf32>
    %116 = vector.broadcast %115 : vector<1x32xf32> to vector<2x32xf32>
    %117 = arith.addf %114, %116 : vector<2x32xf32>
    %118 = math.tanh %117 : vector<2x32xf32>
    %119 = vector.extract_strided_slice %80 {offsets = [0, 0], sizes = [14, 32], strides = [1, 1]} : vector<16x32xf32> to vector<14x32xf32>
    %c0_46 = arith.constant 0 : index
    %c0_47 = arith.constant 0 : index
    %120 = vector.load %arg1[%c0_46, %c0_47] : memref<14x1xi32, #tpu.memory_space<vmem>>, vector<14x1xi32>
    %121 = tpu.iota {dimensions = array<i32: 1>} : vector<14x32xi32>
    %122 = vector.broadcast %120 : vector<14x1xi32> to vector<14x32xi32>
    %123 = arith.cmpi eq, %122, %121 : vector<14x32xi32>
    %124 = arith.extui %123 : vector<14x32xi1> to vector<14x32xi32>
    %125 = arith.sitofp %124 : vector<14x32xi32> to vector<14x32xf32>
    %c192 = arith.constant 192 : index
    %c0_48 = arith.constant 0 : index
    %126 = vector.load %arg2[%c192, %c0_48] : memref<224x384xbf16, #tpu.memory_space<vmem>>, vector<32x32xbf16>
    %c192_49 = arith.constant 192 : index
    %c0_50 = arith.constant 0 : index
    %127 = vector.load %arg3[%c192_49, %c0_50] : memref<224x384xbf16, #tpu.memory_space<vmem>>, vector<32x32xbf16>
    %128 = arith.truncf %125 : vector<14x32xf32> to vector<14x32xbf16>
    %129 = arith.extf %128 : vector<14x32xbf16> to vector<14x32xf32>
    %130 = arith.subf %125, %129 : vector<14x32xf32>
    %131 = arith.truncf %130 : vector<14x32xf32> to vector<14x32xbf16>
    %cst_51 = arith.constant dense<0.000000e+00> : vector<14x32xf32>
    %132 = tpu.matmul %128, %126, %cst_51 {dimension_numbers = #tpu.dot_dimension_numbers<[1], [0], [0], [1], [0, 0, 1, 1], [], []>} : vector<14x32xbf16>, vector<32x32xbf16>, vector<14x32xf32> -> vector<14x32xf32>
    %cst_52 = arith.constant dense<0.000000e+00> : vector<14x32xf32>
    %133 = tpu.matmul %131, %126, %cst_52 {dimension_numbers = #tpu.dot_dimension_numbers<[1], [0], [0], [1], [0, 0, 1, 1], [], []>} : vector<14x32xbf16>, vector<32x32xbf16>, vector<14x32xf32> -> vector<14x32xf32>
    %134 = arith.addf %132, %133 : vector<14x32xf32>
    %cst_53 = arith.constant dense<0.000000e+00> : vector<14x32xf32>
    %135 = tpu.matmul %128, %127, %cst_53 {dimension_numbers = #tpu.dot_dimension_numbers<[1], [0], [0], [1], [0, 0, 1, 1], [], []>} : vector<14x32xbf16>, vector<32x32xbf16>, vector<14x32xf32> -> vector<14x32xf32>
    %136 = arith.addf %134, %135 : vector<14x32xf32>
    %137 = arith.addf %136, %119 : vector<14x32xf32>
    %cst_54 = arith.constant 5.000000e-01 : f32
    %138 = vector.broadcast %cst_54 : f32 to vector<14x32xf32>
    %139 = arith.mulf %137, %138 : vector<14x32xf32>
    %c64_55 = arith.constant 64 : index
    %c0_56 = arith.constant 0 : index
    %140 = vector.load %arg2[%c64_55, %c0_56] : memref<224x384xbf16, #tpu.memory_space<vmem>>, vector<32x96xbf16>
    %c64_57 = arith.constant 64 : index
    %c0_58 = arith.constant 0 : index
    %141 = vector.load %arg3[%c64_57, %c0_58] : memref<224x384xbf16, #tpu.memory_space<vmem>>, vector<32x96xbf16>
    %142 = arith.truncf %139 : vector<14x32xf32> to vector<14x32xbf16>
    %143 = arith.extf %142 : vector<14x32xbf16> to vector<14x32xf32>
    %144 = arith.subf %139, %143 : vector<14x32xf32>
    %145 = arith.truncf %144 : vector<14x32xf32> to vector<14x32xbf16>
    %cst_59 = arith.constant dense<0.000000e+00> : vector<14x96xf32>
    %146 = tpu.matmul %142, %140, %cst_59 {dimension_numbers = #tpu.dot_dimension_numbers<[1], [0], [0], [1], [0, 0, 1, 1], [], []>} : vector<14x32xbf16>, vector<32x96xbf16>, vector<14x96xf32> -> vector<14x96xf32>
    %cst_60 = arith.constant dense<0.000000e+00> : vector<14x96xf32>
    %147 = tpu.matmul %145, %140, %cst_60 {dimension_numbers = #tpu.dot_dimension_numbers<[1], [0], [0], [1], [0, 0, 1, 1], [], []>} : vector<14x32xbf16>, vector<32x96xbf16>, vector<14x96xf32> -> vector<14x96xf32>
    %148 = arith.addf %146, %147 : vector<14x96xf32>
    %cst_61 = arith.constant dense<0.000000e+00> : vector<14x96xf32>
    %149 = tpu.matmul %142, %141, %cst_61 {dimension_numbers = #tpu.dot_dimension_numbers<[1], [0], [0], [1], [0, 0, 1, 1], [], []>} : vector<14x32xbf16>, vector<32x96xbf16>, vector<14x96xf32> -> vector<14x96xf32>
    %150 = arith.addf %148, %149 : vector<14x96xf32>
    %c8 = arith.constant 8 : index
    %c0_62 = arith.constant 0 : index
    %151 = vector.load %arg4[%c8, %c0_62] : memref<112x384xf32, #tpu.memory_space<vmem>>, vector<1x96xf32>
    %152 = vector.broadcast %151 : vector<1x96xf32> to vector<14x96xf32>
    %153 = arith.addf %150, %152 : vector<14x96xf32>
    %c0_63 = arith.constant 0 : index
    %c0_64 = arith.constant 0 : index
    %154 = vector.load %arg2[%c0_63, %c0_64] : memref<224x384xbf16, #tpu.memory_space<vmem>>, vector<64x384xbf16>
    %c0_65 = arith.constant 0 : index
    %c0_66 = arith.constant 0 : index
    %155 = vector.load %arg3[%c0_65, %c0_66] : memref<224x384xbf16, #tpu.memory_space<vmem>>, vector<64x384xbf16>
    %c0_67 = arith.constant 0 : index
    %c0_68 = arith.constant 0 : index
    %156 = vector.load %arg4[%c0_67, %c0_68] : memref<112x384xf32, #tpu.memory_space<vmem>>, vector<1x384xf32>
    %157 = vector.shape_cast %156 : vector<1x384xf32> to vector<1x384xf32>
    %158 = vector.broadcast %157 : vector<1x384xf32> to vector<2x384xf32>
    %159 = tpu.concatenate %118, %118 in 1 : vector<2x32xf32>, vector<2x32xf32> -> vector<2x64xf32>
    %160 = arith.truncf %159 : vector<2x64xf32> to vector<2x64xbf16>
    %161 = arith.extf %160 : vector<2x64xbf16> to vector<2x64xf32>
    %162 = arith.subf %159, %161 : vector<2x64xf32>
    %163 = arith.truncf %162 : vector<2x64xf32> to vector<2x64xbf16>
    %cst_69 = arith.constant dense<0.000000e+00> : vector<2x384xf32>
    %164 = tpu.matmul %160, %154, %cst_69 {dimension_numbers = #tpu.dot_dimension_numbers<[1], [0], [0], [1], [0, 0, 1, 1], [], []>} : vector<2x64xbf16>, vector<64x384xbf16>, vector<2x384xf32> -> vector<2x384xf32>
    %cst_70 = arith.constant dense<0.000000e+00> : vector<2x384xf32>
    %165 = tpu.matmul %163, %154, %cst_70 {dimension_numbers = #tpu.dot_dimension_numbers<[1], [0], [0], [1], [0, 0, 1, 1], [], []>} : vector<2x64xbf16>, vector<64x384xbf16>, vector<2x384xf32> -> vector<2x384xf32>
    %166 = arith.addf %164, %165 : vector<2x384xf32>
    %cst_71 = arith.constant dense<0.000000e+00> : vector<2x384xf32>
    %167 = tpu.matmul %160, %155, %cst_71 {dimension_numbers = #tpu.dot_dimension_numbers<[1], [0], [0], [1], [0, 0, 1, 1], [], []>} : vector<2x64xbf16>, vector<64x384xbf16>, vector<2x384xf32> -> vector<2x384xf32>
    %168 = arith.addf %166, %167 : vector<2x384xf32>
    %169 = arith.addf %168, %158 : vector<2x384xf32>
    %170 = vector.extract_strided_slice %169 {offsets = [0, 0], sizes = [2, 96], strides = [1, 1]} : vector<2x384xf32> to vector<2x96xf32>
    %171 = vector.extract_strided_slice %153 {offsets = [0, 0], sizes = [2, 96], strides = [1, 1]} : vector<14x96xf32> to vector<2x96xf32>
    %172 = vector.extract_strided_slice %171 {offsets = [0, 0], sizes = [2, 64], strides = [1, 1]} : vector<2x96xf32> to vector<2x64xf32>
    %173 = vector.extract_strided_slice %170 {offsets = [0, 0], sizes = [2, 64], strides = [1, 1]} : vector<2x96xf32> to vector<2x64xf32>
    %174 = arith.addf %172, %173 : vector<2x64xf32>
    %175 = arith.negf %174 : vector<2x64xf32>
    %176 = math.exp %175 : vector<2x64xf32>
    %cst_72 = arith.constant 1.000000e+00 : f32
    %177 = vector.broadcast %cst_72 : f32 to vector<2x64xf32>
    %178 = arith.addf %177, %176 : vector<2x64xf32>
    %179 = arith.divf %177, %178 : vector<2x64xf32>
    %180 = vector.extract_strided_slice %179 {offsets = [0, 0], sizes = [2, 32], strides = [1, 1]} : vector<2x64xf32> to vector<2x32xf32>
    %181 = vector.extract_strided_slice %179 {offsets = [0, 32], sizes = [2, 32], strides = [1, 1]} : vector<2x64xf32> to vector<2x32xf32>
    %182 = vector.extract_strided_slice %171 {offsets = [0, 64], sizes = [2, 32], strides = [1, 1]} : vector<2x96xf32> to vector<2x32xf32>
    %183 = vector.extract_strided_slice %170 {offsets = [0, 64], sizes = [2, 32], strides = [1, 1]} : vector<2x96xf32> to vector<2x32xf32>
    %184 = arith.mulf %180, %183 : vector<2x32xf32>
    %185 = arith.addf %182, %184 : vector<2x32xf32>
    %186 = math.tanh %185 : vector<2x32xf32>
    %cst_73 = arith.constant 1.000000e+00 : f32
    %187 = vector.broadcast %cst_73 : f32 to vector<2x32xf32>
    %188 = arith.subf %187, %181 : vector<2x32xf32>
    %189 = arith.mulf %188, %186 : vector<2x32xf32>
    %190 = arith.mulf %181, %118 : vector<2x32xf32>
    %191 = arith.addf %189, %190 : vector<2x32xf32>
    %192 = tpu.concatenate %191, %118 in 1 : vector<2x32xf32>, vector<2x32xf32> -> vector<2x64xf32>
    %193 = arith.truncf %192 : vector<2x64xf32> to vector<2x64xbf16>
    %194 = arith.extf %193 : vector<2x64xbf16> to vector<2x64xf32>
    %195 = arith.subf %192, %194 : vector<2x64xf32>
    %196 = arith.truncf %195 : vector<2x64xf32> to vector<2x64xbf16>
    %cst_74 = arith.constant dense<0.000000e+00> : vector<2x384xf32>
    %197 = tpu.matmul %193, %154, %cst_74 {dimension_numbers = #tpu.dot_dimension_numbers<[1], [0], [0], [1], [0, 0, 1, 1], [], []>} : vector<2x64xbf16>, vector<64x384xbf16>, vector<2x384xf32> -> vector<2x384xf32>
    %cst_75 = arith.constant dense<0.000000e+00> : vector<2x384xf32>
    %198 = tpu.matmul %196, %154, %cst_75 {dimension_numbers = #tpu.dot_dimension_numbers<[1], [0], [0], [1], [0, 0, 1, 1], [], []>} : vector<2x64xbf16>, vector<64x384xbf16>, vector<2x384xf32> -> vector<2x384xf32>
    %199 = arith.addf %197, %198 : vector<2x384xf32>
    %cst_76 = arith.constant dense<0.000000e+00> : vector<2x384xf32>
    %200 = tpu.matmul %193, %155, %cst_76 {dimension_numbers = #tpu.dot_dimension_numbers<[1], [0], [0], [1], [0, 0, 1, 1], [], []>} : vector<2x64xbf16>, vector<64x384xbf16>, vector<2x384xf32> -> vector<2x384xf32>
    %201 = arith.addf %199, %200 : vector<2x384xf32>
    %202 = arith.addf %201, %158 : vector<2x384xf32>
    %203 = vector.extract_strided_slice %202 {offsets = [0, 0], sizes = [2, 96], strides = [1, 1]} : vector<2x384xf32> to vector<2x96xf32>
    %204 = vector.extract_strided_slice %202 {offsets = [0, 128], sizes = [2, 96], strides = [1, 1]} : vector<2x384xf32> to vector<2x96xf32>
    %205 = vector.extract_strided_slice %202 {offsets = [0, 256], sizes = [2, 96], strides = [1, 1]} : vector<2x384xf32> to vector<2x96xf32>
    %206 = vector.extract_strided_slice %204 {offsets = [0, 0], sizes = [2, 64], strides = [1, 1]} : vector<2x96xf32> to vector<2x64xf32>
    %207 = vector.extract_strided_slice %205 {offsets = [0, 0], sizes = [2, 64], strides = [1, 1]} : vector<2x96xf32> to vector<2x64xf32>
    %208 = arith.addf %206, %207 : vector<2x64xf32>
    %209 = arith.negf %208 : vector<2x64xf32>
    %210 = math.exp %209 : vector<2x64xf32>
    %cst_77 = arith.constant 1.000000e+00 : f32
    %211 = vector.broadcast %cst_77 : f32 to vector<2x64xf32>
    %212 = arith.addf %211, %210 : vector<2x64xf32>
    %213 = arith.divf %211, %212 : vector<2x64xf32>
    %214 = vector.extract_strided_slice %213 {offsets = [0, 0], sizes = [2, 32], strides = [1, 1]} : vector<2x64xf32> to vector<2x32xf32>
    %215 = vector.extract_strided_slice %213 {offsets = [0, 32], sizes = [2, 32], strides = [1, 1]} : vector<2x64xf32> to vector<2x32xf32>
    %216 = vector.extract_strided_slice %204 {offsets = [0, 64], sizes = [2, 32], strides = [1, 1]} : vector<2x96xf32> to vector<2x32xf32>
    %217 = vector.extract_strided_slice %205 {offsets = [0, 64], sizes = [2, 32], strides = [1, 1]} : vector<2x96xf32> to vector<2x32xf32>
    %218 = arith.mulf %214, %217 : vector<2x32xf32>
    %219 = arith.addf %216, %218 : vector<2x32xf32>
    %220 = math.tanh %219 : vector<2x32xf32>
    %cst_78 = arith.constant 1.000000e+00 : f32
    %221 = vector.broadcast %cst_78 : f32 to vector<2x32xf32>
    %222 = arith.subf %221, %215 : vector<2x32xf32>
    %223 = arith.mulf %222, %220 : vector<2x32xf32>
    %224 = arith.mulf %215, %118 : vector<2x32xf32>
    %225 = arith.addf %223, %224 : vector<2x32xf32>
    %226 = vector.extract_strided_slice %153 {offsets = [2, 0], sizes = [2, 96], strides = [1, 1]} : vector<14x96xf32> to vector<2x96xf32>
    %227 = vector.extract_strided_slice %226 {offsets = [0, 0], sizes = [2, 64], strides = [1, 1]} : vector<2x96xf32> to vector<2x64xf32>
    %228 = vector.extract_strided_slice %203 {offsets = [0, 0], sizes = [2, 64], strides = [1, 1]} : vector<2x96xf32> to vector<2x64xf32>
    %229 = arith.addf %227, %228 : vector<2x64xf32>
    %230 = arith.negf %229 : vector<2x64xf32>
    %231 = math.exp %230 : vector<2x64xf32>
    %cst_79 = arith.constant 1.000000e+00 : f32
    %232 = vector.broadcast %cst_79 : f32 to vector<2x64xf32>
    %233 = arith.addf %232, %231 : vector<2x64xf32>
    %234 = arith.divf %232, %233 : vector<2x64xf32>
    %235 = vector.extract_strided_slice %234 {offsets = [0, 0], sizes = [2, 32], strides = [1, 1]} : vector<2x64xf32> to vector<2x32xf32>
    %236 = vector.extract_strided_slice %234 {offsets = [0, 32], sizes = [2, 32], strides = [1, 1]} : vector<2x64xf32> to vector<2x32xf32>
    %237 = vector.extract_strided_slice %226 {offsets = [0, 64], sizes = [2, 32], strides = [1, 1]} : vector<2x96xf32> to vector<2x32xf32>
    %238 = vector.extract_strided_slice %203 {offsets = [0, 64], sizes = [2, 32], strides = [1, 1]} : vector<2x96xf32> to vector<2x32xf32>
    %239 = arith.mulf %235, %238 : vector<2x32xf32>
    %240 = arith.addf %237, %239 : vector<2x32xf32>
    %241 = math.tanh %240 : vector<2x32xf32>
    %cst_80 = arith.constant 1.000000e+00 : f32
    %242 = vector.broadcast %cst_80 : f32 to vector<2x32xf32>
    %243 = arith.subf %242, %236 : vector<2x32xf32>
    %244 = arith.mulf %243, %241 : vector<2x32xf32>
    %245 = arith.mulf %236, %191 : vector<2x32xf32>
    %246 = arith.addf %244, %245 : vector<2x32xf32>
    %c0_81 = arith.constant 0 : index
    %c0_82 = arith.constant 0 : index
    %247 = vector.load %arg6[%c0_81, %c0_82] : memref<14x32xf32, #tpu.memory_space<vmem>>, vector<2x32xf32>
    tpu.vector_store %arg6[%c0_81, %c0_82], %225 {strides = array<i32>} : memref<14x32xf32, #tpu.memory_space<vmem>>, vector<2x32xf32>,
    %248 = tpu.concatenate %246, %225 in 1 : vector<2x32xf32>, vector<2x32xf32> -> vector<2x64xf32>
    %249 = arith.truncf %248 : vector<2x64xf32> to vector<2x64xbf16>
    %250 = arith.extf %249 : vector<2x64xbf16> to vector<2x64xf32>
    %251 = arith.subf %248, %250 : vector<2x64xf32>
    %252 = arith.truncf %251 : vector<2x64xf32> to vector<2x64xbf16>
    %cst_83 = arith.constant dense<0.000000e+00> : vector<2x384xf32>
    %253 = tpu.matmul %249, %154, %cst_83 {dimension_numbers = #tpu.dot_dimension_numbers<[1], [0], [0], [1], [0, 0, 1, 1], [], []>} : vector<2x64xbf16>, vector<64x384xbf16>, vector<2x384xf32> -> vector<2x384xf32>
    %cst_84 = arith.constant dense<0.000000e+00> : vector<2x384xf32>
    %254 = tpu.matmul %252, %154, %cst_84 {dimension_numbers = #tpu.dot_dimension_numbers<[1], [0], [0], [1], [0, 0, 1, 1], [], []>} : vector<2x64xbf16>, vector<64x384xbf16>, vector<2x384xf32> -> vector<2x384xf32>
    %255 = arith.addf %253, %254 : vector<2x384xf32>
    %cst_85 = arith.constant dense<0.000000e+00> : vector<2x384xf32>
    %256 = tpu.matmul %249, %155, %cst_85 {dimension_numbers = #tpu.dot_dimension_numbers<[1], [0], [0], [1], [0, 0, 1, 1], [], []>} : vector<2x64xbf16>, vector<64x384xbf16>, vector<2x384xf32> -> vector<2x384xf32>
    %257 = arith.addf %255, %256 : vector<2x384xf32>
    %258 = arith.addf %257, %158 : vector<2x384xf32>
    %259 = vector.extract_strided_slice %258 {offsets = [0, 0], sizes = [2, 96], strides = [1, 1]} : vector<2x384xf32> to vector<2x96xf32>
    %260 = vector.extract_strided_slice %258 {offsets = [0, 128], sizes = [2, 96], strides = [1, 1]} : vector<2x384xf32> to vector<2x96xf32>
    %261 = vector.extract_strided_slice %258 {offsets = [0, 256], sizes = [2, 96], strides = [1, 1]} : vector<2x384xf32> to vector<2x96xf32>
    %262 = vector.extract_strided_slice %260 {offsets = [0, 0], sizes = [2, 64], strides = [1, 1]} : vector<2x96xf32> to vector<2x64xf32>
    %263 = vector.extract_strided_slice %261 {offsets = [0, 0], sizes = [2, 64], strides = [1, 1]} : vector<2x96xf32> to vector<2x64xf32>
    %264 = arith.addf %262, %263 : vector<2x64xf32>
    %265 = arith.negf %264 : vector<2x64xf32>
    %266 = math.exp %265 : vector<2x64xf32>
    %cst_86 = arith.constant 1.000000e+00 : f32
    %267 = vector.broadcast %cst_86 : f32 to vector<2x64xf32>
    %268 = arith.addf %267, %266 : vector<2x64xf32>
    %269 = arith.divf %267, %268 : vector<2x64xf32>
    %270 = vector.extract_strided_slice %269 {offsets = [0, 0], sizes = [2, 32], strides = [1, 1]} : vector<2x64xf32> to vector<2x32xf32>
    %271 = vector.extract_strided_slice %269 {offsets = [0, 32], sizes = [2, 32], strides = [1, 1]} : vector<2x64xf32> to vector<2x32xf32>
    %272 = vector.extract_strided_slice %260 {offsets = [0, 64], sizes = [2, 32], strides = [1, 1]} : vector<2x96xf32> to vector<2x32xf32>
    %273 = vector.extract_strided_slice %261 {offsets = [0, 64], sizes = [2, 32], strides = [1, 1]} : vector<2x96xf32> to vector<2x32xf32>
    %274 = arith.mulf %270, %273 : vector<2x32xf32>
    %275 = arith.addf %272, %274 : vector<2x32xf32>
    %276 = math.tanh %275 : vector<2x32xf32>
    %cst_87 = arith.constant 1.000000e+00 : f32
    %277 = vector.broadcast %cst_87 : f32 to vector<2x32xf32>
    %278 = arith.subf %277, %271 : vector<2x32xf32>
    %279 = arith.mulf %278, %276 : vector<2x32xf32>
    %280 = arith.mulf %271, %225 : vector<2x32xf32>
    %281 = arith.addf %279, %280 : vector<2x32xf32>
    %282 = vector.extract_strided_slice %153 {offsets = [4, 0], sizes = [2, 96], strides = [1, 1]} : vector<14x96xf32> to vector<2x96xf32>
    %283 = vector.extract_strided_slice %282 {offsets = [0, 0], sizes = [2, 64], strides = [1, 1]} : vector<2x96xf32> to vector<2x64xf32>
    %284 = vector.extract_strided_slice %259 {offsets = [0, 0], sizes = [2, 64], strides = [1, 1]} : vector<2x96xf32> to vector<2x64xf32>
    %285 = arith.addf %283, %284 : vector<2x64xf32>
    %286 = arith.negf %285 : vector<2x64xf32>
    %287 = math.exp %286 : vector<2x64xf32>
    %cst_88 = arith.constant 1.000000e+00 : f32
    %288 = vector.broadcast %cst_88 : f32 to vector<2x64xf32>
    %289 = arith.addf %288, %287 : vector<2x64xf32>
    %290 = arith.divf %288, %289 : vector<2x64xf32>
    %291 = vector.extract_strided_slice %290 {offsets = [0, 0], sizes = [2, 32], strides = [1, 1]} : vector<2x64xf32> to vector<2x32xf32>
    %292 = vector.extract_strided_slice %290 {offsets = [0, 32], sizes = [2, 32], strides = [1, 1]} : vector<2x64xf32> to vector<2x32xf32>
    %293 = vector.extract_strided_slice %282 {offsets = [0, 64], sizes = [2, 32], strides = [1, 1]} : vector<2x96xf32> to vector<2x32xf32>
    %294 = vector.extract_strided_slice %259 {offsets = [0, 64], sizes = [2, 32], strides = [1, 1]} : vector<2x96xf32> to vector<2x32xf32>
    %295 = arith.mulf %291, %294 : vector<2x32xf32>
    %296 = arith.addf %293, %295 : vector<2x32xf32>
    %297 = math.tanh %296 : vector<2x32xf32>
    %cst_89 = arith.constant 1.000000e+00 : f32
    %298 = vector.broadcast %cst_89 : f32 to vector<2x32xf32>
    %299 = arith.subf %298, %292 : vector<2x32xf32>
    %300 = arith.mulf %299, %297 : vector<2x32xf32>
    %301 = arith.mulf %292, %246 : vector<2x32xf32>
    %302 = arith.addf %300, %301 : vector<2x32xf32>
    %c2 = arith.constant 2 : index
    %c0_90 = arith.constant 0 : index
    %303 = vector.load %arg6[%c2, %c0_90] : memref<14x32xf32, #tpu.memory_space<vmem>>, vector<2x32xf32>
    tpu.vector_store %arg6[%c2, %c0_90], %281 {strides = array<i32>} : memref<14x32xf32, #tpu.memory_space<vmem>>, vector<2x32xf32>,
    %304 = tpu.concatenate %302, %281 in 1 : vector<2x32xf32>, vector<2x32xf32> -> vector<2x64xf32>
    %305 = arith.truncf %304 : vector<2x64xf32> to vector<2x64xbf16>
    %306 = arith.extf %305 : vector<2x64xbf16> to vector<2x64xf32>
    %307 = arith.subf %304, %306 : vector<2x64xf32>
    %308 = arith.truncf %307 : vector<2x64xf32> to vector<2x64xbf16>
    %cst_91 = arith.constant dense<0.000000e+00> : vector<2x384xf32>
    %309 = tpu.matmul %305, %154, %cst_91 {dimension_numbers = #tpu.dot_dimension_numbers<[1], [0], [0], [1], [0, 0, 1, 1], [], []>} : vector<2x64xbf16>, vector<64x384xbf16>, vector<2x384xf32> -> vector<2x384xf32>
    %cst_92 = arith.constant dense<0.000000e+00> : vector<2x384xf32>
    %310 = tpu.matmul %308, %154, %cst_92 {dimension_numbers = #tpu.dot_dimension_numbers<[1], [0], [0], [1], [0, 0, 1, 1], [], []>} : vector<2x64xbf16>, vector<64x384xbf16>, vector<2x384xf32> -> vector<2x384xf32>
    %311 = arith.addf %309, %310 : vector<2x384xf32>
    %cst_93 = arith.constant dense<0.000000e+00> : vector<2x384xf32>
    %312 = tpu.matmul %305, %155, %cst_93 {dimension_numbers = #tpu.dot_dimension_numbers<[1], [0], [0], [1], [0, 0, 1, 1], [], []>} : vector<2x64xbf16>, vector<64x384xbf16>, vector<2x384xf32> -> vector<2x384xf32>
    %313 = arith.addf %311, %312 : vector<2x384xf32>
    %314 = arith.addf %313, %158 : vector<2x384xf32>
    %315 = vector.extract_strided_slice %314 {offsets = [0, 0], sizes = [2, 96], strides = [1, 1]} : vector<2x384xf32> to vector<2x96xf32>
    %316 = vector.extract_strided_slice %314 {offsets = [0, 128], sizes = [2, 96], strides = [1, 1]} : vector<2x384xf32> to vector<2x96xf32>
    %317 = vector.extract_strided_slice %314 {offsets = [0, 256], sizes = [2, 96], strides = [1, 1]} : vector<2x384xf32> to vector<2x96xf32>
    %318 = vector.extract_strided_slice %316 {offsets = [0, 0], sizes = [2, 64], strides = [1, 1]} : vector<2x96xf32> to vector<2x64xf32>
    %319 = vector.extract_strided_slice %317 {offsets = [0, 0], sizes = [2, 64], strides = [1, 1]} : vector<2x96xf32> to vector<2x64xf32>
    %320 = arith.addf %318, %319 : vector<2x64xf32>
    %321 = arith.negf %320 : vector<2x64xf32>
    %322 = math.exp %321 : vector<2x64xf32>
    %cst_94 = arith.constant 1.000000e+00 : f32
    %323 = vector.broadcast %cst_94 : f32 to vector<2x64xf32>
    %324 = arith.addf %323, %322 : vector<2x64xf32>
    %325 = arith.divf %323, %324 : vector<2x64xf32>
    %326 = vector.extract_strided_slice %325 {offsets = [0, 0], sizes = [2, 32], strides = [1, 1]} : vector<2x64xf32> to vector<2x32xf32>
    %327 = vector.extract_strided_slice %325 {offsets = [0, 32], sizes = [2, 32], strides = [1, 1]} : vector<2x64xf32> to vector<2x32xf32>
    %328 = vector.extract_strided_slice %316 {offsets = [0, 64], sizes = [2, 32], strides = [1, 1]} : vector<2x96xf32> to vector<2x32xf32>
    %329 = vector.extract_strided_slice %317 {offsets = [0, 64], sizes = [2, 32], strides = [1, 1]} : vector<2x96xf32> to vector<2x32xf32>
    %330 = arith.mulf %326, %329 : vector<2x32xf32>
    %331 = arith.addf %328, %330 : vector<2x32xf32>
    %332 = math.tanh %331 : vector<2x32xf32>
    %cst_95 = arith.constant 1.000000e+00 : f32
    %333 = vector.broadcast %cst_95 : f32 to vector<2x32xf32>
    %334 = arith.subf %333, %327 : vector<2x32xf32>
    %335 = arith.mulf %334, %332 : vector<2x32xf32>
    %336 = arith.mulf %327, %281 : vector<2x32xf32>
    %337 = arith.addf %335, %336 : vector<2x32xf32>
    %338 = vector.extract_strided_slice %153 {offsets = [6, 0], sizes = [2, 96], strides = [1, 1]} : vector<14x96xf32> to vector<2x96xf32>
    %339 = vector.extract_strided_slice %338 {offsets = [0, 0], sizes = [2, 64], strides = [1, 1]} : vector<2x96xf32> to vector<2x64xf32>
    %340 = vector.extract_strided_slice %315 {offsets = [0, 0], sizes = [2, 64], strides = [1, 1]} : vector<2x96xf32> to vector<2x64xf32>
    %341 = arith.addf %339, %340 : vector<2x64xf32>
    %342 = arith.negf %341 : vector<2x64xf32>
    %343 = math.exp %342 : vector<2x64xf32>
    %cst_96 = arith.constant 1.000000e+00 : f32
    %344 = vector.broadcast %cst_96 : f32 to vector<2x64xf32>
    %345 = arith.addf %344, %343 : vector<2x64xf32>
    %346 = arith.divf %344, %345 : vector<2x64xf32>
    %347 = vector.extract_strided_slice %346 {offsets = [0, 0], sizes = [2, 32], strides = [1, 1]} : vector<2x64xf32> to vector<2x32xf32>
    %348 = vector.extract_strided_slice %346 {offsets = [0, 32], sizes = [2, 32], strides = [1, 1]} : vector<2x64xf32> to vector<2x32xf32>
    %349 = vector.extract_strided_slice %338 {offsets = [0, 64], sizes = [2, 32], strides = [1, 1]} : vector<2x96xf32> to vector<2x32xf32>
    %350 = vector.extract_strided_slice %315 {offsets = [0, 64], sizes = [2, 32], strides = [1, 1]} : vector<2x96xf32> to vector<2x32xf32>
    %351 = arith.mulf %347, %350 : vector<2x32xf32>
    %352 = arith.addf %349, %351 : vector<2x32xf32>
    %353 = math.tanh %352 : vector<2x32xf32>
    %cst_97 = arith.constant 1.000000e+00 : f32
    %354 = vector.broadcast %cst_97 : f32 to vector<2x32xf32>
    %355 = arith.subf %354, %348 : vector<2x32xf32>
    %356 = arith.mulf %355, %353 : vector<2x32xf32>
    %357 = arith.mulf %348, %302 : vector<2x32xf32>
    %358 = arith.addf %356, %357 : vector<2x32xf32>
    %c4 = arith.constant 4 : index
    %c0_98 = arith.constant 0 : index
    %359 = vector.load %arg6[%c4, %c0_98] : memref<14x32xf32, #tpu.memory_space<vmem>>, vector<2x32xf32>
    tpu.vector_store %arg6[%c4, %c0_98], %337 {strides = array<i32>} : memref<14x32xf32, #tpu.memory_space<vmem>>, vector<2x32xf32>,
    %360 = tpu.concatenate %358, %337 in 1 : vector<2x32xf32>, vector<2x32xf32> -> vector<2x64xf32>
    %361 = arith.truncf %360 : vector<2x64xf32> to vector<2x64xbf16>
    %362 = arith.extf %361 : vector<2x64xbf16> to vector<2x64xf32>
    %363 = arith.subf %360, %362 : vector<2x64xf32>
    %364 = arith.truncf %363 : vector<2x64xf32> to vector<2x64xbf16>
    %cst_99 = arith.constant dense<0.000000e+00> : vector<2x384xf32>
    %365 = tpu.matmul %361, %154, %cst_99 {dimension_numbers = #tpu.dot_dimension_numbers<[1], [0], [0], [1], [0, 0, 1, 1], [], []>} : vector<2x64xbf16>, vector<64x384xbf16>, vector<2x384xf32> -> vector<2x384xf32>
    %cst_100 = arith.constant dense<0.000000e+00> : vector<2x384xf32>
    %366 = tpu.matmul %364, %154, %cst_100 {dimension_numbers = #tpu.dot_dimension_numbers<[1], [0], [0], [1], [0, 0, 1, 1], [], []>} : vector<2x64xbf16>, vector<64x384xbf16>, vector<2x384xf32> -> vector<2x384xf32>
    %367 = arith.addf %365, %366 : vector<2x384xf32>
    %cst_101 = arith.constant dense<0.000000e+00> : vector<2x384xf32>
    %368 = tpu.matmul %361, %155, %cst_101 {dimension_numbers = #tpu.dot_dimension_numbers<[1], [0], [0], [1], [0, 0, 1, 1], [], []>} : vector<2x64xbf16>, vector<64x384xbf16>, vector<2x384xf32> -> vector<2x384xf32>
    %369 = arith.addf %367, %368 : vector<2x384xf32>
    %370 = arith.addf %369, %158 : vector<2x384xf32>
    %371 = vector.extract_strided_slice %370 {offsets = [0, 0], sizes = [2, 96], strides = [1, 1]} : vector<2x384xf32> to vector<2x96xf32>
    %372 = vector.extract_strided_slice %370 {offsets = [0, 128], sizes = [2, 96], strides = [1, 1]} : vector<2x384xf32> to vector<2x96xf32>
    %373 = vector.extract_strided_slice %370 {offsets = [0, 256], sizes = [2, 96], strides = [1, 1]} : vector<2x384xf32> to vector<2x96xf32>
    %374 = vector.extract_strided_slice %372 {offsets = [0, 0], sizes = [2, 64], strides = [1, 1]} : vector<2x96xf32> to vector<2x64xf32>
    %375 = vector.extract_strided_slice %373 {offsets = [0, 0], sizes = [2, 64], strides = [1, 1]} : vector<2x96xf32> to vector<2x64xf32>
    %376 = arith.addf %374, %375 : vector<2x64xf32>
    %377 = arith.negf %376 : vector<2x64xf32>
    %378 = math.exp %377 : vector<2x64xf32>
    %cst_102 = arith.constant 1.000000e+00 : f32
    %379 = vector.broadcast %cst_102 : f32 to vector<2x64xf32>
    %380 = arith.addf %379, %378 : vector<2x64xf32>
    %381 = arith.divf %379, %380 : vector<2x64xf32>
    %382 = vector.extract_strided_slice %381 {offsets = [0, 0], sizes = [2, 32], strides = [1, 1]} : vector<2x64xf32> to vector<2x32xf32>
    %383 = vector.extract_strided_slice %381 {offsets = [0, 32], sizes = [2, 32], strides = [1, 1]} : vector<2x64xf32> to vector<2x32xf32>
    %384 = vector.extract_strided_slice %372 {offsets = [0, 64], sizes = [2, 32], strides = [1, 1]} : vector<2x96xf32> to vector<2x32xf32>
    %385 = vector.extract_strided_slice %373 {offsets = [0, 64], sizes = [2, 32], strides = [1, 1]} : vector<2x96xf32> to vector<2x32xf32>
    %386 = arith.mulf %382, %385 : vector<2x32xf32>
    %387 = arith.addf %384, %386 : vector<2x32xf32>
    %388 = math.tanh %387 : vector<2x32xf32>
    %cst_103 = arith.constant 1.000000e+00 : f32
    %389 = vector.broadcast %cst_103 : f32 to vector<2x32xf32>
    %390 = arith.subf %389, %383 : vector<2x32xf32>
    %391 = arith.mulf %390, %388 : vector<2x32xf32>
    %392 = arith.mulf %383, %337 : vector<2x32xf32>
    %393 = arith.addf %391, %392 : vector<2x32xf32>
    %394 = vector.extract_strided_slice %153 {offsets = [8, 0], sizes = [2, 96], strides = [1, 1]} : vector<14x96xf32> to vector<2x96xf32>
    %395 = vector.extract_strided_slice %394 {offsets = [0, 0], sizes = [2, 64], strides = [1, 1]} : vector<2x96xf32> to vector<2x64xf32>
    %396 = vector.extract_strided_slice %371 {offsets = [0, 0], sizes = [2, 64], strides = [1, 1]} : vector<2x96xf32> to vector<2x64xf32>
    %397 = arith.addf %395, %396 : vector<2x64xf32>
    %398 = arith.negf %397 : vector<2x64xf32>
    %399 = math.exp %398 : vector<2x64xf32>
    %cst_104 = arith.constant 1.000000e+00 : f32
    %400 = vector.broadcast %cst_104 : f32 to vector<2x64xf32>
    %401 = arith.addf %400, %399 : vector<2x64xf32>
    %402 = arith.divf %400, %401 : vector<2x64xf32>
    %403 = vector.extract_strided_slice %402 {offsets = [0, 0], sizes = [2, 32], strides = [1, 1]} : vector<2x64xf32> to vector<2x32xf32>
    %404 = vector.extract_strided_slice %402 {offsets = [0, 32], sizes = [2, 32], strides = [1, 1]} : vector<2x64xf32> to vector<2x32xf32>
    %405 = vector.extract_strided_slice %394 {offsets = [0, 64], sizes = [2, 32], strides = [1, 1]} : vector<2x96xf32> to vector<2x32xf32>
    %406 = vector.extract_strided_slice %371 {offsets = [0, 64], sizes = [2, 32], strides = [1, 1]} : vector<2x96xf32> to vector<2x32xf32>
    %407 = arith.mulf %403, %406 : vector<2x32xf32>
    %408 = arith.addf %405, %407 : vector<2x32xf32>
    %409 = math.tanh %408 : vector<2x32xf32>
    %cst_105 = arith.constant 1.000000e+00 : f32
    %410 = vector.broadcast %cst_105 : f32 to vector<2x32xf32>
    %411 = arith.subf %410, %404 : vector<2x32xf32>
    %412 = arith.mulf %411, %409 : vector<2x32xf32>
    %413 = arith.mulf %404, %358 : vector<2x32xf32>
    %414 = arith.addf %412, %413 : vector<2x32xf32>
    %c6 = arith.constant 6 : index
    %c0_106 = arith.constant 0 : index
    %415 = vector.load %arg6[%c6, %c0_106] : memref<14x32xf32, #tpu.memory_space<vmem>>, vector<2x32xf32>
    tpu.vector_store %arg6[%c6, %c0_106], %393 {strides = array<i32>} : memref<14x32xf32, #tpu.memory_space<vmem>>, vector<2x32xf32>,
    %416 = tpu.concatenate %414, %393 in 1 : vector<2x32xf32>, vector<2x32xf32> -> vector<2x64xf32>
    %417 = arith.truncf %416 : vector<2x64xf32> to vector<2x64xbf16>
    %418 = arith.extf %417 : vector<2x64xbf16> to vector<2x64xf32>
    %419 = arith.subf %416, %418 : vector<2x64xf32>
    %420 = arith.truncf %419 : vector<2x64xf32> to vector<2x64xbf16>
    %cst_107 = arith.constant dense<0.000000e+00> : vector<2x384xf32>
    %421 = tpu.matmul %417, %154, %cst_107 {dimension_numbers = #tpu.dot_dimension_numbers<[1], [0], [0], [1], [0, 0, 1, 1], [], []>} : vector<2x64xbf16>, vector<64x384xbf16>, vector<2x384xf32> -> vector<2x384xf32>
    %cst_108 = arith.constant dense<0.000000e+00> : vector<2x384xf32>
    %422 = tpu.matmul %420, %154, %cst_108 {dimension_numbers = #tpu.dot_dimension_numbers<[1], [0], [0], [1], [0, 0, 1, 1], [], []>} : vector<2x64xbf16>, vector<64x384xbf16>, vector<2x384xf32> -> vector<2x384xf32>
    %423 = arith.addf %421, %422 : vector<2x384xf32>
    %cst_109 = arith.constant dense<0.000000e+00> : vector<2x384xf32>
    %424 = tpu.matmul %417, %155, %cst_109 {dimension_numbers = #tpu.dot_dimension_numbers<[1], [0], [0], [1], [0, 0, 1, 1], [], []>} : vector<2x64xbf16>, vector<64x384xbf16>, vector<2x384xf32> -> vector<2x384xf32>
    %425 = arith.addf %423, %424 : vector<2x384xf32>
    %426 = arith.addf %425, %158 : vector<2x384xf32>
    %427 = vector.extract_strided_slice %426 {offsets = [0, 0], sizes = [2, 96], strides = [1, 1]} : vector<2x384xf32> to vector<2x96xf32>
    %428 = vector.extract_strided_slice %426 {offsets = [0, 128], sizes = [2, 96], strides = [1, 1]} : vector<2x384xf32> to vector<2x96xf32>
    %429 = vector.extract_strided_slice %426 {offsets = [0, 256], sizes = [2, 96], strides = [1, 1]} : vector<2x384xf32> to vector<2x96xf32>
    %430 = vector.extract_strided_slice %428 {offsets = [0, 0], sizes = [2, 64], strides = [1, 1]} : vector<2x96xf32> to vector<2x64xf32>
    %431 = vector.extract_strided_slice %429 {offsets = [0, 0], sizes = [2, 64], strides = [1, 1]} : vector<2x96xf32> to vector<2x64xf32>
    %432 = arith.addf %430, %431 : vector<2x64xf32>
    %433 = arith.negf %432 : vector<2x64xf32>
    %434 = math.exp %433 : vector<2x64xf32>
    %cst_110 = arith.constant 1.000000e+00 : f32
    %435 = vector.broadcast %cst_110 : f32 to vector<2x64xf32>
    %436 = arith.addf %435, %434 : vector<2x64xf32>
    %437 = arith.divf %435, %436 : vector<2x64xf32>
    %438 = vector.extract_strided_slice %437 {offsets = [0, 0], sizes = [2, 32], strides = [1, 1]} : vector<2x64xf32> to vector<2x32xf32>
    %439 = vector.extract_strided_slice %437 {offsets = [0, 32], sizes = [2, 32], strides = [1, 1]} : vector<2x64xf32> to vector<2x32xf32>
    %440 = vector.extract_strided_slice %428 {offsets = [0, 64], sizes = [2, 32], strides = [1, 1]} : vector<2x96xf32> to vector<2x32xf32>
    %441 = vector.extract_strided_slice %429 {offsets = [0, 64], sizes = [2, 32], strides = [1, 1]} : vector<2x96xf32> to vector<2x32xf32>
    %442 = arith.mulf %438, %441 : vector<2x32xf32>
    %443 = arith.addf %440, %442 : vector<2x32xf32>
    %444 = math.tanh %443 : vector<2x32xf32>
    %cst_111 = arith.constant 1.000000e+00 : f32
    %445 = vector.broadcast %cst_111 : f32 to vector<2x32xf32>
    %446 = arith.subf %445, %439 : vector<2x32xf32>
    %447 = arith.mulf %446, %444 : vector<2x32xf32>
    %448 = arith.mulf %439, %393 : vector<2x32xf32>
    %449 = arith.addf %447, %448 : vector<2x32xf32>
    %450 = vector.extract_strided_slice %153 {offsets = [10, 0], sizes = [2, 96], strides = [1, 1]} : vector<14x96xf32> to vector<2x96xf32>
    %451 = vector.extract_strided_slice %450 {offsets = [0, 0], sizes = [2, 64], strides = [1, 1]} : vector<2x96xf32> to vector<2x64xf32>
    %452 = vector.extract_strided_slice %427 {offsets = [0, 0], sizes = [2, 64], strides = [1, 1]} : vector<2x96xf32> to vector<2x64xf32>
    %453 = arith.addf %451, %452 : vector<2x64xf32>
    %454 = arith.negf %453 : vector<2x64xf32>
    %455 = math.exp %454 : vector<2x64xf32>
    %cst_112 = arith.constant 1.000000e+00 : f32
    %456 = vector.broadcast %cst_112 : f32 to vector<2x64xf32>
    %457 = arith.addf %456, %455 : vector<2x64xf32>
    %458 = arith.divf %456, %457 : vector<2x64xf32>
    %459 = vector.extract_strided_slice %458 {offsets = [0, 0], sizes = [2, 32], strides = [1, 1]} : vector<2x64xf32> to vector<2x32xf32>
    %460 = vector.extract_strided_slice %458 {offsets = [0, 32], sizes = [2, 32], strides = [1, 1]} : vector<2x64xf32> to vector<2x32xf32>
    %461 = vector.extract_strided_slice %450 {offsets = [0, 64], sizes = [2, 32], strides = [1, 1]} : vector<2x96xf32> to vector<2x32xf32>
    %462 = vector.extract_strided_slice %427 {offsets = [0, 64], sizes = [2, 32], strides = [1, 1]} : vector<2x96xf32> to vector<2x32xf32>
    %463 = arith.mulf %459, %462 : vector<2x32xf32>
    %464 = arith.addf %461, %463 : vector<2x32xf32>
    %465 = math.tanh %464 : vector<2x32xf32>
    %cst_113 = arith.constant 1.000000e+00 : f32
    %466 = vector.broadcast %cst_113 : f32 to vector<2x32xf32>
    %467 = arith.subf %466, %460 : vector<2x32xf32>
    %468 = arith.mulf %467, %465 : vector<2x32xf32>
    %469 = arith.mulf %460, %414 : vector<2x32xf32>
    %470 = arith.addf %468, %469 : vector<2x32xf32>
    %c8_114 = arith.constant 8 : index
    %c0_115 = arith.constant 0 : index
    %471 = vector.load %arg6[%c8_114, %c0_115] : memref<14x32xf32, #tpu.memory_space<vmem>>, vector<2x32xf32>
    tpu.vector_store %arg6[%c8_114, %c0_115], %449 {strides = array<i32>} : memref<14x32xf32, #tpu.memory_space<vmem>>, vector<2x32xf32>,
    %472 = tpu.concatenate %470, %449 in 1 : vector<2x32xf32>, vector<2x32xf32> -> vector<2x64xf32>
    %473 = arith.truncf %472 : vector<2x64xf32> to vector<2x64xbf16>
    %474 = arith.extf %473 : vector<2x64xbf16> to vector<2x64xf32>
    %475 = arith.subf %472, %474 : vector<2x64xf32>
    %476 = arith.truncf %475 : vector<2x64xf32> to vector<2x64xbf16>
    %cst_116 = arith.constant dense<0.000000e+00> : vector<2x384xf32>
    %477 = tpu.matmul %473, %154, %cst_116 {dimension_numbers = #tpu.dot_dimension_numbers<[1], [0], [0], [1], [0, 0, 1, 1], [], []>} : vector<2x64xbf16>, vector<64x384xbf16>, vector<2x384xf32> -> vector<2x384xf32>
    %cst_117 = arith.constant dense<0.000000e+00> : vector<2x384xf32>
    %478 = tpu.matmul %476, %154, %cst_117 {dimension_numbers = #tpu.dot_dimension_numbers<[1], [0], [0], [1], [0, 0, 1, 1], [], []>} : vector<2x64xbf16>, vector<64x384xbf16>, vector<2x384xf32> -> vector<2x384xf32>
    %479 = arith.addf %477, %478 : vector<2x384xf32>
    %cst_118 = arith.constant dense<0.000000e+00> : vector<2x384xf32>
    %480 = tpu.matmul %473, %155, %cst_118 {dimension_numbers = #tpu.dot_dimension_numbers<[1], [0], [0], [1], [0, 0, 1, 1], [], []>} : vector<2x64xbf16>, vector<64x384xbf16>, vector<2x384xf32> -> vector<2x384xf32>
    %481 = arith.addf %479, %480 : vector<2x384xf32>
    %482 = arith.addf %481, %158 : vector<2x384xf32>
    %483 = vector.extract_strided_slice %482 {offsets = [0, 0], sizes = [2, 96], strides = [1, 1]} : vector<2x384xf32> to vector<2x96xf32>
    %484 = vector.extract_strided_slice %482 {offsets = [0, 128], sizes = [2, 96], strides = [1, 1]} : vector<2x384xf32> to vector<2x96xf32>
    %485 = vector.extract_strided_slice %482 {offsets = [0, 256], sizes = [2, 96], strides = [1, 1]} : vector<2x384xf32> to vector<2x96xf32>
    %486 = vector.extract_strided_slice %484 {offsets = [0, 0], sizes = [2, 64], strides = [1, 1]} : vector<2x96xf32> to vector<2x64xf32>
    %487 = vector.extract_strided_slice %485 {offsets = [0, 0], sizes = [2, 64], strides = [1, 1]} : vector<2x96xf32> to vector<2x64xf32>
    %488 = arith.addf %486, %487 : vector<2x64xf32>
    %489 = arith.negf %488 : vector<2x64xf32>
    %490 = math.exp %489 : vector<2x64xf32>
    %cst_119 = arith.constant 1.000000e+00 : f32
    %491 = vector.broadcast %cst_119 : f32 to vector<2x64xf32>
    %492 = arith.addf %491, %490 : vector<2x64xf32>
    %493 = arith.divf %491, %492 : vector<2x64xf32>
    %494 = vector.extract_strided_slice %493 {offsets = [0, 0], sizes = [2, 32], strides = [1, 1]} : vector<2x64xf32> to vector<2x32xf32>
    %495 = vector.extract_strided_slice %493 {offsets = [0, 32], sizes = [2, 32], strides = [1, 1]} : vector<2x64xf32> to vector<2x32xf32>
    %496 = vector.extract_strided_slice %484 {offsets = [0, 64], sizes = [2, 32], strides = [1, 1]} : vector<2x96xf32> to vector<2x32xf32>
    %497 = vector.extract_strided_slice %485 {offsets = [0, 64], sizes = [2, 32], strides = [1, 1]} : vector<2x96xf32> to vector<2x32xf32>
    %498 = arith.mulf %494, %497 : vector<2x32xf32>
    %499 = arith.addf %496, %498 : vector<2x32xf32>
    %500 = math.tanh %499 : vector<2x32xf32>
    %cst_120 = arith.constant 1.000000e+00 : f32
    %501 = vector.broadcast %cst_120 : f32 to vector<2x32xf32>
    %502 = arith.subf %501, %495 : vector<2x32xf32>
    %503 = arith.mulf %502, %500 : vector<2x32xf32>
    %504 = arith.mulf %495, %449 : vector<2x32xf32>
    %505 = arith.addf %503, %504 : vector<2x32xf32>
    %506 = vector.extract_strided_slice %153 {offsets = [12, 0], sizes = [2, 96], strides = [1, 1]} : vector<14x96xf32> to vector<2x96xf32>
    %507 = vector.extract_strided_slice %506 {offsets = [0, 0], sizes = [2, 64], strides = [1, 1]} : vector<2x96xf32> to vector<2x64xf32>
    %508 = vector.extract_strided_slice %483 {offsets = [0, 0], sizes = [2, 64], strides = [1, 1]} : vector<2x96xf32> to vector<2x64xf32>
    %509 = arith.addf %507, %508 : vector<2x64xf32>
    %510 = arith.negf %509 : vector<2x64xf32>
    %511 = math.exp %510 : vector<2x64xf32>
    %cst_121 = arith.constant 1.000000e+00 : f32
    %512 = vector.broadcast %cst_121 : f32 to vector<2x64xf32>
    %513 = arith.addf %512, %511 : vector<2x64xf32>
    %514 = arith.divf %512, %513 : vector<2x64xf32>
    %515 = vector.extract_strided_slice %514 {offsets = [0, 0], sizes = [2, 32], strides = [1, 1]} : vector<2x64xf32> to vector<2x32xf32>
    %516 = vector.extract_strided_slice %514 {offsets = [0, 32], sizes = [2, 32], strides = [1, 1]} : vector<2x64xf32> to vector<2x32xf32>
    %517 = vector.extract_strided_slice %506 {offsets = [0, 64], sizes = [2, 32], strides = [1, 1]} : vector<2x96xf32> to vector<2x32xf32>
    %518 = vector.extract_strided_slice %483 {offsets = [0, 64], sizes = [2, 32], strides = [1, 1]} : vector<2x96xf32> to vector<2x32xf32>
    %519 = arith.mulf %515, %518 : vector<2x32xf32>
    %520 = arith.addf %517, %519 : vector<2x32xf32>
    %521 = math.tanh %520 : vector<2x32xf32>
    %cst_122 = arith.constant 1.000000e+00 : f32
    %522 = vector.broadcast %cst_122 : f32 to vector<2x32xf32>
    %523 = arith.subf %522, %516 : vector<2x32xf32>
    %524 = arith.mulf %523, %521 : vector<2x32xf32>
    %525 = arith.mulf %516, %470 : vector<2x32xf32>
    %526 = arith.addf %524, %525 : vector<2x32xf32>
    %c10 = arith.constant 10 : index
    %c0_123 = arith.constant 0 : index
    %527 = vector.load %arg6[%c10, %c0_123] : memref<14x32xf32, #tpu.memory_space<vmem>>, vector<2x32xf32>
    tpu.vector_store %arg6[%c10, %c0_123], %505 {strides = array<i32>} : memref<14x32xf32, #tpu.memory_space<vmem>>, vector<2x32xf32>,
    %528 = tpu.concatenate %526, %505 in 1 : vector<2x32xf32>, vector<2x32xf32> -> vector<2x64xf32>
    %529 = arith.truncf %528 : vector<2x64xf32> to vector<2x64xbf16>
    %530 = arith.extf %529 : vector<2x64xbf16> to vector<2x64xf32>
    %531 = arith.subf %528, %530 : vector<2x64xf32>
    %532 = arith.truncf %531 : vector<2x64xf32> to vector<2x64xbf16>
    %cst_124 = arith.constant dense<0.000000e+00> : vector<2x384xf32>
    %533 = tpu.matmul %529, %154, %cst_124 {dimension_numbers = #tpu.dot_dimension_numbers<[1], [0], [0], [1], [0, 0, 1, 1], [], []>} : vector<2x64xbf16>, vector<64x384xbf16>, vector<2x384xf32> -> vector<2x384xf32>
    %cst_125 = arith.constant dense<0.000000e+00> : vector<2x384xf32>
    %534 = tpu.matmul %532, %154, %cst_125 {dimension_numbers = #tpu.dot_dimension_numbers<[1], [0], [0], [1], [0, 0, 1, 1], [], []>} : vector<2x64xbf16>, vector<64x384xbf16>, vector<2x384xf32> -> vector<2x384xf32>
    %535 = arith.addf %533, %534 : vector<2x384xf32>
    %cst_126 = arith.constant dense<0.000000e+00> : vector<2x384xf32>
    %536 = tpu.matmul %529, %155, %cst_126 {dimension_numbers = #tpu.dot_dimension_numbers<[1], [0], [0], [1], [0, 0, 1, 1], [], []>} : vector<2x64xbf16>, vector<64x384xbf16>, vector<2x384xf32> -> vector<2x384xf32>
    %537 = arith.addf %535, %536 : vector<2x384xf32>
    %538 = arith.addf %537, %158 : vector<2x384xf32>
    %539 = vector.extract_strided_slice %538 {offsets = [0, 128], sizes = [2, 96], strides = [1, 1]} : vector<2x384xf32> to vector<2x96xf32>
    %540 = vector.extract_strided_slice %538 {offsets = [0, 256], sizes = [2, 96], strides = [1, 1]} : vector<2x384xf32> to vector<2x96xf32>
    %541 = vector.extract_strided_slice %539 {offsets = [0, 0], sizes = [2, 64], strides = [1, 1]} : vector<2x96xf32> to vector<2x64xf32>
    %542 = vector.extract_strided_slice %540 {offsets = [0, 0], sizes = [2, 64], strides = [1, 1]} : vector<2x96xf32> to vector<2x64xf32>
    %543 = arith.addf %541, %542 : vector<2x64xf32>
    %544 = arith.negf %543 : vector<2x64xf32>
    %545 = math.exp %544 : vector<2x64xf32>
    %cst_127 = arith.constant 1.000000e+00 : f32
    %546 = vector.broadcast %cst_127 : f32 to vector<2x64xf32>
    %547 = arith.addf %546, %545 : vector<2x64xf32>
    %548 = arith.divf %546, %547 : vector<2x64xf32>
    %549 = vector.extract_strided_slice %548 {offsets = [0, 0], sizes = [2, 32], strides = [1, 1]} : vector<2x64xf32> to vector<2x32xf32>
    %550 = vector.extract_strided_slice %548 {offsets = [0, 32], sizes = [2, 32], strides = [1, 1]} : vector<2x64xf32> to vector<2x32xf32>
    %551 = vector.extract_strided_slice %539 {offsets = [0, 64], sizes = [2, 32], strides = [1, 1]} : vector<2x96xf32> to vector<2x32xf32>
    %552 = vector.extract_strided_slice %540 {offsets = [0, 64], sizes = [2, 32], strides = [1, 1]} : vector<2x96xf32> to vector<2x32xf32>
    %553 = arith.mulf %549, %552 : vector<2x32xf32>
    %554 = arith.addf %551, %553 : vector<2x32xf32>
    %555 = math.tanh %554 : vector<2x32xf32>
    %cst_128 = arith.constant 1.000000e+00 : f32
    %556 = vector.broadcast %cst_128 : f32 to vector<2x32xf32>
    %557 = arith.subf %556, %550 : vector<2x32xf32>
    %558 = arith.mulf %557, %555 : vector<2x32xf32>
    %559 = arith.mulf %550, %505 : vector<2x32xf32>
    %560 = arith.addf %558, %559 : vector<2x32xf32>
    %c12 = arith.constant 12 : index
    %c0_129 = arith.constant 0 : index
    %561 = vector.load %arg6[%c12, %c0_129] : memref<14x32xf32, #tpu.memory_space<vmem>>, vector<2x32xf32>
    tpu.vector_store %arg6[%c12, %c0_129], %560 {strides = array<i32>} : memref<14x32xf32, #tpu.memory_space<vmem>>, vector<2x32xf32>,
    %c0_130 = arith.constant 0 : index
    %c0_131 = arith.constant 0 : index
    %562 = vector.load %arg6[%c0_130, %c0_131] : memref<14x32xf32, #tpu.memory_space<vmem>>, vector<14x32xf32>
    %cst_132 = arith.constant dense<0.000000e+00> : vector<14xf32>
    %563 = vector.multi_reduction <add>, %562, %cst_132 [1] : vector<14x32xf32> to vector<14xf32>
    %564 = vector.shape_cast %563 : vector<14xf32> to vector<14x1xf32>
    %cst_133 = arith.constant 3.200000e+01 : f32
    %565 = vector.broadcast %cst_133 : f32 to vector<14x1xf32>
    %566 = arith.divf %564, %565 : vector<14x1xf32>
    %567 = vector.broadcast %566 : vector<14x1xf32> to vector<14x32xf32>
    %568 = arith.subf %562, %567 : vector<14x32xf32>
    %569 = arith.mulf %568, %568 : vector<14x32xf32>
    %cst_134 = arith.constant dense<0.000000e+00> : vector<14xf32>
    %570 = vector.multi_reduction <add>, %569, %cst_134 [1] : vector<14x32xf32> to vector<14xf32>
    %571 = vector.shape_cast %570 : vector<14xf32> to vector<14x1xf32>
    %cst_135 = arith.constant 3.200000e+01 : f32
    %572 = vector.broadcast %cst_135 : f32 to vector<14x1xf32>
    %573 = arith.divf %571, %572 : vector<14x1xf32>
    %cst_136 = arith.constant 9.99999974E-6 : f32
    %574 = vector.broadcast %cst_136 : f32 to vector<14x1xf32>
    %575 = arith.addf %573, %574 : vector<14x1xf32>
    %576 = math.rsqrt %575 : vector<14x1xf32>
    %577 = vector.broadcast %576 : vector<14x1xf32> to vector<14x32xf32>
    %578 = arith.mulf %568, %577 : vector<14x32xf32>
    %c88 = arith.constant 88 : index
    %c0_137 = arith.constant 0 : index
    %579 = vector.load %arg4[%c88, %c0_137] : memref<112x384xf32, #tpu.memory_space<vmem>>, vector<1x32xf32>
    %580 = vector.broadcast %579 : vector<1x32xf32> to vector<14x32xf32>
    %581 = arith.mulf %578, %580 : vector<14x32xf32>
    %c96_138 = arith.constant 96 : index
    %c0_139 = arith.constant 0 : index
    %582 = vector.load %arg4[%c96_138, %c0_139] : memref<112x384xf32, #tpu.memory_space<vmem>>, vector<1x32xf32>
    %583 = vector.broadcast %582 : vector<1x32xf32> to vector<14x32xf32>
    %584 = arith.addf %581, %583 : vector<14x32xf32>
    %c160 = arith.constant 160 : index
    %c0_140 = arith.constant 0 : index
    %585 = vector.load %arg2[%c160, %c0_140] : memref<224x384xbf16, #tpu.memory_space<vmem>>, vector<32x32xbf16>
    %c160_141 = arith.constant 160 : index
    %c0_142 = arith.constant 0 : index
    %586 = vector.load %arg3[%c160_141, %c0_142] : memref<224x384xbf16, #tpu.memory_space<vmem>>, vector<32x32xbf16>
    %587 = arith.truncf %584 : vector<14x32xf32> to vector<14x32xbf16>
    %588 = arith.extf %587 : vector<14x32xbf16> to vector<14x32xf32>
    %589 = arith.subf %584, %588 : vector<14x32xf32>
    %590 = arith.truncf %589 : vector<14x32xf32> to vector<14x32xbf16>
    %cst_143 = arith.constant dense<0.000000e+00> : vector<14x32xf32>
    %591 = tpu.matmul %587, %585, %cst_143 {dimension_numbers = #tpu.dot_dimension_numbers<[1], [0], [0], [1], [0, 0, 1, 1], [], []>} : vector<14x32xbf16>, vector<32x32xbf16>, vector<14x32xf32> -> vector<14x32xf32>
    %cst_144 = arith.constant dense<0.000000e+00> : vector<14x32xf32>
    %592 = tpu.matmul %590, %585, %cst_144 {dimension_numbers = #tpu.dot_dimension_numbers<[1], [0], [0], [1], [0, 0, 1, 1], [], []>} : vector<14x32xbf16>, vector<32x32xbf16>, vector<14x32xf32> -> vector<14x32xf32>
    %593 = arith.addf %591, %592 : vector<14x32xf32>
    %cst_145 = arith.constant dense<0.000000e+00> : vector<14x32xf32>
    %594 = tpu.matmul %587, %586, %cst_145 {dimension_numbers = #tpu.dot_dimension_numbers<[1], [0], [0], [1], [0, 0, 1, 1], [], []>} : vector<14x32xbf16>, vector<32x32xbf16>, vector<14x32xf32> -> vector<14x32xf32>
    %595 = arith.addf %593, %594 : vector<14x32xf32>
    %c104 = arith.constant 104 : index
    %c0_146 = arith.constant 0 : index
    %596 = vector.load %arg4[%c104, %c0_146] : memref<112x384xf32, #tpu.memory_space<vmem>>, vector<1x32xf32>
    %597 = vector.broadcast %596 : vector<1x32xf32> to vector<14x32xf32>
    %598 = arith.addf %595, %597 : vector<14x32xf32>
    %c0_147 = arith.constant 0 : index
    %c0_148 = arith.constant 0 : index
    %599 = vector.load %arg5[%c0_147, %c0_148] : memref<14x32xf32, #tpu.memory_space<vmem>>, vector<14x32xf32>
    tpu.vector_store %arg5[%c0_147, %c0_148], %598 {strides = array<i32>} : memref<14x32xf32, #tpu.memory_space<vmem>>, vector<14x32xf32>,
    return
  }
}

</mosaic_0001>

<bundles_post_ra>
// kernel: forward.1
= control target key start
LH: loop header
LB: loop body
LE: loop exit
PB: predicated region body
PF: predicated region fallthrough
CT: control target
= control target key end

     0   :  { %10 = vsyncpa [#allocation4], 0  ;;  %s5672_s0 = inlined_call_operand.vmem [shape: f32[16,16], index: 0, kind: input, shape index: {}]   ;;  %s5673_s1 = inlined_call_operand.vmem [shape: s32[14,1], index: 1, kind: input, shape index: {}]   ;;  %s5674_s2 = inlined_call_operand.hbm [shape: bf16[224,384], index: 2, kind: input, shape index: {}]   ;;  %s5675_s3 = inlined_call_operand.hbm [shape: bf16[224,384], index: 3, kind: input, shape index: {}]   ;;  %s5676_s4 = inlined_call_operand.hbm [shape: f32[112,384], index: 4, kind: input, shape index: {}]   ;;  %s5677_s5 = inlined_call_operand.vmem [shape: f32[14,32], index: 5, kind: output, shape index: {}]  }
   0x1   :  { %11 = vsyncpa [#allocation6], 0  ;;  %s4739_s18 = smov [#allocation5]   ;;  %s4740_s20 = smov [#allocation3]  }
   0x2   :  { %s33_s19 = sshll.u32 %s4739_s18, 4  ;;  %s21_s21 = sshll.u32 %s4740_s20, 4  ;;  %s34_s19 = int_to_ptr.vmem [resolvable:$true] %s33_s19  ;;  %s22_s21 = int_to_ptr.vmem [resolvable:$true] %s21_s21 }
   0x3   :  { %s4683_s22 = scalar_lea.vmem %s34_s19, 5376  ;;  %p4688_p1 = scmp.lt.s32.totalorder %s34_s19, %s34_s19 }
   0x4   :  { %p4684_p0 = scmp.ne.s32.totalorder %s34_s19, %s4683_s22  ;;  %p4689_p2 = scmp.lt.s32.totalorder %s4683_s22, %s4683_s22 }
   0x6   :  { %p4690_p3 = por %p4689_p2, %p4688_p1 }
   0x8   :  { %p4691_p4 = pnand %p4690_p3, %p4684_p0 }
   0xa   :  { %4694 = shalt.err (!%p4691_p4)
}
   0xb   :  { %s4741_s23 = smov 192   ;;  %s4742_s24 = smov 12  }
   0xc   :  { %39 = dma.hbm_to_vmem [thread:$0]  %s5675_s3, 5376, %s34_s19, [#allocation6], %s4741_s23, %s4741_s23, %s4742_s24  }
   0xd   :  { %s4703_s27 = scalar_lea.vmem %s22_s21, 5376  ;;  %p4708_p6 = scmp.lt.s32.totalorder %s22_s21, %s22_s21 }
   0xe   :  { %p4704_p5 = scmp.ne.s32.totalorder %s22_s21, %s4703_s27  ;;  %p4709_p7 = scmp.lt.s32.totalorder %s4703_s27, %s4703_s27 }
  0x10   :  { %p4710_p8 = por %p4709_p7, %p4708_p6 }
  0x12   :  { %p4711_p9 = pnand %p4710_p8, %p4704_p5 }
  0x14   :  { %4714 = shalt.err (!%p4711_p9)
}
  0x15   :  { %27 = dma.hbm_to_vmem [thread:$0]  %s5674_s2, 5376, %s22_s21, [#allocation4], %s4741_s23, %s4741_s23, %s4742_s24  }
  0x16   :  { %s4743_s30 = smov [#allocation7]  }
  0x17   :  { %s45_s6 = sshll.u32 %s4743_s30, 4  ;;  %s46_s6 = int_to_ptr.vmem [resolvable:$true] %s45_s6 }
  0x18   :  { %s4723_s7 = scalar_lea.vmem %s46_s6, 5376  ;;  %p4728_p11 = scmp.lt.s32.totalorder %s46_s6, %s46_s6 }
  0x19   :  { %p4724_p10 = scmp.ne.s32.totalorder %s46_s6, %s4723_s7  ;;  %p4729_p12 = scmp.lt.s32.totalorder %s4723_s7, %s4723_s7 }
  0x1b   :  { %p4730_p13 = por %p4729_p12, %p4728_p11 }
  0x1d   :  { %p4731_p0 = pnand %p4730_p13, %p4724_p10 }
  0x1f   :  { %4734 = shalt.err (!%p4731_p0)
}
  0x20   :  { %s4744_s3 = smov 384   ;;  %s4745_s8 = smov 24  }
  0x21   :  { %51 = dma.hbm_to_vmem [thread:$0]  %s5676_s4, 5376, %s46_s6, [#allocation6], %s4744_s3, %s4744_s3, %s4745_s8  }
  0x22   :  { %4735 = dma.done.wait [#allocation4], 5376  }
  0x23   :  { %4736 = vsyncadd [#allocation4], 4294961920 }
  0x24   :  { %4737 = dma.done.wait [#allocation6], 10752  }
  0x25   :  { %4738 = vsyncadd [#allocation6], 4294956544  ;;  %v62_v0 = vld [vmem:[%s5672_s0] sm:$0xff]  ;;  %vm68_vm0 = vcmask 130048   ;;  %v63_v1 = vld [vmem:[%s5672_s0 + $0x8] sm:$0xff]  ;;  %v4746_v17 = vmov 0.0  }
  0x26   :  { %v4797_v2 = vclamps-f32 %v62_v0, 10.0  ;;  %v3823_v3 = vclamps-f32 %v63_v1, 10.0  ;;  %v4499_v16 = vld [vmem:[#allocation3 + $0x90] ss:$12 sps:$4 sm:$0xff]   ;;  %4106 = vmatprep.subr.bf16.mxu1 %v4746_v17  ;;  %vm4747_vm1 = vmmov 0   ;;  %4100 = vmatprep.subr.bf16.mxu0 %v4746_v17  ;;  %vm260_vm2 = vcmask 261120  }
  0x27   :  { %4108 = vmatprep.mubr.msk.bf16.mxu1 %vm4747_vm1, %v4746_v17  ;;  %4107 = vmatpush3.bf16.msra.mxu1 %v4499_v16  ;;  %v96_v26 = vld [vmem:[#allocation7 + $0x30] ss:$0 sm:$0xff]  ;;  %v99_v30 = vld [vmem:[#allocation7 + $0x48] ss:$0 sm:$0xff]  ;;  %v4500_v39 = vld [vmem:[#allocation5 + $0x90] ss:$12 sps:$4 sm:$0xff]  }
  0x28   :  { %v69_v4 = vsel %vm68_vm0, %v4797_v2, 0.0  ;;  %v72_v5 = vsel %vm68_vm0, %v3823_v3, 0.0  ;;  %4101 = vmatpush3.bf16.msra.mxu0 %v4499_v16  ;;  %4102 = vmatprep.mubr.msk.bf16.mxu0 %vm4747_vm1, %v4746_v17  ;;  %v255_v51 = vld [vmem:[#allocation7 + $0x60] ss:$0 sm:$0xff]  ;;  %vm468_vm3 = vcmask 123904   ;;  %v4748_v1 = vmov 0  }
  0x29   :  { %70 = vadd.xlane.f32.xlu0 %v69_v4  ;;  %4112 = vmatprep.subr.bf16.mxu0 %v4746_v17  ;;  %v469_v62 = vsel %vm468_vm3, %v4797_v2, 0.0  ;;  %vm1095_vm6 = vcmask 523264   ;;  %s4750_s16 = smov 64   ;;  %s4751_s17 = smov 96   ;;  %vm1662_vm7 = vcmask 254976   ;;  %vm3612_vm8 = vcmask 259072  }
  0x2a   :  { %4118 = vmatprep.subr.bf16.mxu1 %v4746_v17  ;;  %4498 = vset.pattern.permute.xlu1 %v4748_v1 }
  0x2b   :  { %4497 = vset.pattern.permute.xlu0 %v4748_v1 }
  0x2d   :  { %73 = vadd.xlane.f32.xlu0 %v72_v5 }
  0xb2   :  { %v71_v6 = vpop.xlane.xlu0 %70 }
  0xb3   :  { %v76_v7 = vmul.f32 0.0625, %v71_v6 }
  0xb5   :  { %v78_v8 = vsub.f32 %v4797_v2, %v76_v7 }
  0xb6   :  { %v74_v9 = vpop.xlane.xlu0 %73 }
  0xb7   :  { %v77_v10 = vmul.f32 0.0625, %v74_v9  ;;  %v80_v11 = vmul.f32 %v78_v8, %v78_v8 }
  0xb9   :  { %v79_v12 = vsub.f32 %v3823_v3, %v77_v10  ;;  %v82_v13 = vsel %vm68_vm0, %v80_v11, 0.0 }
  0xba   :  { %83 = vadd.xlane.f32.xlu1 %v82_v13 }
  0xbb   :  { %v81_v14 = vmul.f32 %v79_v12, %v79_v12 }
  0xbd   :  { %v85_v15 = vsel %vm68_vm0, %v81_v14, 0.0 }
  0xbe   :  { %86 = vadd.xlane.f32.xlu1 %v85_v15 }
 0x143   :  { %v84_v18 = vpop.xlane.xlu1 %83 }
 0x144   :  { %v88_v19 = vmul.f32 0.0625, %v84_v18 }
 0x146   :  { %v90_v20 = vadd.f32 1e-05, %v88_v19  ;;  %v637_v19 = vld [vmem:[%s5673_s1 + $0x8] sm:$0x3f] }
 0x147   :  { %v87_v21 = vpop.xlane.xlu1 %86 }
 0x148   :  { %4551 = vrsqrt.f32 %v90_v20  ;;  %v89_v22 = vmul.f32 0.0625, %v87_v21  ;;  %v4501_v20 = vld [vmem:[#allocation3 + $0xc0] ss:$12 sps:$4 sm:$0xff]   ;;  %v4502_v21 = vld [vmem:[#allocation3 + $0xa8] ss:$12 sps:$4 sm:$0xff]  }
 0x14a   :  { %v91_v23 = vadd.f32 1e-05, %v89_v22  ;;  %v638_v22 = vlaneseq }
 0x14c   :  { %4553 = vrsqrt.f32 %v91_v23  ;;  %v4843_v23 = vshrl.u32 %v638_v22, 7 }
 0x155   :  { %v4552_v24 = vpop.eup %4551 }
 0x156   :  { %v94_v25 = vmul.f32 %v4552_v24, %v78_v8  ;;  %v1037_v24 = vsub.s32 1, %v4843_v23 }
 0x158   :  { %v97_v29 = vmul.f32 %v96_v26, %v94_v25  ;;  %v1041_v25 = vsub.s32 2, %v4843_v23 }
 0x159   :  { %v4554_v27 = vpop.eup %4553 }
 0x15a   :  { %v95_v28 = vmul.f32 %v4554_v27, %v79_v12  ;;  %v100_v32 = vadd.f32 %v99_v30, %v97_v29 }
 0x15c   :  { %v98_v31 = vmul.f32 %v96_v26, %v95_v28  ;;  %v4847_v26 = vld [vmem:[#allocation7] ss:$8 sm:$0x7] }
 0x15d   :  { %v4850_v27 = vrot.slane %v4847_v26, %v1037_v24  ;;  %v4853_v28 = vrot.slane %v4847_v26, %v1041_v25 }
 0x15e   :  { %v101_v33 = vadd.f32 %v99_v30, %v98_v31 }
 0x160   :  { %v106_v34 = vpack.c.bf16 %v101_v33, %v100_v32 }
 0x162   :  { %4109 = vmatmul.mubr.msk.bf16.vlgmr.msra.gmra.mxu1 %vm68_vm0, %v106_v34  ;;  %v107_v35 = vunpack.c.l.bf16 %v106_v34  ;;  %v108_v36 = vunpack.c.h.bf16 %v106_v34 }
 0x163   :  { %4122 = vmatprep.mubr.msk.bf16.mxu1 %vm4747_vm1, %v4746_v17  ;;  %4119 = vmatpush3.bf16.msra.mxu1 %v4501_v20 }
 0x164   :  { %v109_v37 = vsub.f32 %v100_v32, %v107_v35  ;;  %v110_v38 = vsub.f32 %v101_v33, %v108_v36  ;;  %4120 = vmatprep.subr.bf16.mxu1 %v4746_v17 }
 0x166   :  { %v111_v40 = vpack.c.bf16 %v110_v38, %v109_v37 }
 0x167   :  { %4121 = vmatpush3.bf16.msra.mxu1 %v4502_v21 }
 0x168   :  { %4103 = vmatmul.mubr.msk.bf16.vlgmr.msra.gmra.mxu0 %vm68_vm0, %v111_v40  ;;  %4134 = vmatprep.subr.bf16.mxu1 %v4746_v17  ;;  %v288_v40 = vld [vmem:[#allocation7 + $0x78] ss:$0 sm:$0xff] }
 0x169   :  { %4113 = vmatpush3.bf16.msra.mxu0 %v4500_v39  ;;  %4114 = vmatprep.mubr.msk.bf16.mxu0 %vm4747_vm1, %v4746_v17 }
 0x16a   :  { %4126 = vmatprep.subr.bf16.mxu0 %v4746_v17 }
 0x170   :  { %4115 = vmatmul.mubr.msk.bf16.vlgmr.msra.gmra.mxu0 %vm68_vm0, %v106_v34 }
 0x171   :  { %4130 = vmatprep.mubr.msk.bf16.mxu0 %vm4747_vm1, %v4746_v17  ;;  %4127 = vmatpush3.bf16.msra.mxu0 %v4501_v20  ;;  %v4512_v20 = vld [vmem:[#allocation3 + $0x60] ss:$12 sps:$4 sm:$0xff]  }
 0x172   :  { %4128 = vmatprep.subr.bf16.mxu0 %v4746_v17 }
 0x175   :  { %4129 = vmatpush3.bf16.msra.mxu0 %v4502_v21  ;;  %v4898_v21 = vld [vmem:[#allocation3 + $0x4c] ss:$12 sps:$4 sm:$0xff]  }
 0x176   :  { %4142 = vmatprep.subr.bf16.mxu0 %v4746_v17 }
 0x222   :  { %v199_v41 = vpop.f32.mrf.mxu1 }
 0x224   :  { %v4110_v42 = vpop.f32.mrf.mxu1 }
 0x226   :  { %v202_v43 = vpop.f32.mrf.mxu1 }
 0x228   :  { %v155_v44 = vpop.f32.mrf.mxu0  ;;  %v4111_v45 = vpop.f32.mrf.mxu1 }
 0x229   :  { %v200_v49 = vadd.f32 %v199_v41, %v155_v44  ;;  %v482_v45 = vld [vmem:[#allocation7 + $0xc0] ss:$0 sm:$0xff] }
 0x22a   :  { %v4104_v46 = vpop.f32.mrf.mxu0 }
 0x22c   :  { %v158_v47 = vpop.f32.mrf.mxu0 }
 0x22d   :  { %v203_v54 = vadd.f32 %v202_v43, %v158_v47  ;;  %v291_v47 = vld [vmem:[#allocation7 + $0x90] ss:$0 sm:$0xff] }
 0x22e   :  { %v4105_v48 = vpop.f32.mrf.mxu0 }
 0x230   :  { %v246_v50 = vpop.f32.mrf.mxu0 }
 0x231   :  { %v253_v52 = vadd.f32 %v246_v50, %v200_v49  ;;  %v484_v49 = vld [vmem:[#allocation7 + $0xd8] ss:$0 sm:$0xff] }
 0x232   :  { %v4116_v53 = vpop.f32.mrf.mxu0 }
 0x233   :  { %v256_v55 = vadd.f32 %v255_v51, %v253_v52  ;;  %v4503_v53 = vld [vmem:[#allocation3 + $0xd8] ss:$12 sps:$4 sm:$0xff]  }
 0x234   :  { %v249_v56 = vpop.f32.mrf.mxu0 }
 0x235   :  { %v254_v57 = vadd.f32 %v249_v56, %v203_v54  ;;  %v258_v58 = vmax.f32 %v256_v55, 0.0 }
 0x236   :  { %v4117_v59 = vpop.f32.mrf.mxu0 }
 0x237   :  { %v257_v60 = vadd.f32 %v255_v51, %v254_v57  ;;  %v261_v61 = vsel %vm260_vm2, %v258_v58, 0.0 }
 0x238   :  { %262 = vadd.xlane.f32.xlu0 %v261_v61 }
 0x239   :  { %v259_v63 = vmax.f32 %v257_v60, 0.0 }
 0x23b   :  { %v264_v0 = vsel %vm260_vm2, %v259_v63, 0.0 }
 0x23c   :  { %470 = vadd.xlane.f32.xlu0 %v469_v62  ;;  %265 = vadd.xlane.f32.xlu1 %v264_v0  ;;  %v4504_v62 = vld [vmem:[#allocation5 + $0xc0] ss:$12 sps:$4 sm:$0xff]  }
 0x2c1   :  { %v263_v3 = vpop.xlane.xlu0 %262 }
 0x2c2   :  { %v268_v4 = vmul.f32 0.03125, %v263_v3  ;;  %v4506_v3 = vld [vmem:[#allocation5 + $0xd8] ss:$12 sps:$4 sm:$0xff]  }
 0x2c4   :  { %v270_v5 = vsub.f32 %v258_v58, %v268_v4 }
 0x2c5   :  { %v471_v6 = vpop.xlane.xlu0 %470  ;;  %v266_v7 = vpop.xlane.xlu1 %265 }
 0x2c6   :  { %v472_v8 = vmul.f32 0.0625, %v471_v6  ;;  %v269_v9 = vmul.f32 0.03125, %v266_v7  ;;  %v272_v10 = vmul.f32 %v270_v5, %v270_v5  ;;  %v639_v6 = vand.u32 127, %v638_v22 }
 0x2c8   :  { %v473_v11 = vsub.f32 %v4797_v2, %v472_v8  ;;  %v271_v12 = vsub.f32 %v259_v63, %v269_v9  ;;  %v274_v13 = vsel %vm260_vm2, %v272_v10, 0.0  ;;  %v636_v2 = vld [vmem:[%s5673_s1] sm:$0xff]  ;;  %v4507_v9 = vld [vmem:[#allocation3 + $0x138] ss:$12 sps:$4 sm:$0xff]   ;;  %s4749_s1 = smov 32  }
 0x2c9   :  { %275 = vadd.xlane.f32.xlu1 %v274_v13 }
 0x2ca   :  { %v474_v14 = vmul.f32 %v473_v11, %v473_v11  ;;  %v273_v15 = vmul.f32 %v271_v12, %v271_v12 }
 0x2cc   :  { %v475_v16 = vsel %vm468_vm3, %v474_v14, 0.0  ;;  %v277_v18 = vsel %vm260_vm2, %v273_v15, 0.0 }
 0x2cd   :  { %476 = vadd.xlane.f32.xlu1 %v475_v16  ;;  %278 = vadd.xlane.f32.xlu0 %v277_v18  ;;  %v4509_v18 = vld [vmem:[#allocation5 + $0x138] ss:$12 sps:$4 sm:$0xff]  }
 0x2de   :  { %644 = vperm.xlu1 %4498, %v637_v19   ;;  %v4510_v19 = vld [vmem:[#allocation5 + $0x120] ss:$12 sps:$4 sm:$0xff]  }
 0x2e3   :  { %641 = vperm.xlu0 %4497, %v636_v2   ;;  %v4511_v2 = vld [vmem:[#allocation3 + $0x78] ss:$12 sps:$4 sm:$0xff]  }
 0x352   :  { %v276_v29 = vpop.xlane.xlu1 %275 }
 0x353   :  { %v280_v30 = vmul.f32 0.03125, %v276_v29 }
 0x355   :  { %v282_v31 = vadd.f32 1e-05, %v280_v30 }
 0x356   :  { %v279_v32 = vpop.xlane.xlu0 %278  ;;  %v477_v33 = vpop.xlane.xlu1 %476 }
 0x357   :  { %4555 = vrsqrt.f32 %v282_v31  ;;  %v281_v34 = vmul.f32 0.03125, %v279_v32  ;;  %v478_v35 = vmul.f32 0.0625, %v477_v33 }
 0x359   :  { %v283_v36 = vadd.f32 1e-05, %v281_v34  ;;  %v479_v37 = vadd.f32 1e-05, %v478_v35 }
 0x35a   :  { %v645_v8 = vpop.permute.xlu1 %644 }
 0x35b   :  { %4557 = vrsqrt.f32 %v283_v36  ;;  %vm647_vm5 = vcmp.eq.s32.totalorder %v645_v8, %v639_v6 }
 0x35c   :  { %4559 = vrsqrt.f32 %v479_v37 }
 0x35e   :  { %v642_v7 = vpop.permute.xlu0 %641 }
 0x35f   :  { %vm646_vm4 = vcmp.eq.s32.totalorder %v642_v7, %v639_v6 }
 0x360   :  { %v3841_v10 = vsel %vm646_vm4, 1.0, %v4746_v17 }
 0x361   :  { %v663_v14 = vsub.f32 %v3841_v10, %v3841_v10 }
 0x364   :  { %v4556_v38 = vpop.eup %4555 }
 0x365   :  { %v286_v39 = vmul.f32 %v4556_v38, %v270_v5  ;;  %v4505_v5 = vld [vmem:[#allocation5 + $0xa8] ss:$12 sps:$4 sm:$0xff]  }
 0x367   :  { %v289_v44 = vmul.f32 %v288_v40, %v286_v39 }
 0x368   :  { %v4558_v41 = vpop.eup %4557 }
 0x369   :  { %v4560_v42 = vpop.eup %4559  ;;  %v287_v43 = vmul.f32 %v4558_v41, %v271_v12  ;;  %v292_v51 = vadd.f32 %v291_v47, %v289_v44  ;;  %v4508_v12 = vld [vmem:[#allocation3 + $0x120] ss:$12 sps:$4 sm:$0xff]  }
 0x36a   :  { %v481_v46 = vmul.f32 %v4560_v42, %v473_v11  ;;  %v3842_v11 = vsel %vm647_vm5, 1.0, %v4746_v17 }
 0x36b   :  { %v290_v48 = vmul.f32 %v288_v40, %v287_v43  ;;  %v660_v13 = vpack.c.bf16 %v3842_v11, %v3841_v10  ;;  %v664_v15 = vsub.f32 %v3842_v11, %v3842_v11 }
 0x36c   :  { %v483_v50 = vmul.f32 %v482_v45, %v481_v46 }
 0x36d   :  { %v293_v52 = vadd.f32 %v291_v47, %v290_v48  ;;  %v665_v16 = vpack.c.bf16 %v664_v15, %v663_v14  ;;  %v633_v48 = vld [vmem:[#allocation7 + $0xf0] ss:$0 sm:$0xff] }
 0x36e   :  { %v485_v54 = vadd.f32 %v484_v49, %v483_v50 }
 0x36f   :  { %v302_v55 = vpack.c.bf16 %v293_v52, %v292_v51 }
 0x370   :  { %v490_v56 = vpack.c.bf16 %v485_v54, %v485_v54 }
 0x371   :  { %4131 = vmatmul.mubr.msk.bf16.vlgmr.msra.gmra.mxu0 %vm260_vm2, %v302_v55  ;;  %v303_v57 = vunpack.c.l.bf16 %v302_v55  ;;  %v304_v58 = vunpack.c.h.bf16 %v302_v55 }
 0x372   :  { %4143 = vmatpush3.bf16.msra.mxu0 %v4503_v53  ;;  %4144 = vmatprep.mubr.msk.bf16.mxu0 %vm4747_vm1, %v4746_v17  ;;  %v491_v59 = vunpack.c.l.bf16 %v490_v56 }
 0x373   :  { %v305_v60 = vsub.f32 %v292_v51, %v303_v57  ;;  %v306_v61 = vsub.f32 %v293_v52, %v304_v58  ;;  %4154 = vmatprep.subr.bf16.mxu0 %v4746_v17 }
 0x374   :  { %v492_v63 = vsub.f32 %v485_v54, %v491_v59 }
 0x375   :  { %v307_v0 = vpack.c.bf16 %v306_v61, %v305_v60 }
 0x376   :  { %v493_v4 = vpack.c.bf16 %v492_v63, %v492_v63  ;;  %v463_v63 = vld [vmem:[#allocation7 + $0xa8] ss:$0 sm:$0xff] }
 0x377   :  { %4123 = vmatmul.mubr.msk.bf16.vlgmr.msra.gmra.mxu1 %vm260_vm2, %v307_v0 }
 0x378   :  { %4135 = vmatpush3.bf16.msra.mxu1 %v4504_v62  ;;  %4138 = vmatprep.mubr.msk.bf16.mxu1 %vm4747_vm1, %v4746_v17 }
 0x379   :  { %4145 = vmatmul.mubr.msk.bf16.vlgmr.msra.gmra.mxu0 %vm68_vm0, %v493_v4  ;;  %4136 = vmatprep.subr.bf16.mxu1 %v4746_v17 }
 0x37a   :  { %4155 = vmatpush3.bf16.msra.mxu0 %v4506_v3  ;;  %4156 = vmatprep.mubr.msk.bf16.mxu0 %vm4747_vm1, %v4746_v17 }
 0x37b   :  { %4168 = vmatprep.subr.bf16.mxu0 %v4746_v17 }
 0x37c   :  { %4137 = vmatpush3.bf16.msra.mxu1 %v4505_v5 }
 0x37d   :  { %4148 = vmatprep.subr.bf16.mxu1 %v4746_v17 }
 0x37f   :  { %4139 = vmatmul.mubr.msk.bf16.vlgmr.msra.gmra.mxu1 %vm260_vm2, %v302_v55 }
 0x380   :  { %4149 = vmatpush3.bf16.msra.mxu1 %v4503_v53  ;;  %4150 = vmatprep.mubr.msk.bf16.mxu1 %vm4747_vm1, %v4746_v17 }
 0x381   :  { %4157 = vmatmul.mubr.msk.bf16.vlgmr.msra.gmra.mxu0 %vm68_vm0, %v490_v56  ;;  %4160 = vmatprep.subr.bf16.mxu1 %v4746_v17 }
 0x382   :  { %4169 = vmatpush3.bf16.msra.mxu0 %v4507_v9  ;;  %4172 = vmatprep.mubr.msk.bf16.mxu0 %vm4747_vm1, %v4746_v17 }
 0x383   :  { %4170 = vmatprep.subr.bf16.mxu0 %v4746_v17 }
 0x386   :  { %4171 = vmatpush3.bf16.msra.mxu0 %v4508_v12 }
 0x387   :  { %4151 = vmatmul.mubr.msk.bf16.vlgmr.msra.gmra.mxu1 %vm68_vm0, %v490_v56  ;;  %4184 = vmatprep.subr.bf16.mxu0 %v4746_v17 }
 0x388   :  { %4161 = vmatpush3.bf16.msra.mxu1 %v4507_v9  ;;  %4164 = vmatprep.mubr.msk.bf16.mxu1 %vm4747_vm1, %v4746_v17 }
 0x389   :  { %4162 = vmatprep.subr.bf16.mxu1 %v4746_v17  ;;  %4173 = vmatmul.mubr.msk.bf16.vlgmr.msra.gmra.mxu0 %vm260_vm2, %v660_v13 }
 0x38a   :  { %4188 = vmatprep.mubr.msk.bf16.mxu0 %vm4747_vm1, %v4746_v17  ;;  %4185 = vmatpush3.bf16.msra.mxu0 %v4511_v2 }
 0x38b   :  { %4186 = vmatprep.subr.bf16.mxu0 %v4746_v17 }
 0x38c   :  { %4163 = vmatpush3.bf16.msra.mxu1 %v4508_v12 }
 0x38d   :  { %4176 = vmatprep.subr.bf16.mxu1 %v4746_v17 }
 0x38e   :  { %4187 = vmatpush3.bf16.msra.mxu0 %v4512_v20 }
 0x38f   :  { %4165 = vmatmul.mubr.msk.bf16.vlgmr.msra.gmra.mxu1 %vm260_vm2, %v665_v16  ;;  %4200 = vmatprep.subr.bf16.mxu0 %v4746_v17 }
 0x390   :  { %4177 = vmatpush3.bf16.msra.mxu1 %v4509_v18  ;;  %4180 = vmatprep.mubr.msk.bf16.mxu1 %vm4747_vm1, %v4746_v17 }
 0x391   :  { %4178 = vmatprep.subr.bf16.mxu1 %v4746_v17 }
 0x394   :  { %4179 = vmatpush3.bf16.msra.mxu1 %v4510_v19 }
 0x395   :  { %4192 = vmatprep.subr.bf16.mxu1 %v4746_v17 }
 0x397   :  { %4181 = vmatmul.mubr.msk.bf16.vlgmr.msra.gmra.mxu1 %vm260_vm2, %v660_v13 }
 0x398   :  { %4196 = vmatprep.mubr.msk.bf16.mxu1 %vm4747_vm1, %v4746_v17  ;;  %4193 = vmatpush3.bf16.msra.mxu1 %v4511_v2 }
 0x399   :  { %4194 = vmatprep.subr.bf16.mxu1 %v4746_v17 }
 0x39c   :  { %4195 = vmatpush3.bf16.msra.mxu1 %v4512_v20 }
 0x39d   :  { %1107 = vmatprep.subr.bf16.mxu1 %v4898_v21 }
 0x431   :  { %v401_v22 = vpop.f32.mrf.mxu0 }
 0x433   :  { %v4132_v24 = vpop.f32.mrf.mxu0 }
 0x435   :  { %v404_v25 = vpop.f32.mrf.mxu0 }
 0x437   :  { %v357_v29 = vpop.f32.mrf.mxu1  ;;  %v4133_v30 = vpop.f32.mrf.mxu0 }
 0x438   :  { %v402_v59 = vadd.f32 %v401_v22, %v357_v29 }
 0x439   :  { %v4124_v31 = vpop.f32.mrf.mxu1  ;;  %v537_v32 = vpop.f32.mrf.mxu0 }
 0x43a   :  { %v4904_v31 = vld [vmem:[#allocation3 + $0x34] ss:$12 sps:$4 sm:$0xff]  }
 0x43b   :  { %v360_v33 = vpop.f32.mrf.mxu1  ;;  %v4146_v34 = vpop.f32.mrf.mxu0 }
 0x43c   :  { %v405_v61 = vadd.f32 %v404_v25, %v360_v33  ;;  %v4901_v25 = vld [vmem:[#allocation3 + $0x48] ss:$12 sps:$4 sm:$0xff]  }
 0x43d   :  { %v4125_v35 = vpop.f32.mrf.mxu1  ;;  %v540_v36 = vpop.f32.mrf.mxu0  ;;  %v4513_v34 = vld [vmem:[#allocation5 + $0x78] ss:$12 sps:$4 sm:$0xff]  }
 0x43e   :  { %v4909_v35 = vld [vmem:[#allocation3 + $0x30] ss:$12 sps:$4 sm:$0xff]  }
 0x43f   :  { %v454_v37 = vpop.f32.mrf.mxu1  ;;  %v4147_v38 = vpop.f32.mrf.mxu0 }
 0x440   :  { %v461_v62 = vadd.f32 %v454_v37, %v402_v59  ;;  %v4911_v37 = vld [vmem:[#allocation3 + $0x1c] ss:$12 sps:$4 sm:$0xff]  }
 0x441   :  { %v4140_v39 = vpop.f32.mrf.mxu1  ;;  %v626_v40 = vpop.f32.mrf.mxu0  ;;  %v4514_v38 = vld [vmem:[#allocation5 + $0x60] ss:$12 sps:$4 sm:$0xff]  }
 0x442   :  { %v464_v6 = vadd.f32 %v463_v63, %v461_v62  ;;  %v4918_v39 = vld [vmem:[#allocation3 + $0x18] ss:$12 sps:$4 sm:$0xff]  }
 0x443   :  { %v457_v41 = vpop.f32.mrf.mxu1  ;;  %v4158_v42 = vpop.f32.mrf.mxu0 }
 0x444   :  { %v462_v3 = vadd.f32 %v457_v41, %v405_v61  ;;  %v466_v12 = vmax.f32 %v464_v6, 0.0  ;;  %v4925_v41 = vld [vmem:[#allocation5 + $0x4c] ss:$12 sps:$4 sm:$0xff]   ;;  %v4927_v42 = vld [vmem:[#allocation3] ss:$12 sps:$4 sm:$0xff]  }
 0x445   :  { %v4141_v43 = vpop.f32.mrf.mxu1  ;;  %v629_v44 = vpop.f32.mrf.mxu0 }
 0x446   :  { %v465_v8 = vadd.f32 %v463_v63, %v462_v3 }
 0x447   :  { %v580_v45 = vpop.f32.mrf.mxu1  ;;  %v4159_v46 = vpop.f32.mrf.mxu0 }
 0x448   :  { %v581_v47 = vadd.f32 %v580_v45, %v537_v32  ;;  %v467_v15 = vmax.f32 %v465_v8, 0.0 }
 0x449   :  { %v4152_v49 = vpop.f32.mrf.mxu1  ;;  %v759_v50 = vpop.f32.mrf.mxu0 }
 0x44a   :  { %v632_v51 = vadd.f32 %v626_v40, %v581_v47  ;;  %v4921_v40 = vld [vmem:[#allocation3 + $0x4] ss:$12 sps:$4 sm:$0xff]  }
 0x44b   :  { %v583_v52 = vpop.f32.mrf.mxu1  ;;  %v4174_v53 = vpop.f32.mrf.mxu0 }
 0x44c   :  { %v634_v54 = vadd.f32 %v633_v48, %v632_v51  ;;  %v4950_v48 = vld [vmem:[#allocation5 + $0x48] ss:$12 sps:$4 sm:$0xff]   ;;  %v4958_v51 = vld [vmem:[#allocation5 + $0x30] ss:$12 sps:$4 sm:$0xff]   ;;  %v4967_v53 = vld [vmem:[#allocation5 + $0x18] ss:$12 sps:$4 sm:$0xff]  }
 0x44d   :  { %v4153_v55 = vpop.f32.mrf.mxu1  ;;  %v762_v56 = vpop.f32.mrf.mxu0  ;;  %v4962_v52 = vld [vmem:[#allocation5 + $0x1c] ss:$12 sps:$4 sm:$0xff]  }
 0x44e   :  { %4561 = vtanh.f32 %v634_v54  ;;  %v4970_v54 = vld [vmem:[#allocation5 + $0x4] ss:$12 sps:$4 sm:$0xff]   ;;  %v4975_v55 = vld [vmem:[#allocation5] ss:$12 sps:$4 sm:$0xff]  }
 0x44f   :  { %v715_v57 = vpop.f32.mrf.mxu1  ;;  %v4175_v58 = vpop.f32.mrf.mxu0 }
 0x450   :  { %v760_v4 = vadd.f32 %v759_v50, %v715_v57  ;;  %v4952_v50 = vld [vmem:[#allocation5 + $0x34] ss:$12 sps:$4 sm:$0xff]  }
 0x451   :  { %v4166_v60 = vpop.f32.mrf.mxu1 }
 0x453   :  { %v718_v0 = vpop.f32.mrf.mxu1 }
 0x454   :  { %v763_v10 = vadd.f32 %v762_v56, %v718_v0 }
 0x455   :  { %v4167_v5 = vpop.f32.mrf.mxu1 }
 0x457   :  { %v812_v7 = vpop.f32.mrf.mxu1 }
 0x458   :  { %v819_v9 = vadd.f32 %v812_v7, %v760_v4 }
 0x459   :  { %v4182_v11 = vpop.f32.mrf.mxu1 }
 0x45a   :  { %v821_v16 = vadd.f32 %v819_v9, %v466_v12  ;;  %v994_v9 = vld [vmem:[#allocation7 + $0x18] ss:$0 sm:$0xff] }
 0x45b   :  { %v4562_v13 = vpop.eup %4561  ;;  %v815_v14 = vpop.f32.mrf.mxu1 }
 0x45c   :  { %v820_v18 = vadd.f32 %v815_v14, %v763_v10  ;;  %1047 = vrot.lane.b32.xlu1 %v4562_v13, %s4749_s1  ;;  %v823_v20 = vmul.f32 0.5, %v821_v16 }
 0x45d   :  { %v4183_v19 = vpop.f32.mrf.mxu1 }
 0x45e   :  { %v822_v2 = vadd.f32 %v820_v18, %v467_v15 }
 0x460   :  { %v824_v22 = vmul.f32 0.5, %v822_v2 }
 0x462   :  { %v833_v24 = vpack.c.bf16 %v824_v22, %v823_v20 }
 0x464   :  { %v834_v29 = vunpack.c.l.bf16 %v833_v24  ;;  %v835_v30 = vunpack.c.h.bf16 %v833_v24  ;;  %4197 = vmatmul.mubr.msk.bf16.vlgmr.msra.gmra.mxu1 %vm260_vm2, %v833_v24 }
 0x465   :  { %1108 = vmatpush1.bf16.msra.mxu1 %v4901_v25  ;;  %1131 = vmatprep.mubr.bf16.mxu1 %v4748_v1 }
 0x466   :  { %v836_v32 = vsub.f32 %v823_v20, %v834_v29  ;;  %v837_v33 = vsub.f32 %v824_v22, %v835_v30  ;;  %1109 = vmatprep.subr.bf16.mxu1 %v4904_v31  ;;  %v1033_v20 = vsub.s32 0, %v4843_v23 }
 0x468   :  { %v838_v36 = vpack.c.bf16 %v837_v33, %v836_v32  ;;  %v4987_v22 = vrot.slane %v4847_v26, %v1033_v20 }
 0x469   :  { %1110 = vmatpush1.bf16.msra.mxu1 %v4909_v35 }
 0x46a   :  { %4189 = vmatmul.mubr.msk.bf16.vlgmr.msra.gmra.mxu0 %vm260_vm2, %v838_v36  ;;  %1111 = vmatprep.subr.bf16.mxu1 %v4911_v37 }
 0x46b   :  { %4201 = vmatpush3.bf16.msra.mxu0 %v4513_v34  ;;  %4204 = vmatprep.mubr.msk.bf16.mxu0 %vm4747_vm1, %v4746_v17 }
 0x46c   :  { %4202 = vmatprep.subr.bf16.mxu0 %v4746_v17 }
 0x46d   :  { %1112 = vmatpush1.bf16.msra.mxu1 %v4918_v39 }
 0x46e   :  { %1113 = vmatprep.subr.bf16.mxu1 %v4921_v40 }
 0x46f   :  { %4203 = vmatpush3.bf16.msra.mxu0 %v4514_v38 }
 0x470   :  { %1150 = vmatprep.subr.bf16.mxu0 %v4898_v21 }
 0x471   :  { %1114 = vmatpush1.bf16.msra.mxu1 %v4927_v42 }
 0x472   :  { %4205 = vmatmul.mubr.msk.bf16.vlgmr.msra.gmra.mxu0 %vm260_vm2, %v833_v24  ;;  %1230 = vmatprep.subr.bf16.mxu1 %v4925_v41 }
 0x473   :  { %1151 = vmatpush1.bf16.msra.mxu0 %v4901_v25  ;;  %1174 = vmatprep.mubr.bf16.mxu0 %v4748_v1 }
 0x474   :  { %1152 = vmatprep.subr.bf16.mxu0 %v4904_v31 }
 0x477   :  { %1153 = vmatpush1.bf16.msra.mxu0 %v4909_v35 }
 0x478   :  { %1154 = vmatprep.subr.bf16.mxu0 %v4911_v37 }
 0x47b   :  { %1155 = vmatpush1.bf16.msra.mxu0 %v4918_v39 }
 0x47c   :  { %1156 = vmatprep.subr.bf16.mxu0 %v4921_v40 }
 0x47f   :  { %1157 = vmatpush1.bf16.msra.mxu0 %v4927_v42 }
 0x480   :  { %1334 = vmatprep.subr.bf16.mxu0 %v4898_v21 }
 0x4ce   :  { %v4942_v43 = vpop.permute.xlu1 %1047 }
 0x4cf   :  { %v1050_v44 = vsel %vm260_vm2, %v4562_v13, %v4942_v43 }
 0x4d0   :  { %v1051_v45 = vpack.c.bf16 %v1050_v44, %v1050_v44 }
 0x4d2   :  { %v1052_v46 = vunpack.c.l.bf16 %v1051_v45  ;;  %3866 = vmatmul.mubr.msk.bf16.vlgmr.msra.gmra.mxu0 %vm1095_vm6, %v1051_v45 }
 0x4d3   :  { %1335 = vmatpush1.bf16.msra.mxu0 %v4901_v25  ;;  %1358 = vmatprep.mubr.bf16.mxu0 %v4748_v1 }
 0x4d4   :  { %v1053_v47 = vsub.f32 %v1050_v44, %v1052_v46  ;;  %1336 = vmatprep.subr.bf16.mxu0 %v4904_v31 }
 0x4d6   :  { %v1054_v49 = vpack.c.bf16 %v1053_v47, %v1053_v47 }
 0x4d7   :  { %1337 = vmatpush1.bf16.msra.mxu0 %v4909_v35 }
 0x4d8   :  { %3865 = vmatmul.mubr.msk.bf16.vlgmr.msra.gmra.mxu1 %vm1095_vm6, %v1054_v49  ;;  %1338 = vmatprep.subr.bf16.mxu0 %v4911_v37 }
 0x4d9   :  { %1231 = vmatpush1.bf16.msra.mxu1 %v4950_v48  ;;  %1254 = vmatprep.mubr.bf16.mxu1 %v4748_v1 }
 0x4da   :  { %1232 = vmatprep.subr.bf16.mxu1 %v4952_v50 }
 0x4db   :  { %1339 = vmatpush1.bf16.msra.mxu0 %v4918_v39 }
 0x4dc   :  { %1340 = vmatprep.subr.bf16.mxu0 %v4921_v40 }
 0x4dd   :  { %1233 = vmatpush1.bf16.msra.mxu1 %v4958_v51 }
 0x4de   :  { %1234 = vmatprep.subr.bf16.mxu1 %v4962_v52 }
 0x4df   :  { %1341 = vmatpush1.bf16.msra.mxu0 %v4927_v42 }
 0x4e0   :  { %1418 = vmatprep.subr.bf16.mxu0 %v4898_v21 }
 0x4e1   :  { %1235 = vmatpush1.bf16.msra.mxu1 %v4967_v53 }
 0x4e2   :  { %1236 = vmatprep.subr.bf16.mxu1 %v4970_v54 }
 0x4e5   :  { %1237 = vmatpush1.bf16.msra.mxu1 %v4975_v55 }
 0x4e6   :  { %4208 = vmatprep.subr.bf16.mxu1 %v4746_v17 }
 0x4e8   :  { %3875 = vmatmul.mubr.msk.bf16.vlgmr.msra.gmra.mxu1 %vm1095_vm6, %v1051_v45 }
 0x4e9   :  { %4216 = vmatprep.mubr.msk.bf16.mxu1 %vm4747_vm1, %v4746_v17 }
 0x524   :  { %v932_v56 = vpop.f32.mrf.mxu1 }
 0x526   :  { %v4198_v57 = vpop.f32.mrf.mxu1 }
 0x528   :  { %v935_v58 = vpop.f32.mrf.mxu1 }
 0x52a   :  { %v888_v59 = vpop.f32.mrf.mxu0  ;;  %v4199_v60 = vpop.f32.mrf.mxu1 }
 0x52b   :  { %v933_v61 = vadd.f32 %v932_v56, %v888_v59  ;;  %v4999_v59 = vld [vmem:[#allocation3 + $0x38] ss:$12 sps:$4 sm:$0xff]  }
 0x52c   :  { %v4190_v62 = vpop.f32.mrf.mxu0 }
 0x52d   :  { %v5009_v62 = vld [vmem:[#allocation3 + $0x8] ss:$12 sps:$4 sm:$0xff]  }
 0x52e   :  { %v891_v63 = vpop.f32.mrf.mxu0 }
 0x52f   :  { %v936_v0 = vadd.f32 %v935_v58, %v891_v63  ;;  %v4996_v58 = vld [vmem:[#allocation3 + $0x50] ss:$12 sps:$4 sm:$0xff]  }
 0x530   :  { %v4191_v3 = vpop.f32.mrf.mxu0  ;;  %4209 = vmatpush3.bf16.msra.mxu1 %v4996_v58 }
 0x531   :  { %4210 = vmatprep.subr.bf16.mxu1 %v4746_v17 }
 0x532   :  { %v985_v4 = vpop.f32.mrf.mxu0 }
 0x533   :  { %v992_v5 = vadd.f32 %v985_v4, %v933_v61  ;;  %v5005_v61 = vld [vmem:[#allocation3 + $0x20] ss:$12 sps:$4 sm:$0xff]  }
 0x534   :  { %v4206_v6 = vpop.f32.mrf.mxu0  ;;  %4211 = vmatpush3.bf16.msra.mxu1 %v4999_v59 }
 0x535   :  { %v4991_v38 = vadd.f32 %v994_v9, %v992_v5  ;;  %4212 = vmatprep.subr.bf16.mxu1 %v4746_v17 }
 0x536   :  { %v988_v7 = vpop.f32.mrf.mxu0 }
 0x537   :  { %v993_v8 = vadd.f32 %v988_v7, %v936_v0 }
 0x538   :  { %v4207_v10 = vpop.f32.mrf.mxu0  ;;  %4213 = vmatpush3.bf16.msra.mxu1 %v5005_v61 }
 0x539   :  { %v4983_v11 = vadd.f32 %v994_v9, %v993_v8  ;;  %4214 = vmatprep.subr.bf16.mxu1 %v4746_v17 }
 0x53c   :  { %4215 = vmatpush3.bf16.msra.mxu1 %v5009_v62 }
 0x53d   :  { %4220 = vmatprep.subr.bf16.mxu1 %v4746_v17 }
 0x592   :  { %v1176_v12 = vpop.f32.mrf.mxu0 }
 0x594   :  { %v1178_v13 = vpop.f32.mrf.mxu0 }
 0x595   :  { %v5039_v13 = vld [vmem:[#allocation5 + $0x50] ss:$12 sps:$4 sm:$0xff]  }
 0x596   :  { %v1179_v14 = vpop.f32.mrf.mxu0 }
 0x597   :  { %v5047_v14 = vld [vmem:[#allocation5 + $0x38] ss:$12 sps:$4 sm:$0xff]  }
 0x598   :  { %v1133_v15 = vpop.f32.mrf.mxu1  ;;  %v1180_v16 = vpop.f32.mrf.mxu0 }
 0x599   :  { %v1177_v24 = vadd.f32 %v1176_v12, %v1133_v15  ;;  %v5056_v15 = vld [vmem:[#allocation5 + $0x20] ss:$12 sps:$4 sm:$0xff]   ;;  %v5062_v16 = vld [vmem:[#allocation5 + $0x8] ss:$12 sps:$4 sm:$0xff]  }
 0x59a   :  { %v1135_v18 = vpop.f32.mrf.mxu1 }
 0x59c   :  { %v1136_v19 = vpop.f32.mrf.mxu1 }
 0x59e   :  { %v1137_v2 = vpop.f32.mrf.mxu1 }
 0x5a8   :  { %v1256_v29 = vpop.f32.mrf.mxu1 }
 0x5a9   :  { %v1262_v30 = vadd.f32 %v1256_v29, %v1177_v24 }
 0x5aa   :  { %v1258_v32 = vpop.f32.mrf.mxu1 }
 0x5ab   :  { %v1263_v33 = vadd.f32 %v1262_v30, %v4987_v22 }
 0x5ac   :  { %v1259_v34 = vpop.f32.mrf.mxu1 }
 0x5ad   :  { %1272 = vrot.lane.b32.xlu1 %v1263_v33, %s4750_s16  ;;  %v1264_v44 = vadd.f32 %v1263_v33, %v4991_v38 }
 0x5ae   :  { %v1260_v36 = vpop.f32.mrf.mxu1 }
 0x5af   :  { %v3876_v45 = vmul.f32 -1.442695, %v1264_v44 }
 0x5b1   :  { %4563 = vpow2.f32 %v3876_v45 }
 0x5be   :  { %v4564_v23 = vpop.eup %4563 }
 0x5bf   :  { %v1268_v26 = vadd.f32 1.0, %v4564_v23 }
 0x5c1   :  { %4565 = vrcp.f32 %v1268_v26 }
 0x5ce   :  { %v4566_v46 = vpop.eup %4565 }
 0x5cf   :  { %v1282_v63 = vsub.f32 1.0, %v4566_v46  ;;  %v1288_v3 = vmul.f32 %v4566_v46, %v4942_v43 }
 0x61f   :  { %v1273_v47 = vpop.permute.xlu1 %1272 }
 0x620   :  { %v1275_v49 = vmul.f32 %v4566_v46, %v1273_v47 }
 0x622   :  { %1277 = vrot.lane.b32.xlu1 %v1275_v49, %s4750_s16 }
 0x694   :  { %v1278_v56 = vpop.permute.xlu1 %1277 }
 0x695   :  { %v1280_v57 = vadd.f32 %v1278_v56, %v4991_v38 }
 0x697   :  { %4567 = vtanh.f32 %v1280_v57 }
 0x6a4   :  { %v4568_v60 = vpop.eup %4567 }
 0x6a5   :  { %1284 = vrot.lane.b32.xlu1 %v4568_v60, %s4751_s17 }
 0x717   :  { %v1285_v0 = vpop.permute.xlu1 %1284 }
 0x718   :  { %v1287_v4 = vmul.f32 %v1285_v0, %v1282_v63 }
 0x71a   :  { %v5014_v5 = vadd.f32 %v1288_v3, %v1287_v4 }
 0x71c   :  { %1291 = vrot.lane.b32.xlu1 %v5014_v5, %s4751_s17 }
 0x78e   :  { %v1292_v6 = vpop.permute.xlu1 %1291 }
 0x78f   :  { %v1294_v7 = vsel %vm260_vm2, %v1292_v6, %v4942_v43 }
 0x790   :  { %v1295_v8 = vpack.c.bf16 %v1294_v7, %v1294_v7 }
 0x792   :  { %v1296_v9 = vunpack.c.l.bf16 %v1295_v8 }
 0x794   :  { %v1297_v10 = vsub.f32 %v1294_v7, %v1296_v9 }
 0x796   :  { %v1298_v12 = vpack.c.bf16 %v1297_v10, %v1297_v10 }
 0x798   :  { %3881 = vmatmul.mubr.msk.bf16.vlgmr.msra.gmra.mxu0 %vm1095_vm6, %v1298_v12  ;;  %4217 = vmatmul.mubr.msk.bf16.vlgmr.msra.gmra.mxu1 %vm1095_vm6, %v1298_v12 }
 0x799   :  { %1419 = vmatpush1.bf16.msra.mxu0 %v4901_v25  ;;  %4221 = vmatpush3.bf16.msra.mxu1 %v4996_v58 }
 0x79a   :  { %1420 = vmatprep.subr.bf16.mxu0 %v4904_v31  ;;  %4222 = vmatprep.subr.bf16.mxu1 %v4746_v17 }
 0x79b   :  { %1442 = vmatprep.mubr.bf16.mxu0 %v4748_v1  ;;  %4228 = vmatprep.mubr.msk.bf16.mxu1 %vm4747_vm1, %v4746_v17 }
 0x79d   :  { %1421 = vmatpush1.bf16.msra.mxu0 %v4909_v35  ;;  %4223 = vmatpush3.bf16.msra.mxu1 %v4999_v59 }
 0x79e   :  { %1422 = vmatprep.subr.bf16.mxu0 %v4911_v37  ;;  %4224 = vmatprep.subr.bf16.mxu1 %v4746_v17 }
 0x7a1   :  { %1423 = vmatpush1.bf16.msra.mxu0 %v4918_v39  ;;  %4225 = vmatpush3.bf16.msra.mxu1 %v5005_v61 }
 0x7a2   :  { %1424 = vmatprep.subr.bf16.mxu0 %v4921_v40  ;;  %4226 = vmatprep.subr.bf16.mxu1 %v4746_v17 }
 0x7a5   :  { %1425 = vmatpush1.bf16.msra.mxu0 %v4927_v42  ;;  %4227 = vmatpush3.bf16.msra.mxu1 %v5009_v62 }
 0x7a6   :  { %1523 = vmatprep.subr.bf16.mxu0 %v4925_v41  ;;  %4232 = vmatprep.subr.bf16.mxu1 %v4746_v17 }
 0x7a8   :  { %3883 = vmatmul.mubr.msk.bf16.vlgmr.msra.gmra.mxu0 %vm1095_vm6, %v1295_v8  ;;  %4229 = vmatmul.mubr.msk.bf16.vlgmr.msra.gmra.mxu1 %vm1095_vm6, %v1295_v8 }
 0x7a9   :  { %1524 = vmatpush1.bf16.msra.mxu0 %v4950_v48  ;;  %4233 = vmatpush3.bf16.msra.mxu1 %v5039_v13 }
 0x7aa   :  { %1525 = vmatprep.subr.bf16.mxu0 %v4952_v50  ;;  %4234 = vmatprep.subr.bf16.mxu1 %v4746_v17 }
 0x7ab   :  { %1547 = vmatprep.mubr.bf16.mxu0 %v4748_v1  ;;  %4240 = vmatprep.mubr.msk.bf16.mxu1 %vm4747_vm1, %v4746_v17 }
 0x7ad   :  { %1526 = vmatpush1.bf16.msra.mxu0 %v4958_v51  ;;  %4235 = vmatpush3.bf16.msra.mxu1 %v5047_v14 }
 0x7ae   :  { %1527 = vmatprep.subr.bf16.mxu0 %v4962_v52  ;;  %4236 = vmatprep.subr.bf16.mxu1 %v4746_v17 }
 0x7b1   :  { %1528 = vmatpush1.bf16.msra.mxu0 %v4967_v53  ;;  %4237 = vmatpush3.bf16.msra.mxu1 %v5056_v15 }
 0x7b2   :  { %1529 = vmatprep.subr.bf16.mxu0 %v4970_v54  ;;  %4238 = vmatprep.subr.bf16.mxu1 %v4746_v17 }
 0x7b5   :  { %1530 = vmatpush1.bf16.msra.mxu0 %v4975_v55  ;;  %4239 = vmatpush3.bf16.msra.mxu1 %v5062_v16 }
 0x7b6   :  { %1688 = vmatprep.subr.bf16.mxu0 %v4898_v21  ;;  %4244 = vmatprep.subr.bf16.mxu1 %v4746_v17 }
 0x7b8   :  { %3889 = vmatmul.mubr.msk.bf16.vlgmr.msra.gmra.mxu0 %vm1095_vm6, %v1295_v8  ;;  %4241 = vmatmul.mubr.msk.bf16.vlgmr.msra.gmra.mxu1 %vm1095_vm6, %v1295_v8 }
 0x7b9   :  { %1689 = vmatpush1.bf16.msra.mxu0 %v4901_v25  ;;  %4245 = vmatpush3.bf16.msra.mxu1 %v4996_v58 }
 0x7ba   :  { %1690 = vmatprep.subr.bf16.mxu0 %v4904_v31  ;;  %4246 = vmatprep.subr.bf16.mxu1 %v4746_v17 }
 0x7bb   :  { %1712 = vmatprep.mubr.bf16.mxu0 %v4748_v1  ;;  %4252 = vmatprep.mubr.msk.bf16.mxu1 %vm4747_vm1, %v4746_v17 }
 0x7bd   :  { %1691 = vmatpush1.bf16.msra.mxu0 %v4909_v35  ;;  %4247 = vmatpush3.bf16.msra.mxu1 %v4999_v59 }
 0x7be   :  { %1692 = vmatprep.subr.bf16.mxu0 %v4911_v37  ;;  %4248 = vmatprep.subr.bf16.mxu1 %v4746_v17 }
 0x7c1   :  { %1693 = vmatpush1.bf16.msra.mxu0 %v4918_v39  ;;  %4249 = vmatpush3.bf16.msra.mxu1 %v5005_v61 }
 0x7c2   :  { %1694 = vmatprep.subr.bf16.mxu0 %v4921_v40  ;;  %4250 = vmatprep.subr.bf16.mxu1 %v4746_v17 }
 0x7c5   :  { %1695 = vmatpush1.bf16.msra.mxu0 %v4927_v42  ;;  %4251 = vmatpush3.bf16.msra.mxu1 %v5009_v62 }
 0x7c6   :  { %1774 = vmatprep.subr.bf16.mxu0 %v4898_v21  ;;  %4256 = vmatprep.subr.bf16.mxu1 %v4746_v17 }
 0x858   :  { %v1360_v18 = vpop.f32.mrf.mxu0  ;;  %v1401_v19 = vpop.f32.mrf.mxu1 }
 0x85a   :  { %v1362_v2 = vpop.f32.mrf.mxu0  ;;  %v4218_v20 = vpop.f32.mrf.mxu1 }
 0x85c   :  { %v1364_v24 = vpop.f32.mrf.mxu0  ;;  %v1404_v29 = vpop.f32.mrf.mxu1 }
 0x85e   :  { %v1365_v30 = vpop.f32.mrf.mxu0  ;;  %v4219_v32 = vpop.f32.mrf.mxu1 }
 0x868   :  { %v1444_v33 = vpop.f32.mrf.mxu0  ;;  %v1485_v34 = vpop.f32.mrf.mxu1 }
 0x869   :  { %v1445_v49 = vadd.f32 %v1444_v33, %v1360_v18  ;;  %v1486_v3 = vadd.f32 %v1485_v34, %v1401_v19 }
 0x86a   :  { %v1446_v36 = vpop.f32.mrf.mxu0  ;;  %v4230_v44 = vpop.f32.mrf.mxu1 }
 0x86b   :  { %v1447_v45 = vadd.f32 %v1446_v36, %v1362_v2 }
 0x86c   :  { %v1448_v23 = vpop.f32.mrf.mxu0  ;;  %v1488_v26 = vpop.f32.mrf.mxu1 }
 0x86e   :  { %v1449_v46 = vpop.f32.mrf.mxu0  ;;  %v4231_v47 = vpop.f32.mrf.mxu1 }
 0x878   :  { %v1549_v56 = vpop.f32.mrf.mxu0  ;;  %v1590_v57 = vpop.f32.mrf.mxu1 }
 0x879   :  { %v1596_v60 = vadd.f32 %v1549_v56, %v1445_v49  ;;  %v1598_v10 = vadd.f32 %v1590_v57, %v1486_v3  ;;  %v1654_v3 = vrot.slane %v5014_v5, 6 }
 0x87a   :  { %v1551_v63 = vpop.f32.mrf.mxu0  ;;  %v4242_v0 = vpop.f32.mrf.mxu1 }
 0x87b   :  { %v1599_v4 = vadd.f32 %v1596_v60, %v4987_v22  ;;  %v1597_v6 = vadd.f32 %v1551_v63, %v1447_v45  ;;  %v1601_v20 = vadd.f32 %v1598_v10, %v4853_v28 }
 0x87c   :  { %v1553_v7 = vpop.f32.mrf.mxu0  ;;  %v1593_v8 = vpop.f32.mrf.mxu1 }
 0x87d   :  { %v1629_v9 = vrot.slane %v1599_v4, 6  ;;  %v1600_v24 = vadd.f32 %v1597_v6, %v4850_v27 }
 0x87e   :  { %v1554_v12 = vpop.f32.mrf.mxu0  ;;  %v4243_v2 = vpop.f32.mrf.mxu1 }
 0x87f   :  { %1638 = vrot.lane.b32.xlu1 %v1629_v9, %s4750_s16  ;;  %v1631_v18 = vadd.f32 %v1629_v9, %v4991_v38  ;;  %v1602_v29 = vadd.f32 %v1601_v20, %v1600_v24 }
 0x881   :  { %v3892_v19 = vmul.f32 -1.442695, %v1631_v18  ;;  %v3891_v30 = vmul.f32 -1.442695, %v1602_v29 }
 0x883   :  { %1610 = vrot.lane.b32.xlu1 %v1601_v20, %s4750_s16  ;;  %4569 = vpow2.f32 %v3892_v19 }
 0x884   :  { %4571 = vpow2.f32 %v3891_v30 }
 0x890   :  { %v4570_v32 = vpop.eup %4569 }
 0x891   :  { %v1635_v33 = vadd.f32 1.0, %v4570_v32  ;;  %v4572_v34 = vpop.eup %4571 }
 0x892   :  { %v1606_v36 = vadd.f32 1.0, %v4572_v34 }
 0x893   :  { %4573 = vrcp.f32 %v1635_v33 }
 0x894   :  { %4575 = vrcp.f32 %v1606_v36 }
 0x8a0   :  { %v4574_v44 = vpop.eup %4573 }
 0x8a1   :  { %v4576_v26 = vpop.eup %4575  ;;  %v1648_v4 = vsub.f32 1.0, %v4574_v44  ;;  %v1656_v8 = vmul.f32 %v4574_v44, %v1654_v3 }
 0x8a2   :  { %v1620_v12 = vsub.f32 1.0, %v4576_v26  ;;  %v1626_v20 = vmul.f32 %v4576_v26, %v4942_v43 }
 0x8f1   :  { %v1639_v45 = vpop.permute.xlu1 %1638 }
 0x8f2   :  { %v1641_v23 = vmul.f32 %v4574_v44, %v1639_v45 }
 0x8f4   :  { %1643 = vrot.lane.b32.xlu0 %v1641_v23, %s4750_s16 }
 0x8f5   :  { %v1611_v46 = vpop.permute.xlu1 %1610 }
 0x8f6   :  { %v1613_v47 = vmul.f32 %v4576_v26, %v1611_v46 }
 0x8f8   :  { %1615 = vrot.lane.b32.xlu1 %v1613_v47, %s4750_s16 }
 0x966   :  { %v1644_v49 = vpop.permute.xlu0 %1643 }
 0x967   :  { %v1646_v56 = vadd.f32 %v1644_v49, %v4991_v38 }
 0x969   :  { %4577 = vtanh.f32 %v1646_v56 }
 0x96a   :  { %v1616_v57 = vpop.permute.xlu1 %1615 }
 0x96b   :  { %v1618_v60 = vadd.f32 %v1616_v57, %v1600_v24 }
 0x96d   :  { %4579 = vtanh.f32 %v1618_v60 }
 0x976   :  { %v4578_v63 = vpop.eup %4577 }
 0x977   :  { %1650 = vrot.lane.b32.xlu0 %v4578_v63, %s4751_s17 }
 0x97a   :  { %v4580_v0 = vpop.eup %4579 }
 0x97b   :  { %1622 = vrot.lane.b32.xlu1 %v4580_v0, %s4751_s17 }
 0x9e9   :  { %v1651_v6 = vpop.permute.xlu0 %1650 }
 0x9ea   :  { %v1653_v7 = vmul.f32 %v1651_v6, %v1648_v4 }
 0x9ec   :  { %v5103_v9 = vadd.f32 %v1656_v8, %v1653_v7 }
 0x9ed   :  { %v1623_v10 = vpop.permute.xlu1 %1622 }
 0x9ee   :  { %1665 = vrot.lane.b32.xlu0 %v5103_v9, %s4751_s17  ;;  %v1625_v2 = vmul.f32 %v1623_v10, %v1620_v12 }
 0x9f0   :  { %v5108_v18 = vadd.f32 %v1626_v20, %v1625_v2 }
 0x9f2   :  { %v1668_v24 = vrot.slane %v5108_v18, 6 }
 0xa60   :  { %v1666_v19 = vpop.permute.xlu0 %1665 }
 0xa61   :  { %v1670_v5 = vsel %vm260_vm2, %v1666_v19, %v1668_v24 }
 0xa62   :  { %v1671_v29 = vpack.c.bf16 %v1670_v5, %v1670_v5 }
 0xa64   :  { %v1672_v30 = vunpack.c.l.bf16 %v1671_v29  ;;  %v1762_v43 = vrot.slane %v1671_v29, 1 }
 0xa66   :  { %v1673_v32 = vsub.f32 %v1670_v5, %v1672_v30 }
 0xa68   :  { %v1674_v33 = vpack.c.bf16 %v1673_v32, %v1673_v32 }
 0xa6a   :  { %v1676_v34 = vrot.slane %v1674_v33, 1 }
 0xa6c   :  { %3893 = vmatmul.mubr.msk.bf16.vlgmr.msra.gmra.mxu0 %vm1095_vm6, %v1676_v34  ;;  %4253 = vmatmul.mubr.msk.bf16.vlgmr.msra.gmra.mxu1 %vm1095_vm6, %v1676_v34 }
 0xa6d   :  { %1775 = vmatpush1.bf16.msra.mxu0 %v4901_v25  ;;  %4257 = vmatpush3.bf16.msra.mxu1 %v4996_v58 }
 0xa6e   :  { %1776 = vmatprep.subr.bf16.mxu0 %v4904_v31  ;;  %4258 = vmatprep.subr.bf16.mxu1 %v4746_v17 }
 0xa6f   :  { %1798 = vmatprep.mubr.bf16.mxu0 %v4748_v1  ;;  %4264 = vmatprep.mubr.msk.bf16.mxu1 %vm4747_vm1, %v4746_v17 }
 0xa71   :  { %1777 = vmatpush1.bf16.msra.mxu0 %v4909_v35  ;;  %4259 = vmatpush3.bf16.msra.mxu1 %v4999_v59 }
 0xa72   :  { %1778 = vmatprep.subr.bf16.mxu0 %v4911_v37  ;;  %4260 = vmatprep.subr.bf16.mxu1 %v4746_v17 }
 0xa75   :  { %1779 = vmatpush1.bf16.msra.mxu0 %v4918_v39  ;;  %4261 = vmatpush3.bf16.msra.mxu1 %v5005_v61 }
 0xa76   :  { %1780 = vmatprep.subr.bf16.mxu0 %v4921_v40  ;;  %4262 = vmatprep.subr.bf16.mxu1 %v4746_v17 }
 0xa79   :  { %1781 = vmatpush1.bf16.msra.mxu0 %v4927_v42  ;;  %4263 = vmatpush3.bf16.msra.mxu1 %v5009_v62 }
 0xa7a   :  { %1855 = vmatprep.subr.bf16.mxu0 %v4925_v41  ;;  %4268 = vmatprep.subr.bf16.mxu1 %v4746_v17 }
 0xa7c   :  { %3895 = vmatmul.mubr.msk.bf16.vlgmr.msra.gmra.mxu0 %vm1095_vm6, %v1762_v43  ;;  %4265 = vmatmul.mubr.msk.bf16.vlgmr.msra.gmra.mxu1 %vm1095_vm6, %v1762_v43 }
 0xa7d   :  { %1856 = vmatpush1.bf16.msra.mxu0 %v4950_v48  ;;  %4269 = vmatpush3.bf16.msra.mxu1 %v5039_v13 }
 0xa7e   :  { %1857 = vmatprep.subr.bf16.mxu0 %v4952_v50  ;;  %4270 = vmatprep.subr.bf16.mxu1 %v4746_v17 }
 0xa7f   :  { %1879 = vmatprep.mubr.bf16.mxu0 %v4748_v1  ;;  %4276 = vmatprep.mubr.msk.bf16.mxu1 %vm4747_vm1, %v4746_v17 }
 0xa81   :  { %1858 = vmatpush1.bf16.msra.mxu0 %v4958_v51  ;;  %4271 = vmatpush3.bf16.msra.mxu1 %v5047_v14 }
 0xa82   :  { %1859 = vmatprep.subr.bf16.mxu0 %v4962_v52  ;;  %4272 = vmatprep.subr.bf16.mxu1 %v4746_v17 }
 0xa85   :  { %1860 = vmatpush1.bf16.msra.mxu0 %v4967_v53  ;;  %4273 = vmatpush3.bf16.msra.mxu1 %v5056_v15 }
 0xa86   :  { %1861 = vmatprep.subr.bf16.mxu0 %v4970_v54  ;;  %4274 = vmatprep.subr.bf16.mxu1 %v4746_v17 }
 0xa89   :  { %1862 = vmatpush1.bf16.msra.mxu0 %v4975_v55  ;;  %4275 = vmatpush3.bf16.msra.mxu1 %v5062_v16 }
 0xa8a   :  { %2019 = vmatprep.subr.bf16.mxu0 %v4898_v21  ;;  %4280 = vmatprep.subr.bf16.mxu1 %v4746_v17 }
 0xa8c   :  { %3897 = vmatmul.mubr.msk.bf16.vlgmr.msra.gmra.mxu0 %vm1095_vm6, %v1762_v43  ;;  %4277 = vmatmul.mubr.msk.bf16.vlgmr.msra.gmra.mxu1 %vm1095_vm6, %v1762_v43 }
 0xa8d   :  { %2020 = vmatpush1.bf16.msra.mxu0 %v4901_v25  ;;  %4281 = vmatpush3.bf16.msra.mxu1 %v4996_v58 }
 0xa8e   :  { %2021 = vmatprep.subr.bf16.mxu0 %v4904_v31  ;;  %4282 = vmatprep.subr.bf16.mxu1 %v4746_v17 }
 0xa8f   :  { %2043 = vmatprep.mubr.bf16.mxu0 %v4748_v1  ;;  %4288 = vmatprep.mubr.msk.bf16.mxu1 %vm4747_vm1, %v4746_v17 }
 0xa91   :  { %2022 = vmatpush1.bf16.msra.mxu0 %v4909_v35  ;;  %4283 = vmatpush3.bf16.msra.mxu1 %v4999_v59 }
 0xa92   :  { %2023 = vmatprep.subr.bf16.mxu0 %v4911_v37  ;;  %4284 = vmatprep.subr.bf16.mxu1 %v4746_v17 }
 0xa95   :  { %2024 = vmatpush1.bf16.msra.mxu0 %v4918_v39  ;;  %4285 = vmatpush3.bf16.msra.mxu1 %v5005_v61 }
 0xa96   :  { %2025 = vmatprep.subr.bf16.mxu0 %v4921_v40  ;;  %4286 = vmatprep.subr.bf16.mxu1 %v4746_v17 }
 0xa99   :  { %2026 = vmatpush1.bf16.msra.mxu0 %v4927_v42  ;;  %4287 = vmatpush3.bf16.msra.mxu1 %v5009_v62 }
 0xa9a   :  { %2105 = vmatprep.subr.bf16.mxu0 %v4898_v21  ;;  %4292 = vmatprep.subr.bf16.mxu1 %v4746_v17 }
 0xb2c   :  { %v1714_v36 = vpop.f32.mrf.mxu0  ;;  %v1755_v44 = vpop.f32.mrf.mxu1 }
 0xb2e   :  { %v1716_v45 = vpop.f32.mrf.mxu0  ;;  %v4254_v23 = vpop.f32.mrf.mxu1 }
 0xb30   :  { %v1718_v26 = vpop.f32.mrf.mxu0  ;;  %v1758_v46 = vpop.f32.mrf.mxu1 }
 0xb32   :  { %v1719_v47 = vpop.f32.mrf.mxu0  ;;  %v4255_v49 = vpop.f32.mrf.mxu1 }
 0xb3c   :  { %v1800_v56 = vpop.f32.mrf.mxu0  ;;  %v1841_v57 = vpop.f32.mrf.mxu1 }
 0xb3d   :  { %v1801_v21 = vadd.f32 %v1800_v56, %v1714_v36  ;;  %v1842_v8 = vadd.f32 %v1841_v57, %v1755_v44 }
 0xb3e   :  { %v1802_v60 = vpop.f32.mrf.mxu0  ;;  %v4266_v63 = vpop.f32.mrf.mxu1 }
 0xb3f   :  { %v1803_v0 = vadd.f32 %v1802_v60, %v1716_v45 }
 0xb40   :  { %v1804_v3 = vpop.f32.mrf.mxu0  ;;  %v1844_v4 = vpop.f32.mrf.mxu1 }
 0xb42   :  { %v1805_v6 = vpop.f32.mrf.mxu0  ;;  %v4267_v7 = vpop.f32.mrf.mxu1 }
 0xb4c   :  { %v1881_v10 = vpop.f32.mrf.mxu0  ;;  %v1922_v12 = vpop.f32.mrf.mxu1 }
 0xb4d   :  { %v1928_v2 = vadd.f32 %v1881_v10, %v1801_v21  ;;  %v1930_v20 = vadd.f32 %v1922_v12, %v1842_v8 }
 0xb4e   :  { %v1883_v24 = vpop.f32.mrf.mxu0  ;;  %v4278_v19 = vpop.f32.mrf.mxu1 }
 0xb4f   :  { %v1931_v5 = vadd.f32 %v1928_v2, %v4987_v22  ;;  %v1933_v29 = vadd.f32 %v1930_v20, %v4853_v28  ;;  %v1929_v30 = vadd.f32 %v1883_v24, %v1803_v0  ;;  %v1986_v20 = vrot.slane %v5103_v9, 6 }
 0xb50   :  { %v1885_v32 = vpop.f32.mrf.mxu0  ;;  %v1925_v33 = vpop.f32.mrf.mxu1 }
 0xb51   :  { %v1961_v34 = vrot.slane %v1931_v5, 4  ;;  %1942 = vrot.lane.b32.xlu0 %v1933_v29, %s4750_s16  ;;  %v1932_v36 = vadd.f32 %v1929_v30, %v4850_v27 }
 0xb52   :  { %v1886_v43 = vpop.f32.mrf.mxu0  ;;  %v4279_v45 = vpop.f32.mrf.mxu1 }
 0xb53   :  { %1970 = vrot.lane.b32.xlu1 %v1961_v34, %s4750_s16  ;;  %v1934_v44 = vadd.f32 %v1933_v29, %v1932_v36  ;;  %v1963_v23 = vadd.f32 %v1961_v34, %v4991_v38 }
 0xb55   :  { %v3899_v26 = vmul.f32 -1.442695, %v1934_v44  ;;  %v3900_v46 = vmul.f32 -1.442695, %v1963_v23 }
 0xb57   :  { %4581 = vpow2.f32 %v3899_v26 }
 0xb58   :  { %4583 = vpow2.f32 %v3900_v46 }
 0xb64   :  { %v4582_v47 = vpop.eup %4581 }
 0xb65   :  { %v4584_v49 = vpop.eup %4583  ;;  %v1938_v56 = vadd.f32 1.0, %v4582_v47 }
 0xb66   :  { %v1967_v57 = vadd.f32 1.0, %v4584_v49 }
 0xb67   :  { %4585 = vrcp.f32 %v1938_v56 }
 0xb68   :  { %4587 = vrcp.f32 %v1967_v57 }
 0xb74   :  { %v4586_v60 = vpop.eup %4585 }
 0xb75   :  { %v4588_v3 = vpop.eup %4587  ;;  %v1952_v33 = vsub.f32 1.0, %v4586_v60  ;;  %v1958_v43 = vmul.f32 %v4586_v60, %v5108_v18 }
 0xb76   :  { %v1980_v24 = vsub.f32 1.0, %v4588_v3  ;;  %v1988_v29 = vmul.f32 %v4588_v3, %v1986_v20 }
 0xbc3   :  { %v1943_v63 = vpop.permute.xlu0 %1942 }
 0xbc4   :  { %v1945_v0 = vmul.f32 %v4586_v60, %v1943_v63 }
 0xbc5   :  { %v1971_v4 = vpop.permute.xlu1 %1970 }
 0xbc6   :  { %v1973_v6 = vmul.f32 %v4588_v3, %v1971_v4  ;;  %1947 = vrot.lane.b32.xlu0 %v1945_v0, %s4750_s16 }
 0xbc8   :  { %1975 = vrot.lane.b32.xlu1 %v1973_v6, %s4750_s16 }
 0xc38   :  { %v1948_v7 = vpop.permute.xlu0 %1947 }
 0xc39   :  { %v1950_v21 = vadd.f32 %v1948_v7, %v1932_v36 }
 0xc3a   :  { %v1976_v8 = vpop.permute.xlu1 %1975 }
 0xc3b   :  { %4589 = vtanh.f32 %v1950_v21  ;;  %v1978_v10 = vadd.f32 %v1976_v8, %v4991_v38 }
 0xc3d   :  { %4591 = vtanh.f32 %v1978_v10 }
 0xc48   :  { %v4590_v12 = vpop.eup %4589 }
 0xc49   :  { %1954 = vrot.lane.b32.xlu0 %v4590_v12, %s4751_s17 }
 0xc4a   :  { %v4592_v2 = vpop.eup %4591 }
 0xc4b   :  { %1982 = vrot.lane.b32.xlu1 %v4592_v2, %s4751_s17 }
 0xcbb   :  { %v1955_v32 = vpop.permute.xlu0 %1954 }
 0xcbc   :  { %v1957_v34 = vmul.f32 %v1955_v32, %v1952_v33 }
 0xcbd   :  { %v1983_v19 = vpop.permute.xlu1 %1982 }
 0xcbe   :  { %v1985_v5 = vmul.f32 %v1983_v19, %v1980_v24  ;;  %v5192_v45 = vadd.f32 %v1958_v43, %v1957_v34 }
 0xcc0   :  { %v5187_v30 = vadd.f32 %v1988_v29, %v1985_v5  ;;  %v1999_v36 = vrot.slane %v5192_v45, 4 }
 0xcc2   :  { %1996 = vrot.lane.b32.xlu1 %v5187_v30, %s4751_s17 }
 0xd34   :  { %v1997_v44 = vpop.permute.xlu1 %1996 }
 0xd35   :  { %v2001_v9 = vsel %vm260_vm2, %v1997_v44, %v1999_v36 }
 0xd36   :  { %v2002_v23 = vpack.c.bf16 %v2001_v9, %v2001_v9 }
 0xd38   :  { %v2003_v26 = vunpack.c.l.bf16 %v2002_v23  ;;  %v2093_v56 = vrot.slane %v2002_v23, 2 }
 0xd3a   :  { %v2004_v46 = vsub.f32 %v2001_v9, %v2003_v26 }
 0xd3c   :  { %v2005_v47 = vpack.c.bf16 %v2004_v46, %v2004_v46 }
 0xd3e   :  { %v2007_v49 = vrot.slane %v2005_v47, 2 }
 0xd40   :  { %3901 = vmatmul.mubr.msk.bf16.vlgmr.msra.gmra.mxu0 %vm1095_vm6, %v2007_v49  ;;  %4289 = vmatmul.mubr.msk.bf16.vlgmr.msra.gmra.mxu1 %vm1095_vm6, %v2007_v49 }
 0xd41   :  { %2106 = vmatpush1.bf16.msra.mxu0 %v4901_v25  ;;  %4293 = vmatpush3.bf16.msra.mxu1 %v4996_v58 }
 0xd42   :  { %2107 = vmatprep.subr.bf16.mxu0 %v4904_v31  ;;  %4294 = vmatprep.subr.bf16.mxu1 %v4746_v17 }
 0xd43   :  { %2129 = vmatprep.mubr.bf16.mxu0 %v4748_v1  ;;  %4300 = vmatprep.mubr.msk.bf16.mxu1 %vm4747_vm1, %v4746_v17 }
 0xd45   :  { %2108 = vmatpush1.bf16.msra.mxu0 %v4909_v35  ;;  %4295 = vmatpush3.bf16.msra.mxu1 %v4999_v59 }
 0xd46   :  { %2109 = vmatprep.subr.bf16.mxu0 %v4911_v37  ;;  %4296 = vmatprep.subr.bf16.mxu1 %v4746_v17 }
 0xd49   :  { %2110 = vmatpush1.bf16.msra.mxu0 %v4918_v39  ;;  %4297 = vmatpush3.bf16.msra.mxu1 %v5005_v61 }
 0xd4a   :  { %2111 = vmatprep.subr.bf16.mxu0 %v4921_v40  ;;  %4298 = vmatprep.subr.bf16.mxu1 %v4746_v17 }
 0xd4d   :  { %2112 = vmatpush1.bf16.msra.mxu0 %v4927_v42  ;;  %4299 = vmatpush3.bf16.msra.mxu1 %v5009_v62 }
 0xd4e   :  { %2186 = vmatprep.subr.bf16.mxu0 %v4925_v41  ;;  %4304 = vmatprep.subr.bf16.mxu1 %v4746_v17  ;;  %v5236_v41 = vld [vmem:[#allocation3 + $0x4c] ss:$12 sps:$4 sm:$0xff]  }
 0xd50   :  { %3903 = vmatmul.mubr.msk.bf16.vlgmr.msra.gmra.mxu0 %vm1095_vm6, %v2093_v56  ;;  %4301 = vmatmul.mubr.msk.bf16.vlgmr.msra.gmra.mxu1 %vm1095_vm6, %v2093_v56 }
 0xd51   :  { %2187 = vmatpush1.bf16.msra.mxu0 %v4950_v48  ;;  %4305 = vmatpush3.bf16.msra.mxu1 %v5039_v13 }
 0xd52   :  { %2188 = vmatprep.subr.bf16.mxu0 %v4952_v50  ;;  %4306 = vmatprep.subr.bf16.mxu1 %v4746_v17 }
 0xd53   :  { %2210 = vmatprep.mubr.bf16.mxu0 %v4748_v1  ;;  %4312 = vmatprep.mubr.msk.bf16.mxu1 %vm4747_vm1, %v4746_v17 }
 0xd55   :  { %2189 = vmatpush1.bf16.msra.mxu0 %v4958_v51  ;;  %4307 = vmatpush3.bf16.msra.mxu1 %v5047_v14 }
 0xd56   :  { %2190 = vmatprep.subr.bf16.mxu0 %v4962_v52  ;;  %4308 = vmatprep.subr.bf16.mxu1 %v4746_v17 }
 0xd59   :  { %2191 = vmatpush1.bf16.msra.mxu0 %v4967_v53  ;;  %4309 = vmatpush3.bf16.msra.mxu1 %v5056_v15 }
 0xd5a   :  { %2192 = vmatprep.subr.bf16.mxu0 %v4970_v54  ;;  %4310 = vmatprep.subr.bf16.mxu1 %v4746_v17 }
 0xd5d   :  { %2193 = vmatpush1.bf16.msra.mxu0 %v4975_v55  ;;  %4311 = vmatpush3.bf16.msra.mxu1 %v5062_v16 }
 0xd5e   :  { %2350 = vmatprep.subr.bf16.mxu0 %v5236_v41  ;;  %4316 = vmatprep.subr.bf16.mxu1 %v4746_v17 }
 0xd60   :  { %3905 = vmatmul.mubr.msk.bf16.vlgmr.msra.gmra.mxu0 %vm1095_vm6, %v2093_v56  ;;  %4313 = vmatmul.mubr.msk.bf16.vlgmr.msra.gmra.mxu1 %vm1095_vm6, %v2093_v56 }
 0xd61   :  { %2351 = vmatpush1.bf16.msra.mxu0 %v4901_v25  ;;  %4317 = vmatpush3.bf16.msra.mxu1 %v4996_v58 }
 0xd62   :  { %2352 = vmatprep.subr.bf16.mxu0 %v4904_v31  ;;  %4318 = vmatprep.subr.bf16.mxu1 %v4746_v17 }
 0xd63   :  { %2374 = vmatprep.mubr.bf16.mxu0 %v4748_v1  ;;  %4324 = vmatprep.mubr.msk.bf16.mxu1 %vm4747_vm1, %v4746_v17 }
 0xd65   :  { %2353 = vmatpush1.bf16.msra.mxu0 %v4909_v35  ;;  %4319 = vmatpush3.bf16.msra.mxu1 %v4999_v59 }
 0xd66   :  { %2354 = vmatprep.subr.bf16.mxu0 %v4911_v37  ;;  %4320 = vmatprep.subr.bf16.mxu1 %v4746_v17 }
 0xd69   :  { %2355 = vmatpush1.bf16.msra.mxu0 %v4918_v39  ;;  %4321 = vmatpush3.bf16.msra.mxu1 %v5005_v61 }
 0xd6a   :  { %2356 = vmatprep.subr.bf16.mxu0 %v4921_v40  ;;  %4322 = vmatprep.subr.bf16.mxu1 %v4746_v17 }
 0xd6d   :  { %2357 = vmatpush1.bf16.msra.mxu0 %v4927_v42  ;;  %4323 = vmatpush3.bf16.msra.mxu1 %v5009_v62 }
 0xd6e   :  { %2436 = vmatprep.subr.bf16.mxu0 %v5236_v41  ;;  %4328 = vmatprep.subr.bf16.mxu1 %v4746_v17 }
 0xe00   :  { %v2045_v25 = vpop.f32.mrf.mxu0  ;;  %v2086_v31 = vpop.f32.mrf.mxu1 }
 0xe02   :  { %v2047_v35 = vpop.f32.mrf.mxu0  ;;  %v4290_v37 = vpop.f32.mrf.mxu1 }
 0xe04   :  { %v2049_v48 = vpop.f32.mrf.mxu0  ;;  %v2089_v39 = vpop.f32.mrf.mxu1 }
 0xe06   :  { %v2050_v50 = vpop.f32.mrf.mxu0  ;;  %v4291_v51 = vpop.f32.mrf.mxu1 }
 0xe10   :  { %v2131_v52 = vpop.f32.mrf.mxu0  ;;  %v2172_v40 = vpop.f32.mrf.mxu1 }
 0xe11   :  { %v2132_v0 = vadd.f32 %v2131_v52, %v2045_v25  ;;  %v2173_v3 = vadd.f32 %v2172_v40, %v2086_v31  ;;  %v2317_v40 = vrot.slane %v5187_v30, 6 }
 0xe12   :  { %v2133_v53 = vpop.f32.mrf.mxu0  ;;  %v4302_v54 = vpop.f32.mrf.mxu1 }
 0xe13   :  { %v2134_v55 = vadd.f32 %v2133_v53, %v2047_v35 }
 0xe14   :  { %v2135_v42 = vpop.f32.mrf.mxu0  ;;  %v2175_v57 = vpop.f32.mrf.mxu1 }
 0xe16   :  { %v2136_v60 = vpop.f32.mrf.mxu0  ;;  %v4303_v63 = vpop.f32.mrf.mxu1 }
 0xe20   :  { %v2212_v4 = vpop.f32.mrf.mxu0  ;;  %v2253_v6 = vpop.f32.mrf.mxu1 }
 0xe21   :  { %v2259_v7 = vadd.f32 %v2212_v4, %v2132_v0  ;;  %v2261_v21 = vadd.f32 %v2253_v6, %v2173_v3 }
 0xe22   :  { %v2214_v8 = vpop.f32.mrf.mxu0  ;;  %v4314_v10 = vpop.f32.mrf.mxu1 }
 0xe23   :  { %v2262_v12 = vadd.f32 %v2259_v7, %v4987_v22  ;;  %v2264_v2 = vadd.f32 %v2261_v21, %v4853_v28  ;;  %v2260_v20 = vadd.f32 %v2214_v8, %v2134_v55 }
 0xe24   :  { %v2216_v24 = vpop.f32.mrf.mxu0  ;;  %v2256_v19 = vpop.f32.mrf.mxu1 }
 0xe25   :  { %v2292_v5 = vrot.slane %v2262_v12, 2  ;;  %2273 = vrot.lane.b32.xlu1 %v2264_v2, %s4750_s16  ;;  %v2263_v33 = vadd.f32 %v2260_v20, %v4850_v27  ;;  %v5288_v20 = vld [vmem:[#allocation3 + $0x34] ss:$12 sps:$4 sm:$0xff]   ;;  %v5295_v24 = vld [vmem:[#allocation3 + $0x30] ss:$12 sps:$4 sm:$0xff]  }
 0xe26   :  { %v2217_v29 = vpop.f32.mrf.mxu0  ;;  %v4315_v32 = vpop.f32.mrf.mxu1  ;;  %v5299_v19 = vld [vmem:[#allocation3 + $0x1c] ss:$12 sps:$4 sm:$0xff]  }
 0xe27   :  { %2301 = vrot.lane.b32.xlu0 %v2292_v5, %s4750_s16  ;;  %v2265_v34 = vadd.f32 %v2264_v2, %v2263_v33  ;;  %v2294_v43 = vadd.f32 %v2292_v5, %v4991_v38  ;;  %v5284_v2 = vld [vmem:[#allocation3 + $0x48] ss:$12 sps:$4 sm:$0xff]   ;;  %v5307_v5 = vld [vmem:[#allocation3 + $0x4] ss:$12 sps:$4 sm:$0xff]   ;;  %v5311_v29 = vld [vmem:[#allocation3] ss:$12 sps:$4 sm:$0xff]  }
 0xe28   :  { %v5315_v32 = vld [vmem:[#allocation5 + $0x4c] ss:$12 sps:$4 sm:$0xff]  }
 0xe29   :  { %v3907_v36 = vmul.f32 -1.442695, %v2265_v34  ;;  %v3908_v44 = vmul.f32 -1.442695, %v2294_v43  ;;  %v5336_v34 = vld [vmem:[#allocation5 + $0x1c] ss:$12 sps:$4 sm:$0xff]  }
 0xe2a   :  { %v5344_v43 = vld [vmem:[#allocation5 + $0x4] ss:$12 sps:$4 sm:$0xff]  }
 0xe2b   :  { %4593 = vpow2.f32 %v3907_v36  ;;  %v5348_v36 = vld [vmem:[#allocation5] ss:$12 sps:$4 sm:$0xff]  }
 0xe2c   :  { %4595 = vpow2.f32 %v3908_v44  ;;  %v5378_v44 = vld [vmem:[#allocation3 + $0x8] ss:$12 sps:$4 sm:$0xff]  }
 0xe38   :  { %v4594_v9 = vpop.eup %4593 }
 0xe39   :  { %v4596_v23 = vpop.eup %4595  ;;  %v2269_v26 = vadd.f32 1.0, %v4594_v9 }
 0xe3a   :  { %v2298_v46 = vadd.f32 1.0, %v4596_v23 }
 0xe3b   :  { %4597 = vrcp.f32 %v2269_v26 }
 0xe3c   :  { %4599 = vrcp.f32 %v2298_v46 }
 0xe48   :  { %v4598_v47 = vpop.eup %4597 }
 0xe49   :  { %v4600_v25 = vpop.eup %4599  ;;  %v2289_v0 = vmul.f32 %v4598_v47, %v5192_v45 }
 0xe4a   :  { %v2311_v53 = vsub.f32 1.0, %v4600_v25  ;;  %v2319_v42 = vmul.f32 %v4600_v25, %v2317_v40 }
 0xe97   :  { %v2274_v49 = vpop.permute.xlu1 %2273 }
 0xe98   :  { %v2276_v56 = vmul.f32 %v4598_v47, %v2274_v49 }
 0xe99   :  { %v2302_v31 = vpop.permute.xlu0 %2301 }
 0xe9a   :  { %v2304_v35 = vmul.f32 %v4600_v25, %v2302_v31  ;;  %2278 = vrot.lane.b32.xlu1 %v2276_v56, %s4750_s16 }
 0xe9c   :  { %2306 = vrot.lane.b32.xlu0 %v2304_v35, %s4750_s16 }
 0xf0c   :  { %v2279_v37 = vpop.permute.xlu1 %2278 }
 0xf0d   :  { %v2281_v48 = vadd.f32 %v2279_v37, %v2263_v33  ;;  %v5325_v33 = vld [vmem:[#allocation5 + $0x34] ss:$12 sps:$4 sm:$0xff]  }
 0xf0e   :  { %v2307_v39 = vpop.permute.xlu0 %2306 }
 0xf0f   :  { %4601 = vtanh.f32 %v2281_v48  ;;  %v2309_v50 = vadd.f32 %v2307_v39, %v4991_v38  ;;  %v2283_v38 = vsub.f32 1.0, %v4598_v47 }
 0xf11   :  { %4603 = vtanh.f32 %v2309_v50 }
 0xf1c   :  { %v4602_v51 = vpop.eup %4601 }
 0xf1d   :  { %2285 = vrot.lane.b32.xlu1 %v4602_v51, %s4751_s17 }
 0xf1e   :  { %v4604_v52 = vpop.eup %4603 }
 0xf1f   :  { %2313 = vrot.lane.b32.xlu0 %v4604_v52, %s4751_s17 }
 0xf8f   :  { %v2286_v60 = vpop.permute.xlu1 %2285 }
 0xf90   :  { %v2288_v63 = vmul.f32 %v2286_v60, %v2283_v38 }
 0xf91   :  { %v2314_v54 = vpop.permute.xlu0 %2313 }
 0xf92   :  { %v2316_v55 = vmul.f32 %v2314_v54, %v2311_v53  ;;  %v5278_v3 = vadd.f32 %v2289_v0, %v2288_v63 }
 0xf94   :  { %v5273_v57 = vadd.f32 %v2319_v42, %v2316_v55  ;;  %v2330_v4 = vrot.slane %v5278_v3, 2 }
 0xf96   :  { %2327 = vrot.lane.b32.xlu0 %v5273_v57, %s4751_s17 }
0x1008   :  { %v2328_v6 = vpop.permute.xlu0 %2327 }
0x1009   :  { %v2332_v30 = vsel %vm260_vm2, %v2328_v6, %v2330_v4 }
0x100a   :  { %v2333_v7 = vpack.c.bf16 %v2332_v30, %v2332_v30 }
0x100c   :  { %v2334_v21 = vunpack.c.l.bf16 %v2333_v7 }
0x100e   :  { %v2335_v8 = vsub.f32 %v2332_v30, %v2334_v21 }
0x1010   :  { %v2336_v10 = vpack.c.bf16 %v2335_v8, %v2335_v8 }
0x1012   :  { %v2338_v12 = vrot.slane %v2336_v10, 3 }
0x1014   :  { %3909 = vmatmul.mubr.msk.bf16.vlgmr.msra.gmra.mxu0 %vm1095_vm6, %v2338_v12  ;;  %4325 = vmatmul.mubr.msk.bf16.vlgmr.msra.gmra.mxu1 %vm1095_vm6, %v2338_v12 }
0x1015   :  { %2437 = vmatpush1.bf16.msra.mxu0 %v5284_v2  ;;  %4329 = vmatpush3.bf16.msra.mxu1 %v4996_v58  ;;  %v5303_v58 = vld [vmem:[#allocation3 + $0x18] ss:$12 sps:$4 sm:$0xff]  }
0x1016   :  { %2438 = vmatprep.subr.bf16.mxu0 %v5288_v20  ;;  %4330 = vmatprep.subr.bf16.mxu1 %v4746_v17 }
0x1017   :  { %2460 = vmatprep.mubr.bf16.mxu0 %v4748_v1  ;;  %4336 = vmatprep.mubr.msk.bf16.mxu1 %vm4747_vm1, %v4746_v17 }
0x1019   :  { %2439 = vmatpush1.bf16.msra.mxu0 %v5295_v24  ;;  %4331 = vmatpush3.bf16.msra.mxu1 %v4999_v59  ;;  %v2424_v59 = vrot.slane %v2333_v7, 3 }
0x101a   :  { %2440 = vmatprep.subr.bf16.mxu0 %v5299_v19  ;;  %4332 = vmatprep.subr.bf16.mxu1 %v4746_v17 }
0x101d   :  { %2441 = vmatpush1.bf16.msra.mxu0 %v5303_v58  ;;  %4333 = vmatpush3.bf16.msra.mxu1 %v5005_v61  ;;  %v5321_v61 = vld [vmem:[#allocation5 + $0x48] ss:$12 sps:$4 sm:$0xff]  }
0x101e   :  { %2442 = vmatprep.subr.bf16.mxu0 %v5307_v5  ;;  %4334 = vmatprep.subr.bf16.mxu1 %v4746_v17 }
0x1021   :  { %2443 = vmatpush1.bf16.msra.mxu0 %v5311_v29  ;;  %4335 = vmatpush3.bf16.msra.mxu1 %v5009_v62  ;;  %v5332_v62 = vld [vmem:[#allocation5 + $0x30] ss:$12 sps:$4 sm:$0xff]  }
0x1022   :  { %2517 = vmatprep.subr.bf16.mxu0 %v5315_v32  ;;  %4340 = vmatprep.subr.bf16.mxu1 %v4746_v17 }
0x1024   :  { %3911 = vmatmul.mubr.msk.bf16.vlgmr.msra.gmra.mxu0 %vm1095_vm6, %v2424_v59  ;;  %4337 = vmatmul.mubr.msk.bf16.vlgmr.msra.gmra.mxu1 %vm1095_vm6, %v2424_v59 }
0x1025   :  { %2518 = vmatpush1.bf16.msra.mxu0 %v5321_v61  ;;  %4341 = vmatpush3.bf16.msra.mxu1 %v5039_v13  ;;  %v5340_v13 = vld [vmem:[#allocation5 + $0x18] ss:$12 sps:$4 sm:$0xff]  }
0x1026   :  { %2519 = vmatprep.subr.bf16.mxu0 %v5325_v33  ;;  %4342 = vmatprep.subr.bf16.mxu1 %v4746_v17 }
0x1027   :  { %2541 = vmatprep.mubr.bf16.mxu0 %v4748_v1  ;;  %4348 = vmatprep.mubr.msk.bf16.mxu1 %vm4747_vm1, %v4746_v17 }
0x1029   :  { %2520 = vmatpush1.bf16.msra.mxu0 %v5332_v62  ;;  %4343 = vmatpush3.bf16.msra.mxu1 %v5047_v14  ;;  %v5357_v14 = vld [vmem:[#allocation3 + $0x50] ss:$12 sps:$4 sm:$0xff]  }
0x102a   :  { %2521 = vmatprep.subr.bf16.mxu0 %v5336_v34  ;;  %4344 = vmatprep.subr.bf16.mxu1 %v4746_v17 }
0x102d   :  { %2522 = vmatpush1.bf16.msra.mxu0 %v5340_v13  ;;  %4345 = vmatpush3.bf16.msra.mxu1 %v5056_v15  ;;  %v5366_v15 = vld [vmem:[#allocation3 + $0x38] ss:$12 sps:$4 sm:$0xff]  }
0x102e   :  { %2523 = vmatprep.subr.bf16.mxu0 %v5344_v43  ;;  %4346 = vmatprep.subr.bf16.mxu1 %v4746_v17 }
0x1031   :  { %2524 = vmatpush1.bf16.msra.mxu0 %v5348_v36  ;;  %4347 = vmatpush3.bf16.msra.mxu1 %v5062_v16  ;;  %v5372_v16 = vld [vmem:[#allocation3 + $0x20] ss:$12 sps:$4 sm:$0xff]  }
0x1032   :  { %2675 = vmatprep.subr.bf16.mxu0 %v5236_v41  ;;  %4352 = vmatprep.subr.bf16.mxu1 %v4746_v17 }
0x1034   :  { %3913 = vmatmul.mubr.msk.bf16.vlgmr.msra.gmra.mxu0 %vm1095_vm6, %v2424_v59  ;;  %4349 = vmatmul.mubr.msk.bf16.vlgmr.msra.gmra.mxu1 %vm1095_vm6, %v2424_v59 }
0x1035   :  { %2676 = vmatpush1.bf16.msra.mxu0 %v5284_v2  ;;  %4353 = vmatpush3.bf16.msra.mxu1 %v5357_v14 }
0x1036   :  { %2677 = vmatprep.subr.bf16.mxu0 %v5288_v20  ;;  %4354 = vmatprep.subr.bf16.mxu1 %v4746_v17 }
0x1037   :  { %2699 = vmatprep.mubr.bf16.mxu0 %v4748_v1  ;;  %4360 = vmatprep.mubr.msk.bf16.mxu1 %vm4747_vm1, %v4746_v17 }
0x1039   :  { %2678 = vmatpush1.bf16.msra.mxu0 %v5295_v24  ;;  %4355 = vmatpush3.bf16.msra.mxu1 %v5366_v15 }
0x103a   :  { %2679 = vmatprep.subr.bf16.mxu0 %v5299_v19  ;;  %4356 = vmatprep.subr.bf16.mxu1 %v4746_v17 }
0x103d   :  { %2680 = vmatpush1.bf16.msra.mxu0 %v5303_v58  ;;  %4357 = vmatpush3.bf16.msra.mxu1 %v5372_v16 }
0x103e   :  { %2681 = vmatprep.subr.bf16.mxu0 %v5307_v5  ;;  %4358 = vmatprep.subr.bf16.mxu1 %v4746_v17 }
0x1041   :  { %2682 = vmatpush1.bf16.msra.mxu0 %v5311_v29  ;;  %4359 = vmatpush3.bf16.msra.mxu1 %v5378_v44 }
0x1042   :  { %2759 = vmatprep.subr.bf16.mxu0 %v5236_v41  ;;  %4364 = vmatprep.subr.bf16.mxu1 %v4746_v17 }
0x10d4   :  { %v2376_v9 = vpop.f32.mrf.mxu0  ;;  %v2417_v23 = vpop.f32.mrf.mxu1 }
0x10d6   :  { %v2378_v26 = vpop.f32.mrf.mxu0  ;;  %v4326_v46 = vpop.f32.mrf.mxu1 }
0x10d8   :  { %v2380_v47 = vpop.f32.mrf.mxu0  ;;  %v2420_v49 = vpop.f32.mrf.mxu1 }
0x10da   :  { %v2381_v56 = vpop.f32.mrf.mxu0  ;;  %v4327_v25 = vpop.f32.mrf.mxu1 }
0x10e4   :  { %v2462_v31 = vpop.f32.mrf.mxu0  ;;  %v2503_v35 = vpop.f32.mrf.mxu1 }
0x10e5   :  { %v2463_v53 = vadd.f32 %v2462_v31, %v2376_v9  ;;  %v2504_v54 = vadd.f32 %v2503_v35, %v2417_v23 }
0x10e6   :  { %v2464_v37 = vpop.f32.mrf.mxu0  ;;  %v4338_v48 = vpop.f32.mrf.mxu1 }
0x10e7   :  { %v2465_v39 = vadd.f32 %v2464_v37, %v2378_v26 }
0x10e8   :  { %v2466_v50 = vpop.f32.mrf.mxu0  ;;  %v2506_v51 = vpop.f32.mrf.mxu1 }
0x10ea   :  { %v2467_v52 = vpop.f32.mrf.mxu0  ;;  %v4339_v40 = vpop.f32.mrf.mxu1 }
0x10f4   :  { %v2543_v55 = vpop.f32.mrf.mxu0  ;;  %v2584_v42 = vpop.f32.mrf.mxu1 }
0x10f5   :  { %v2590_v60 = vadd.f32 %v2543_v55, %v2463_v53  ;;  %v2592_v38 = vadd.f32 %v2584_v42, %v2504_v54  ;;  %v2646_v55 = vrot.slane %v5273_v57, 6 }
0x10f6   :  { %v2545_v63 = vpop.f32.mrf.mxu0  ;;  %v4350_v0 = vpop.f32.mrf.mxu1 }
0x10f7   :  { %v2593_v4 = vadd.f32 %v2590_v60, %v4987_v22  ;;  %v2595_v6 = vadd.f32 %v2592_v38, %v4853_v28  ;;  %v2591_v30 = vadd.f32 %v2545_v63, %v2465_v39 }
0x10f8   :  { %v2547_v7 = vpop.f32.mrf.mxu0  ;;  %v2587_v21 = vpop.f32.mrf.mxu1 }
0x10f9   :  { %2604 = vrot.lane.b32.xlu0 %v2595_v6, %s4750_s16  ;;  %2630 = vrot.lane.b32.xlu1 %v2593_v4, %s4750_s16  ;;  %v2594_v12 = vadd.f32 %v2591_v30, %v4850_v27  ;;  %v2622_v59 = vadd.f32 %v2593_v4, %v4983_v11 }
0x10fa   :  { %v2548_v8 = vpop.f32.mrf.mxu0  ;;  %v4351_v10 = vpop.f32.mrf.mxu1 }
0x10fb   :  { %v2596_v9 = vadd.f32 %v2595_v6, %v2594_v12  ;;  %v3916_v23 = vmul.f32 -1.442695, %v2622_v59 }
0x10fd   :  { %v3915_v26 = vmul.f32 -1.442695, %v2596_v9  ;;  %4605 = vpow2.f32 %v3916_v23  ;;  %v5428_v23 = vld [vmem:[#allocation5 + $0x50] ss:$12 sps:$4 sm:$0xff]  }
0x10ff   :  { %4607 = vpow2.f32 %v3915_v26  ;;  %v5437_v26 = vld [vmem:[#allocation5 + $0x38] ss:$12 sps:$4 sm:$0xff]  }
0x110a   :  { %v4606_v46 = vpop.eup %4605 }
0x110b   :  { %v2626_v49 = vadd.f32 1.0, %v4606_v46  ;;  %v5443_v46 = vld [vmem:[#allocation5 + $0x20] ss:$12 sps:$4 sm:$0xff]  }
0x110c   :  { %v4608_v47 = vpop.eup %4607 }
0x110d   :  { %v2600_v56 = vadd.f32 1.0, %v4608_v47  ;;  %4609 = vrcp.f32 %v2626_v49  ;;  %v5449_v47 = vld [vmem:[#allocation5 + $0x8] ss:$12 sps:$4 sm:$0xff]  }
0x110f   :  { %4611 = vrcp.f32 %v2600_v56 }
0x111a   :  { %v4610_v25 = vpop.eup %4609 }
0x111b   :  { %v2640_v42 = vsub.f32 1.0, %v4610_v25  ;;  %v2648_v63 = vmul.f32 %v4610_v25, %v2646_v55 }
0x111c   :  { %v4612_v31 = vpop.eup %4611 }
0x111d   :  { %v2614_v6 = vsub.f32 1.0, %v4612_v31  ;;  %v2620_v7 = vmul.f32 %v4612_v31, %v5278_v3 }
0x116b   :  { %v2605_v35 = vpop.permute.xlu0 %2604  ;;  %v2631_v37 = vpop.permute.xlu1 %2630 }
0x116c   :  { %v2607_v48 = vmul.f32 %v4612_v31, %v2605_v35  ;;  %v2633_v39 = vmul.f32 %v4610_v25, %v2631_v37 }
0x116e   :  { %2609 = vrot.lane.b32.xlu0 %v2607_v48, %s4750_s16  ;;  %2635 = vrot.lane.b32.xlu1 %v2633_v39, %s4750_s16 }
0x11e0   :  { %v2610_v50 = vpop.permute.xlu0 %2609  ;;  %v2636_v51 = vpop.permute.xlu1 %2635 }
0x11e1   :  { %v2612_v52 = vadd.f32 %v2610_v50, %v2594_v12  ;;  %v2638_v40 = vadd.f32 %v2636_v51, %v4983_v11 }
0x11e3   :  { %4613 = vtanh.f32 %v2612_v52 }
0x11e4   :  { %4615 = vtanh.f32 %v2638_v40 }
0x11f0   :  { %v4614_v53 = vpop.eup %4613 }
0x11f1   :  { %v4616_v54 = vpop.eup %4615  ;;  %2616 = vrot.lane.b32.xlu0 %v4614_v53, %s4751_s17 }
0x11f2   :  { %2642 = vrot.lane.b32.xlu1 %v4616_v54, %s4751_s17 }
0x1263   :  { %v2617_v4 = vpop.permute.xlu0 %2616 }
0x1264   :  { %v2643_v60 = vpop.permute.xlu1 %2642  ;;  %v2619_v30 = vmul.f32 %v2617_v4, %v2614_v6 }
0x1265   :  { %v2645_v38 = vmul.f32 %v2643_v60, %v2640_v42 }
0x1266   :  { %v5400_v21 = vadd.f32 %v2620_v7, %v2619_v30 }
0x1267   :  { %v5395_v0 = vadd.f32 %v2648_v63, %v2645_v38 }
0x1269   :  { %2656 = vrot.lane.b32.xlu1 %v5395_v0, %s4751_s17 }
0x12db   :  { %v2657_v8 = vpop.permute.xlu1 %2656 }
0x12dc   :  { %v2659_v57 = vsel %vm260_vm2, %v2657_v8, %v5400_v21 }
0x12dd   :  { %v2660_v10 = vpack.c.bf16 %v2659_v57, %v2659_v57 }
0x12df   :  { %v2661_v12 = vunpack.c.l.bf16 %v2660_v10 }
0x12e1   :  { %v2662_v59 = vsub.f32 %v2659_v57, %v2661_v12 }
0x12e3   :  { %v2663_v9 = vpack.c.bf16 %v2662_v59, %v2662_v59 }
0x12e5   :  { %3917 = vmatmul.mubr.msk.bf16.vlgmr.msra.gmra.mxu0 %vm1095_vm6, %v2663_v9  ;;  %4361 = vmatmul.mubr.msk.bf16.vlgmr.msra.gmra.mxu1 %vm1095_vm6, %v2663_v9 }
0x12e6   :  { %2760 = vmatpush1.bf16.msra.mxu0 %v5284_v2  ;;  %4365 = vmatpush3.bf16.msra.mxu1 %v5357_v14 }
0x12e7   :  { %2761 = vmatprep.subr.bf16.mxu0 %v5288_v20  ;;  %4366 = vmatprep.subr.bf16.mxu1 %v4746_v17 }
0x12e8   :  { %2783 = vmatprep.mubr.bf16.mxu0 %v4748_v1  ;;  %4372 = vmatprep.mubr.msk.bf16.mxu1 %vm4747_vm1, %v4746_v17 }
0x12ea   :  { %2762 = vmatpush1.bf16.msra.mxu0 %v5295_v24  ;;  %4367 = vmatpush3.bf16.msra.mxu1 %v5366_v15 }
0x12eb   :  { %2763 = vmatprep.subr.bf16.mxu0 %v5299_v19  ;;  %4368 = vmatprep.subr.bf16.mxu1 %v4746_v17 }
0x12ee   :  { %2764 = vmatpush1.bf16.msra.mxu0 %v5303_v58  ;;  %4369 = vmatpush3.bf16.msra.mxu1 %v5372_v16 }
0x12ef   :  { %2765 = vmatprep.subr.bf16.mxu0 %v5307_v5  ;;  %4370 = vmatprep.subr.bf16.mxu1 %v4746_v17 }
0x12f2   :  { %2766 = vmatpush1.bf16.msra.mxu0 %v5311_v29  ;;  %4371 = vmatpush3.bf16.msra.mxu1 %v5378_v44 }
0x12f3   :  { %2840 = vmatprep.subr.bf16.mxu0 %v5315_v32  ;;  %4376 = vmatprep.subr.bf16.mxu1 %v4746_v17 }
0x12f5   :  { %3919 = vmatmul.mubr.msk.bf16.vlgmr.msra.gmra.mxu0 %vm1095_vm6, %v2660_v10  ;;  %4373 = vmatmul.mubr.msk.bf16.vlgmr.msra.gmra.mxu1 %vm1095_vm6, %v2660_v10 }
0x12f6   :  { %2841 = vmatpush1.bf16.msra.mxu0 %v5321_v61  ;;  %4377 = vmatpush3.bf16.msra.mxu1 %v5428_v23 }
0x12f7   :  { %2842 = vmatprep.subr.bf16.mxu0 %v5325_v33  ;;  %4378 = vmatprep.subr.bf16.mxu1 %v4746_v17 }
0x12f8   :  { %2864 = vmatprep.mubr.bf16.mxu0 %v4748_v1  ;;  %4384 = vmatprep.mubr.msk.bf16.mxu1 %vm4747_vm1, %v4746_v17 }
0x12fa   :  { %2843 = vmatpush1.bf16.msra.mxu0 %v5332_v62  ;;  %4379 = vmatpush3.bf16.msra.mxu1 %v5437_v26 }
0x12fb   :  { %2844 = vmatprep.subr.bf16.mxu0 %v5336_v34  ;;  %4380 = vmatprep.subr.bf16.mxu1 %v4746_v17 }
0x12fe   :  { %2845 = vmatpush1.bf16.msra.mxu0 %v5340_v13  ;;  %4381 = vmatpush3.bf16.msra.mxu1 %v5443_v46 }
0x12ff   :  { %2846 = vmatprep.subr.bf16.mxu0 %v5344_v43  ;;  %4382 = vmatprep.subr.bf16.mxu1 %v4746_v17 }
0x1302   :  { %2847 = vmatpush1.bf16.msra.mxu0 %v5348_v36  ;;  %4383 = vmatpush3.bf16.msra.mxu1 %v5449_v47 }
0x1303   :  { %3004 = vmatprep.subr.bf16.mxu0 %v5236_v41  ;;  %4388 = vmatprep.subr.bf16.mxu1 %v4746_v17 }
0x1305   :  { %3921 = vmatmul.mubr.msk.bf16.vlgmr.msra.gmra.mxu0 %vm1095_vm6, %v2660_v10  ;;  %4385 = vmatmul.mubr.msk.bf16.vlgmr.msra.gmra.mxu1 %vm1095_vm6, %v2660_v10 }
0x1306   :  { %3005 = vmatpush1.bf16.msra.mxu0 %v5284_v2  ;;  %4389 = vmatpush3.bf16.msra.mxu1 %v5357_v14 }
0x1307   :  { %3006 = vmatprep.subr.bf16.mxu0 %v5288_v20  ;;  %4390 = vmatprep.subr.bf16.mxu1 %v4746_v17 }
0x1308   :  { %3028 = vmatprep.mubr.bf16.mxu0 %v4748_v1  ;;  %4396 = vmatprep.mubr.msk.bf16.mxu1 %vm4747_vm1, %v4746_v17 }
0x130a   :  { %3007 = vmatpush1.bf16.msra.mxu0 %v5295_v24  ;;  %4391 = vmatpush3.bf16.msra.mxu1 %v5366_v15 }
0x130b   :  { %3008 = vmatprep.subr.bf16.mxu0 %v5299_v19  ;;  %4392 = vmatprep.subr.bf16.mxu1 %v4746_v17 }
0x130e   :  { %3009 = vmatpush1.bf16.msra.mxu0 %v5303_v58  ;;  %4393 = vmatpush3.bf16.msra.mxu1 %v5372_v16 }
0x130f   :  { %3010 = vmatprep.subr.bf16.mxu0 %v5307_v5  ;;  %4394 = vmatprep.subr.bf16.mxu1 %v4746_v17 }
0x1312   :  { %3011 = vmatpush1.bf16.msra.mxu0 %v5311_v29  ;;  %4395 = vmatpush3.bf16.msra.mxu1 %v5378_v44 }
0x1313   :  { %3090 = vmatprep.subr.bf16.mxu0 %v5236_v41  ;;  %4400 = vmatprep.subr.bf16.mxu1 %v4746_v17 }
0x13a5   :  { %v2701_v49 = vpop.f32.mrf.mxu0  ;;  %v2742_v56 = vpop.f32.mrf.mxu1 }
0x13a7   :  { %v2703_v25 = vpop.f32.mrf.mxu0  ;;  %v4362_v31 = vpop.f32.mrf.mxu1 }
0x13a9   :  { %v2705_v35 = vpop.f32.mrf.mxu0  ;;  %v2745_v37 = vpop.f32.mrf.mxu1 }
0x13ab   :  { %v2706_v48 = vpop.f32.mrf.mxu0  ;;  %v4363_v39 = vpop.f32.mrf.mxu1 }
0x13b5   :  { %v2785_v50 = vpop.f32.mrf.mxu0  ;;  %v2826_v51 = vpop.f32.mrf.mxu1 }
0x13b6   :  { %v2786_v38 = vadd.f32 %v2785_v50, %v2701_v49  ;;  %v2827_v63 = vadd.f32 %v2826_v51, %v2742_v56 }
0x13b7   :  { %v2787_v52 = vpop.f32.mrf.mxu0  ;;  %v4374_v40 = vpop.f32.mrf.mxu1 }
0x13b8   :  { %v2788_v53 = vadd.f32 %v2787_v52, %v2703_v25 }
0x13b9   :  { %v2789_v54 = vpop.f32.mrf.mxu0  ;;  %v2829_v55 = vpop.f32.mrf.mxu1 }
0x13bb   :  { %v2790_v42 = vpop.f32.mrf.mxu0  ;;  %v4375_v60 = vpop.f32.mrf.mxu1 }
0x13c5   :  { %v2866_v4 = vpop.f32.mrf.mxu0  ;;  %v2907_v6 = vpop.f32.mrf.mxu1 }
0x13c6   :  { %v2913_v30 = vadd.f32 %v2866_v4, %v2786_v38  ;;  %v2915_v7 = vadd.f32 %v2907_v6, %v2827_v63 }
0x13c7   :  { %v2868_v8 = vpop.f32.mrf.mxu0  ;;  %v4386_v57 = vpop.f32.mrf.mxu1 }
0x13c8   :  { %v2916_v10 = vadd.f32 %v2913_v30, %v4987_v22  ;;  %v2918_v12 = vadd.f32 %v2915_v7, %v4853_v28  ;;  %v2914_v59 = vadd.f32 %v2868_v8, %v2788_v53 }
0x13c9   :  { %v2870_v9 = vpop.f32.mrf.mxu0  ;;  %v2910_v31 = vpop.f32.mrf.mxu1 }
0x13ca   :  { %v2946_v25 = vrot.slane %v2916_v10, 6  ;;  %2927 = vrot.lane.b32.xlu1 %v2918_v12, %s4750_s16  ;;  %v2917_v49 = vadd.f32 %v2914_v59, %v4850_v27  ;;  %v2971_v10 = vrot.slane %v5395_v0, 6 }
0x13cb   :  { %v2871_v35 = vpop.f32.mrf.mxu0  ;;  %v4387_v37 = vpop.f32.mrf.mxu1 }
0x13cc   :  { %2955 = vrot.lane.b32.xlu0 %v2946_v25, %s4750_s16  ;;  %v2919_v56 = vadd.f32 %v2918_v12, %v2917_v49  ;;  %v2948_v48 = vadd.f32 %v2946_v25, %v4983_v11 }
0x13ce   :  { %v3923_v39 = vmul.f32 -1.442695, %v2919_v56  ;;  %v3924_v50 = vmul.f32 -1.442695, %v2948_v48 }
0x13d0   :  { %4617 = vpow2.f32 %v3923_v39 }
0x13d1   :  { %4619 = vpow2.f32 %v3924_v50 }
0x13dd   :  { %v4618_v51 = vpop.eup %4617 }
0x13de   :  { %v4620_v52 = vpop.eup %4619  ;;  %v2923_v40 = vadd.f32 1.0, %v4618_v51 }
0x13df   :  { %v2952_v53 = vadd.f32 1.0, %v4620_v52 }
0x13e0   :  { %4621 = vrcp.f32 %v2923_v40 }
0x13e1   :  { %4623 = vrcp.f32 %v2952_v53 }
0x13ed   :  { %v4622_v54 = vpop.eup %4621 }
0x13ee   :  { %v4624_v60 = vpop.eup %4623  ;;  %v2937_v37 = vsub.f32 1.0, %v4622_v54  ;;  %v2943_v56 = vmul.f32 %v4622_v54, %v5400_v21 }
0x13ef   :  { %v2965_v12 = vsub.f32 1.0, %v4624_v60  ;;  %v2973_v31 = vmul.f32 %v4624_v60, %v2971_v10 }
0x143c   :  { %v2928_v55 = vpop.permute.xlu1 %2927 }
0x143d   :  { %v2930_v42 = vmul.f32 %v4622_v54, %v2928_v55 }
0x143e   :  { %v2956_v38 = vpop.permute.xlu0 %2955 }
0x143f   :  { %v2958_v63 = vmul.f32 %v4624_v60, %v2956_v38  ;;  %2932 = vrot.lane.b32.xlu1 %v2930_v42, %s4750_s16 }
0x1441   :  { %2960 = vrot.lane.b32.xlu0 %v2958_v63, %s4750_s16 }
0x14b1   :  { %v2933_v4 = vpop.permute.xlu1 %2932 }
0x14b2   :  { %v2935_v6 = vadd.f32 %v2933_v4, %v2917_v49 }
0x14b3   :  { %v2961_v30 = vpop.permute.xlu0 %2960 }
0x14b4   :  { %4625 = vtanh.f32 %v2935_v6  ;;  %v2963_v7 = vadd.f32 %v2961_v30, %v4983_v11 }
0x14b6   :  { %4627 = vtanh.f32 %v2963_v7 }
0x14c1   :  { %v4626_v8 = vpop.eup %4625 }
0x14c2   :  { %2939 = vrot.lane.b32.xlu1 %v4626_v8, %s4751_s17 }
0x14c3   :  { %v4628_v57 = vpop.eup %4627 }
0x14c4   :  { %2967 = vrot.lane.b32.xlu0 %v4628_v57, %s4751_s17 }
0x1534   :  { %v2940_v35 = vpop.permute.xlu1 %2939 }
0x1535   :  { %v2942_v49 = vmul.f32 %v2940_v35, %v2937_v37 }
0x1536   :  { %v2968_v59 = vpop.permute.xlu0 %2967 }
0x1537   :  { %v2970_v9 = vmul.f32 %v2968_v59, %v2965_v12  ;;  %v5492_v48 = vadd.f32 %v2943_v56, %v2942_v49 }
0x1539   :  { %v5487_v25 = vadd.f32 %v2973_v31, %v2970_v9  ;;  %v2984_v39 = vrot.slane %v5492_v48, 6 }
0x153b   :  { %2981 = vrot.lane.b32.xlu0 %v5487_v25, %s4751_s17 }
0x15ad   :  { %v2982_v50 = vpop.permute.xlu0 %2981 }
0x15ae   :  { %v2986_v0 = vsel %vm260_vm2, %v2982_v50, %v2984_v39 }
0x15af   :  { %v2987_v51 = vpack.c.bf16 %v2986_v0, %v2986_v0 }
0x15b1   :  { %v2988_v52 = vunpack.c.l.bf16 %v2987_v51  ;;  %v3078_v54 = vrot.slane %v2987_v51, 1 }
0x15b3   :  { %v2989_v40 = vsub.f32 %v2986_v0, %v2988_v52 }
0x15b5   :  { %v2990_v53 = vpack.c.bf16 %v2989_v40, %v2989_v40 }
0x15b7   :  { %v2992_v55 = vrot.slane %v2990_v53, 1 }
0x15b9   :  { %3925 = vmatmul.mubr.msk.bf16.vlgmr.msra.gmra.mxu0 %vm1095_vm6, %v2992_v55  ;;  %4397 = vmatmul.mubr.msk.bf16.vlgmr.msra.gmra.mxu1 %vm1095_vm6, %v2992_v55 }
0x15ba   :  { %3091 = vmatpush1.bf16.msra.mxu0 %v5284_v2  ;;  %4401 = vmatpush3.bf16.msra.mxu1 %v5357_v14 }
0x15bb   :  { %3092 = vmatprep.subr.bf16.mxu0 %v5288_v20  ;;  %4402 = vmatprep.subr.bf16.mxu1 %v4746_v17 }
0x15bc   :  { %3114 = vmatprep.mubr.bf16.mxu0 %v4748_v1  ;;  %4408 = vmatprep.mubr.msk.bf16.mxu1 %vm4747_vm1, %v4746_v17 }
0x15be   :  { %3093 = vmatpush1.bf16.msra.mxu0 %v5295_v24  ;;  %4403 = vmatpush3.bf16.msra.mxu1 %v5366_v15 }
0x15bf   :  { %3094 = vmatprep.subr.bf16.mxu0 %v5299_v19  ;;  %4404 = vmatprep.subr.bf16.mxu1 %v4746_v17 }
0x15c2   :  { %3095 = vmatpush1.bf16.msra.mxu0 %v5303_v58  ;;  %4405 = vmatpush3.bf16.msra.mxu1 %v5372_v16 }
0x15c3   :  { %3096 = vmatprep.subr.bf16.mxu0 %v5307_v5  ;;  %4406 = vmatprep.subr.bf16.mxu1 %v4746_v17 }
0x15c6   :  { %3097 = vmatpush1.bf16.msra.mxu0 %v5311_v29  ;;  %4407 = vmatpush3.bf16.msra.mxu1 %v5378_v44 }
0x15c7   :  { %3171 = vmatprep.subr.bf16.mxu0 %v5315_v32  ;;  %4412 = vmatprep.subr.bf16.mxu1 %v4746_v17 }
0x15c9   :  { %3927 = vmatmul.mubr.msk.bf16.vlgmr.msra.gmra.mxu0 %vm1095_vm6, %v3078_v54  ;;  %4409 = vmatmul.mubr.msk.bf16.vlgmr.msra.gmra.mxu1 %vm1095_vm6, %v3078_v54 }
0x15ca   :  { %3172 = vmatpush1.bf16.msra.mxu0 %v5321_v61  ;;  %4413 = vmatpush3.bf16.msra.mxu1 %v5428_v23 }
0x15cb   :  { %3173 = vmatprep.subr.bf16.mxu0 %v5325_v33  ;;  %4414 = vmatprep.subr.bf16.mxu1 %v4746_v17 }
0x15cc   :  { %3195 = vmatprep.mubr.bf16.mxu0 %v4748_v1  ;;  %4420 = vmatprep.mubr.msk.bf16.mxu1 %vm4747_vm1, %v4746_v17 }
0x15ce   :  { %3174 = vmatpush1.bf16.msra.mxu0 %v5332_v62  ;;  %4415 = vmatpush3.bf16.msra.mxu1 %v5437_v26 }
0x15cf   :  { %3175 = vmatprep.subr.bf16.mxu0 %v5336_v34  ;;  %4416 = vmatprep.subr.bf16.mxu1 %v4746_v17 }
0x15d2   :  { %3176 = vmatpush1.bf16.msra.mxu0 %v5340_v13  ;;  %4417 = vmatpush3.bf16.msra.mxu1 %v5443_v46 }
0x15d3   :  { %3177 = vmatprep.subr.bf16.mxu0 %v5344_v43  ;;  %4418 = vmatprep.subr.bf16.mxu1 %v4746_v17 }
0x15d6   :  { %3178 = vmatpush1.bf16.msra.mxu0 %v5348_v36  ;;  %4419 = vmatpush3.bf16.msra.mxu1 %v5449_v47 }
0x15d7   :  { %3335 = vmatprep.subr.bf16.mxu0 %v5236_v41  ;;  %4424 = vmatprep.subr.bf16.mxu1 %v4746_v17 }
0x15d9   :  { %3929 = vmatmul.mubr.msk.bf16.vlgmr.msra.gmra.mxu0 %vm1095_vm6, %v3078_v54  ;;  %4421 = vmatmul.mubr.msk.bf16.vlgmr.msra.gmra.mxu1 %vm1095_vm6, %v3078_v54 }
0x15da   :  { %3336 = vmatpush1.bf16.msra.mxu0 %v5284_v2  ;;  %4425 = vmatpush3.bf16.msra.mxu1 %v5357_v14 }
0x15db   :  { %3337 = vmatprep.subr.bf16.mxu0 %v5288_v20  ;;  %4426 = vmatprep.subr.bf16.mxu1 %v4746_v17 }
0x15dc   :  { %3359 = vmatprep.mubr.bf16.mxu0 %v4748_v1  ;;  %4432 = vmatprep.mubr.msk.bf16.mxu1 %vm4747_vm1, %v4746_v17 }
0x15de   :  { %3338 = vmatpush1.bf16.msra.mxu0 %v5295_v24  ;;  %4427 = vmatpush3.bf16.msra.mxu1 %v5366_v15 }
0x15df   :  { %3339 = vmatprep.subr.bf16.mxu0 %v5299_v19  ;;  %4428 = vmatprep.subr.bf16.mxu1 %v4746_v17 }
0x15e2   :  { %3340 = vmatpush1.bf16.msra.mxu0 %v5303_v58  ;;  %4429 = vmatpush3.bf16.msra.mxu1 %v5372_v16 }
0x15e3   :  { %3341 = vmatprep.subr.bf16.mxu0 %v5307_v5  ;;  %4430 = vmatprep.subr.bf16.mxu1 %v4746_v17 }
0x15e6   :  { %3342 = vmatpush1.bf16.msra.mxu0 %v5311_v29  ;;  %4431 = vmatpush3.bf16.msra.mxu1 %v5378_v44 }
0x15e7   :  { %3420 = vmatprep.subr.bf16.mxu0 %v5236_v41  ;;  %4436 = vmatprep.subr.bf16.mxu1 %v4746_v17 }
0x1679   :  { %v3030_v42 = vpop.f32.mrf.mxu0  ;;  %v3071_v60 = vpop.f32.mrf.mxu1 }
0x167b   :  { %v3032_v38 = vpop.f32.mrf.mxu0  ;;  %v4398_v63 = vpop.f32.mrf.mxu1 }
0x167d   :  { %v3034_v4 = vpop.f32.mrf.mxu0  ;;  %v3074_v6 = vpop.f32.mrf.mxu1 }
0x167f   :  { %v3035_v30 = vpop.f32.mrf.mxu0  ;;  %v4399_v7 = vpop.f32.mrf.mxu1 }
0x1689   :  { %v3116_v8 = vpop.f32.mrf.mxu0  ;;  %v3157_v57 = vpop.f32.mrf.mxu1 }
0x168a   :  { %v3117_v41 = vadd.f32 %v3116_v8, %v3030_v42  ;;  %v3158_v49 = vadd.f32 %v3157_v57, %v3071_v60 }
0x168b   :  { %v3118_v10 = vpop.f32.mrf.mxu0  ;;  %v4410_v12 = vpop.f32.mrf.mxu1 }
0x168c   :  { %v3119_v59 = vadd.f32 %v3118_v10, %v3032_v38 }
0x168d   :  { %v3120_v9 = vpop.f32.mrf.mxu0  ;;  %v3160_v31 = vpop.f32.mrf.mxu1 }
0x168f   :  { %v3121_v35 = vpop.f32.mrf.mxu0  ;;  %v4411_v37 = vpop.f32.mrf.mxu1 }
0x1699   :  { %v3197_v56 = vpop.f32.mrf.mxu0  ;;  %v3238_v39 = vpop.f32.mrf.mxu1 }
0x169a   :  { %v3244_v50 = vadd.f32 %v3197_v56, %v3117_v41  ;;  %v3246_v0 = vadd.f32 %v3238_v39, %v3158_v49 }
0x169b   :  { %v3199_v51 = vpop.f32.mrf.mxu0  ;;  %v4422_v52 = vpop.f32.mrf.mxu1 }
0x169c   :  { %v3247_v40 = vadd.f32 %v3244_v50, %v4987_v22  ;;  %v3249_v53 = vadd.f32 %v3246_v0, %v4853_v28  ;;  %v3245_v55 = vadd.f32 %v3199_v51, %v3119_v59  ;;  %v3302_v52 = vrot.slane %v5487_v25, 6 }
0x169d   :  { %v3201_v54 = vpop.f32.mrf.mxu0  ;;  %v3241_v63 = vpop.f32.mrf.mxu1 }
0x169e   :  { %v3277_v38 = vrot.slane %v3247_v40, 4  ;;  %3258 = vrot.lane.b32.xlu0 %v3249_v53, %s4750_s16  ;;  %v3248_v42 = vadd.f32 %v3245_v55, %v4850_v27 }
0x169f   :  { %v3202_v4 = vpop.f32.mrf.mxu0  ;;  %v4423_v6 = vpop.f32.mrf.mxu1 }
0x16a0   :  { %3286 = vrot.lane.b32.xlu1 %v3277_v38, %s4750_s16  ;;  %v3250_v60 = vadd.f32 %v3249_v53, %v3248_v42  ;;  %v3279_v30 = vadd.f32 %v3277_v38, %v4983_v11 }
0x16a2   :  { %v3931_v7 = vmul.f32 -1.442695, %v3250_v60  ;;  %v3932_v8 = vmul.f32 -1.442695, %v3279_v30 }
0x16a4   :  { %4629 = vpow2.f32 %v3931_v7 }
0x16a5   :  { %4631 = vpow2.f32 %v3932_v8 }
0x16b1   :  { %v4630_v22 = vpop.eup %4629 }
0x16b2   :  { %v4632_v57 = vpop.eup %4631  ;;  %v3254_v10 = vadd.f32 1.0, %v4630_v22 }
0x16b3   :  { %v3283_v12 = vadd.f32 1.0, %v4632_v57 }
0x16b4   :  { %4633 = vrcp.f32 %v3254_v10 }
0x16b5   :  { %4635 = vrcp.f32 %v3283_v12 }
0x16c1   :  { %v4634_v59 = vpop.eup %4633 }
0x16c2   :  { %v4636_v35 = vpop.eup %4635  ;;  %v3268_v4 = vsub.f32 1.0, %v4634_v59 }
0x16c3   :  { %v3296_v40 = vsub.f32 1.0, %v4636_v35  ;;  %v3304_v54 = vmul.f32 %v4636_v35, %v3302_v52 }
0x1710   :  { %v3259_v9 = vpop.permute.xlu0 %3258 }
0x1711   :  { %v3261_v31 = vmul.f32 %v4634_v59, %v3259_v9 }
0x1712   :  { %v3287_v37 = vpop.permute.xlu1 %3286 }
0x1713   :  { %v3289_v41 = vmul.f32 %v4636_v35, %v3287_v37  ;;  %3263 = vrot.lane.b32.xlu0 %v3261_v31, %s4750_s16 }
0x1715   :  { %3291 = vrot.lane.b32.xlu1 %v3289_v41, %s4750_s16 }
0x1785   :  { %v3264_v49 = vpop.permute.xlu0 %3263 }
0x1786   :  { %v3266_v56 = vadd.f32 %v3264_v49, %v3248_v42 }
0x1787   :  { %v3292_v39 = vpop.permute.xlu1 %3291 }
0x1788   :  { %4637 = vtanh.f32 %v3266_v56  ;;  %v3294_v50 = vadd.f32 %v3292_v39, %v4983_v11  ;;  %v3274_v11 = vmul.f32 %v4634_v59, %v5492_v48 }
0x178a   :  { %4639 = vtanh.f32 %v3294_v50 }
0x1795   :  { %v4638_v0 = vpop.eup %4637 }
0x1796   :  { %3270 = vrot.lane.b32.xlu0 %v4638_v0, %s4751_s17 }
0x1797   :  { %v4640_v51 = vpop.eup %4639 }
0x1798   :  { %3298 = vrot.lane.b32.xlu1 %v4640_v51, %s4751_s17 }
0x1808   :  { %v3271_v38 = vpop.permute.xlu0 %3270 }
0x1809   :  { %v3273_v6 = vmul.f32 %v3271_v38, %v3268_v4 }
0x180a   :  { %v3299_v53 = vpop.permute.xlu1 %3298 }
0x180b   :  { %v3301_v55 = vmul.f32 %v3299_v53, %v3296_v40  ;;  %v5573_v42 = vadd.f32 %v3274_v11, %v3273_v6 }
0x180d   :  { %v3305_v63 = vadd.f32 %v3304_v54, %v3301_v55  ;;  %v3315_v60 = vrot.slane %v5573_v42, 4 }
0x180f   :  { %3312 = vrot.lane.b32.xlu1 %v3305_v63, %s4751_s17 }
0x1881   :  { %v3313_v30 = vpop.permute.xlu1 %3312 }
0x1882   :  { %v3317_v7 = vsel %vm260_vm2, %v3313_v30, %v3315_v60 }
0x1883   :  { %v3318_v25 = vpack.c.bf16 %v3317_v7, %v3317_v7 }
0x1885   :  { %v3319_v8 = vunpack.c.l.bf16 %v3318_v25 }
0x1887   :  { %v3320_v22 = vsub.f32 %v3317_v7, %v3319_v8 }
0x1889   :  { %v3321_v57 = vpack.c.bf16 %v3320_v22, %v3320_v22 }
0x188b   :  { %v3323_v10 = vrot.slane %v3321_v57, 2 }
0x188d   :  { %3933 = vmatmul.mubr.msk.bf16.vlgmr.msra.gmra.mxu0 %vm1095_vm6, %v3323_v10  ;;  %4433 = vmatmul.mubr.msk.bf16.vlgmr.msra.gmra.mxu1 %vm1095_vm6, %v3323_v10 }
0x188e   :  { %3421 = vmatpush1.bf16.msra.mxu0 %v5284_v2  ;;  %4437 = vmatpush3.bf16.msra.mxu1 %v5357_v14  ;;  %v3408_v2 = vrot.slane %v3318_v25, 2 }
0x188f   :  { %3422 = vmatprep.subr.bf16.mxu0 %v5288_v20  ;;  %4438 = vmatprep.subr.bf16.mxu1 %v4746_v17 }
0x1890   :  { %3444 = vmatprep.mubr.bf16.mxu0 %v4748_v1  ;;  %4444 = vmatprep.mubr.msk.bf16.mxu1 %vm4747_vm1, %v4746_v17 }
0x1892   :  { %3423 = vmatpush1.bf16.msra.mxu0 %v5295_v24  ;;  %4439 = vmatpush3.bf16.msra.mxu1 %v5366_v15 }
0x1893   :  { %3424 = vmatprep.subr.bf16.mxu0 %v5299_v19  ;;  %4440 = vmatprep.subr.bf16.mxu1 %v4746_v17 }
0x1896   :  { %3425 = vmatpush1.bf16.msra.mxu0 %v5303_v58  ;;  %4441 = vmatpush3.bf16.msra.mxu1 %v5372_v16 }
0x1897   :  { %3426 = vmatprep.subr.bf16.mxu0 %v5307_v5  ;;  %4442 = vmatprep.subr.bf16.mxu1 %v4746_v17 }
0x189a   :  { %3427 = vmatpush1.bf16.msra.mxu0 %v5311_v29  ;;  %4443 = vmatpush3.bf16.msra.mxu1 %v5378_v44 }
0x189b   :  { %3500 = vmatprep.subr.bf16.mxu0 %v5315_v32  ;;  %4448 = vmatprep.subr.bf16.mxu1 %v4746_v17 }
0x189d   :  { %3935 = vmatmul.mubr.msk.bf16.vlgmr.msra.gmra.mxu0 %vm1095_vm6, %v3408_v2  ;;  %4445 = vmatmul.mubr.msk.bf16.vlgmr.msra.gmra.mxu1 %vm1095_vm6, %v3408_v2 }
0x189e   :  { %3501 = vmatpush1.bf16.msra.mxu0 %v5321_v61  ;;  %4449 = vmatpush3.bf16.msra.mxu1 %v5428_v23 }
0x189f   :  { %3502 = vmatprep.subr.bf16.mxu0 %v5325_v33  ;;  %4450 = vmatprep.subr.bf16.mxu1 %v4746_v17 }
0x18a0   :  { %3524 = vmatprep.mubr.bf16.mxu0 %v4748_v1  ;;  %4456 = vmatprep.mubr.msk.bf16.mxu1 %vm4747_vm1, %v4746_v17 }
0x18a2   :  { %3503 = vmatpush1.bf16.msra.mxu0 %v5332_v62  ;;  %4451 = vmatpush3.bf16.msra.mxu1 %v5437_v26 }
0x18a3   :  { %3504 = vmatprep.subr.bf16.mxu0 %v5336_v34  ;;  %4452 = vmatprep.subr.bf16.mxu1 %v4746_v17 }
0x18a6   :  { %3505 = vmatpush1.bf16.msra.mxu0 %v5340_v13  ;;  %4453 = vmatpush3.bf16.msra.mxu1 %v5443_v46 }
0x18a7   :  { %3506 = vmatprep.subr.bf16.mxu0 %v5344_v43  ;;  %4454 = vmatprep.subr.bf16.mxu1 %v4746_v17 }
0x18aa   :  { %3507 = vmatpush1.bf16.msra.mxu0 %v5348_v36  ;;  %4455 = vmatpush3.bf16.msra.mxu1 %v5449_v47 }
0x18ab   :  { %4476 = vmatprep.subr.bf16.mxu1 %v4746_v17  ;;  %4460 = vmatprep.subr.bf16.mxu0 %v4746_v17 }
0x18ad   :  { %3937 = vmatmul.mubr.msk.bf16.vlgmr.msra.gmra.mxu0 %vm1095_vm6, %v3408_v2  ;;  %4457 = vmatmul.mubr.msk.bf16.vlgmr.msra.gmra.mxu1 %vm1095_vm6, %v3408_v2 }
0x18ae   :  { %4480 = vmatprep.mubr.msk.bf16.mxu1 %vm4747_vm1, %v4746_v17  ;;  %4464 = vmatprep.mubr.msk.bf16.mxu0 %vm4747_vm1, %v4746_v17 }
0x194d   :  { %v3361_v1 = vpop.f32.mrf.mxu0  ;;  %v3401_v20 = vpop.f32.mrf.mxu1 }
0x194f   :  { %v3362_v24 = vpop.f32.mrf.mxu0  ;;  %v4434_v19 = vpop.f32.mrf.mxu1 }
0x1950   :  { %v4547_v19 = vld [vmem:[#allocation5 + $0x108] ss:$12 sps:$4 sm:$0xff]  }
0x1951   :  { %v3364_v58 = vpop.f32.mrf.mxu0  ;;  %v3404_v5 = vpop.f32.mrf.mxu1  ;;  %4477 = vmatpush3.bf16.msra.mxu1 %v4547_v19 }
0x1952   :  { %4478 = vmatprep.subr.bf16.mxu1 %v4746_v17  ;;  %v4548_v58 = vld [vmem:[#allocation5 + $0xf0] ss:$12 sps:$4 sm:$0xff]   ;;  %v4549_v5 = vld [vmem:[#allocation3 + $0x108] ss:$12 sps:$4 sm:$0xff]  }
0x1953   :  { %v3365_v29 = vpop.f32.mrf.mxu0  ;;  %v4435_v32 = vpop.f32.mrf.mxu1  ;;  %4461 = vmatpush3.bf16.msra.mxu0 %v4549_v5 }
0x1954   :  { %4462 = vmatprep.subr.bf16.mxu0 %v4746_v17  ;;  %v4550_v29 = vld [vmem:[#allocation3 + $0xf0] ss:$12 sps:$4 sm:$0xff]  }
0x1955   :  { %4479 = vmatpush3.bf16.msra.mxu1 %v4548_v58 }
0x1957   :  { %4463 = vmatpush3.bf16.msra.mxu0 %v4550_v29 }
0x1958   :  { %4468 = vmatprep.subr.bf16.mxu0 %v4746_v17 }
0x195d   :  { %v3446_v61 = vpop.f32.mrf.mxu0  ;;  %v3486_v33 = vpop.f32.mrf.mxu1 }
0x195e   :  { %v3487_v16 = vadd.f32 %v3486_v33, %v3401_v20 }
0x195f   :  { %v3447_v62 = vpop.f32.mrf.mxu0  ;;  %v4446_v34 = vpop.f32.mrf.mxu1 }
0x1960   :  { %v3448_v13 = vadd.f32 %v3447_v62, %v3362_v24 }
0x1961   :  { %v3449_v43 = vpop.f32.mrf.mxu0  ;;  %v3489_v36 = vpop.f32.mrf.mxu1 }
0x1963   :  { %v3450_v14 = vpop.f32.mrf.mxu0  ;;  %v4447_v15 = vpop.f32.mrf.mxu1 }
0x1964   :  { %v3636_v14 = vld [vmem:[#allocation7 + $0x108] ss:$0 sm:$0xff] }
0x196d   :  { %v3526_v44 = vpop.f32.mrf.mxu0  ;;  %v3566_v23 = vpop.f32.mrf.mxu1 }
0x196e   :  { %v3573_v26 = vadd.f32 %v3566_v23, %v3487_v16  ;;  %v3639_v23 = vld [vmem:[#allocation7 + $0x120] ss:$0 sm:$0xff] }
0x196f   :  { %v3527_v46 = vpop.f32.mrf.mxu0  ;;  %v4458_v47 = vpop.f32.mrf.mxu1 }
0x1970   :  { %v3575_v12 = vadd.f32 %v3573_v26, %v4853_v28  ;;  %v3572_v59 = vadd.f32 %v3527_v46, %v3448_v13 }
0x1971   :  { %v3529_v9 = vpop.f32.mrf.mxu0  ;;  %v3569_v31 = vpop.f32.mrf.mxu1 }
0x1972   :  { %3584 = vrot.lane.b32.xlu0 %v3575_v12, %s4750_s16  ;;  %v3574_v41 = vadd.f32 %v3572_v59, %v4850_v27 }
0x1973   :  { %v3530_v35 = vpop.f32.mrf.mxu0  ;;  %v4459_v37 = vpop.f32.mrf.mxu1 }
0x1974   :  { %v3576_v49 = vadd.f32 %v3575_v12, %v3574_v41 }
0x1976   :  { %v3939_v56 = vmul.f32 -1.442695, %v3576_v49 }
0x1978   :  { %4641 = vpow2.f32 %v3939_v56 }
0x1985   :  { %v4642_v39 = vpop.eup %4641 }
0x1986   :  { %v3580_v50 = vadd.f32 1.0, %v4642_v39 }
0x1988   :  { %4643 = vrcp.f32 %v3580_v50 }
0x1995   :  { %v4644_v0 = vpop.eup %4643 }
0x1996   :  { %v3600_v54 = vmul.f32 %v4644_v0, %v5573_v42 }
0x19e4   :  { %v3585_v51 = vpop.permute.xlu0 %3584 }
0x19e5   :  { %v3587_v52 = vmul.f32 %v4644_v0, %v3585_v51 }
0x19e7   :  { %3589 = vrot.lane.b32.xlu1 %v3587_v52, %s4750_s16 }
0x19eb   :  { %1659 = vrot.lane.b32.xlu1 %v5108_v18, %s4751_s17 }
0x19ef   :  { %2322 = vrot.lane.b32.xlu1 %v5278_v3, %s4751_s17  ;;  %v3594_v3 = vsub.f32 1.0, %v4644_v0 }
0x19f3   :  { %2976 = vrot.lane.b32.xlu1 %v5492_v48, %s4751_s17 }
0x1a59   :  { %v3590_v27 = vpop.permute.xlu1 %3589 }
0x1a5a   :  { %v3592_v28 = vadd.f32 %v3590_v27, %v3574_v41 }
0x1a5c   :  { %4645 = vtanh.f32 %v3592_v28 }
0x1a5d   :  { %v1660_v40 = vpop.permute.xlu1 %1659 }
0x1a5e   :  { %1663 = vst.msk [vmem:[#allocation2] sm:$0x3] %vm1662_vm7, %v1660_v40  ;;  %v3811_v40 = vld [vmem:[#allocation7 + $0x138] ss:$0 sm:$0xff] }
0x1a61   :  { %v2323_v53 = vpop.permute.xlu1 %2322 }
0x1a62   :  { %2325 = vst.msk [vmem:[#allocation2 + $0x4] sm:$0x3] %vm1662_vm7, %v2323_v53 }
0x1a65   :  { %v2977_v55 = vpop.permute.xlu1 %2976 }
0x1a66   :  { %2979 = vst.msk [vmem:[#allocation2 + $0x8] sm:$0x3] %vm1662_vm7, %v2977_v55 }
0x1a69   :  { %v4646_v18 = vpop.eup %4645 }
0x1a6a   :  { %3596 = vrot.lane.b32.xlu0 %v4646_v18, %s4751_s17 }
0x1a6e   :  { %1991 = vrot.lane.b32.xlu0 %v5192_v45, %s4751_s17 }
0x1a72   :  { %2651 = vrot.lane.b32.xlu0 %v5400_v21, %s4751_s17 }
0x1a76   :  { %3307 = vrot.lane.b32.xlu0 %v5573_v42, %s4751_s17 }
0x1adc   :  { %v3597_v48 = vpop.permute.xlu0 %3596 }
0x1add   :  { %v3599_v63 = vmul.f32 %v3597_v48, %v3594_v3 }
0x1adf   :  { %v3601_v38 = vadd.f32 %v3600_v54, %v3599_v63 }
0x1ae0   :  { %v1992_v4 = vpop.permute.xlu0 %1991 }
0x1ae1   :  { %1994 = vst.msk [vmem:[#allocation2 + $0x2] sm:$0x3] %vm1662_vm7, %v1992_v4  ;;  %3603 = vrot.lane.b32.xlu1 %v3601_v38, %s4751_s17 }
0x1ae4   :  { %v2652_v6 = vpop.permute.xlu0 %2651 }
0x1ae5   :  { %2654 = vst.msk [vmem:[#allocation2 + $0x6] sm:$0x3] %vm1662_vm7, %v2652_v6 }
0x1ae8   :  { %v3308_v45 = vpop.permute.xlu0 %3307 }
0x1ae9   :  { %3310 = vst.msk [vmem:[#allocation2 + $0xa] sm:$0x3] %vm1662_vm7, %v3308_v45 }
0x1aec   :  { %v3607_v21 = vld [vmem:[#allocation2] sm:$0xff] }
0x1aed   :  { %v3609_v11 = vsel %vm260_vm2, %v3607_v21, 0.0 }
0x1aee   :  { %3610 = vadd.xlane.f32.xlu0 %v3609_v11 }
0x1b53   :  { %v3604_v60 = vpop.permute.xlu1 %3603 }
0x1b54   :  { %3606 = vst.msk [vmem:[#allocation2 + $0xc] sm:$0x3] %vm1662_vm7, %v3604_v60 }
0x1b5b   :  { %v3608_v42 = vld [vmem:[#allocation2 + $0x8] sm:$0x3f] }
0x1b5c   :  { %v3613_v30 = vsel %vm3612_vm8, %v3608_v42, 0.0 }
0x1b5d   :  { %3614 = vadd.xlane.f32.xlu1 %v3613_v30 }
0x1b77   :  { %v3611_v7 = vpop.xlane.xlu0 %3610 }
0x1b78   :  { %v3616_v25 = vmul.f32 0.03125, %v3611_v7 }
0x1b7a   :  { %v3618_v8 = vsub.f32 %v3607_v21, %v3616_v25 }
0x1b7c   :  { %v3620_v22 = vmul.f32 %v3618_v8, %v3618_v8 }
0x1b7e   :  { %v3622_v57 = vsel %vm260_vm2, %v3620_v22, 0.0 }
0x1b7f   :  { %3623 = vadd.xlane.f32.xlu0 %v3622_v57 }
0x1be6   :  { %v3615_v10 = vpop.xlane.xlu1 %3614 }
0x1be7   :  { %v3617_v2 = vmul.f32 0.03125, %v3615_v10 }
0x1be9   :  { %v3619_v1 = vsub.f32 %v3608_v42, %v3617_v2 }
0x1beb   :  { %v3621_v20 = vmul.f32 %v3619_v1, %v3619_v1 }
0x1bed   :  { %v3625_v24 = vsel %vm3612_vm8, %v3621_v20, 0.0 }
0x1bee   :  { %3626 = vadd.xlane.f32.xlu0 %v3625_v24 }
0x1c08   :  { %v3624_v32 = vpop.xlane.xlu0 %3623 }
0x1c09   :  { %v3628_v61 = vmul.f32 0.03125, %v3624_v32 }
0x1c0b   :  { %v3630_v33 = vadd.f32 1e-05, %v3628_v61 }
0x1c0d   :  { %4647 = vrsqrt.f32 %v3630_v33 }
0x1c1a   :  { %v4648_v43 = vpop.eup %4647 }
0x1c1b   :  { %v3634_v36 = vmul.f32 %v4648_v43, %v3618_v8 }
0x1c1d   :  { %v3637_v16 = vmul.f32 %v3636_v14, %v3634_v36 }
0x1c1f   :  { %v3640_v47 = vadd.f32 %v3639_v23, %v3637_v16 }
0x1c77   :  { %v3627_v62 = vpop.xlane.xlu0 %3626 }
0x1c78   :  { %v3629_v34 = vmul.f32 0.03125, %v3627_v62 }
0x1c7a   :  { %v3631_v13 = vadd.f32 1e-05, %v3629_v34 }
0x1c7c   :  { %4649 = vrsqrt.f32 %v3631_v13 }
0x1c89   :  { %v4650_v15 = vpop.eup %4649 }
0x1c8a   :  { %v3635_v44 = vmul.f32 %v4650_v15, %v3619_v1 }
0x1c8c   :  { %v3638_v26 = vmul.f32 %v3636_v14, %v3635_v44 }
0x1c8e   :  { %v3641_v46 = vadd.f32 %v3639_v23, %v3638_v26 }
0x1c90   :  { %v3650_v12 = vpack.c.bf16 %v3641_v46, %v3640_v47 }
0x1c92   :  { %4481 = vmatmul.mubr.msk.bf16.vlgmr.msra.gmra.mxu1 %vm260_vm2, %v3650_v12  ;;  %v3651_v59 = vunpack.c.l.bf16 %v3650_v12  ;;  %v3652_v9 = vunpack.c.h.bf16 %v3650_v12 }
0x1c94   :  { %v3653_v31 = vsub.f32 %v3640_v47, %v3651_v59  ;;  %v3654_v35 = vsub.f32 %v3641_v46, %v3652_v9 }
0x1c96   :  { %v3655_v37 = vpack.c.bf16 %v3654_v35, %v3653_v31 }
0x1c98   :  { %4465 = vmatmul.mubr.msk.bf16.vlgmr.msra.gmra.mxu0 %vm260_vm2, %v3655_v37 }
0x1c99   :  { %4469 = vmatpush3.bf16.msra.mxu0 %v4549_v5  ;;  %4472 = vmatprep.mubr.msk.bf16.mxu0 %vm4747_vm1, %v4746_v17 }
0x1c9a   :  { %4470 = vmatprep.subr.bf16.mxu0 %v4746_v17 }
0x1c9d   :  { %4471 = vmatpush3.bf16.msra.mxu0 %v4550_v29 }
0x1ca0   :  { %4473 = vmatmul.mubr.msk.bf16.vlgmr.msra.gmra.mxu0 %vm260_vm2, %v3650_v12 }
0x1d52   :  { %v3802_v41 = vpop.f32.mrf.mxu1 }
0x1d54   :  { %v4482_v49 = vpop.f32.mrf.mxu1 }
0x1d56   :  { %v3805_v56 = vpop.f32.mrf.mxu1 }
0x1d58   :  { %v3705_v39 = vpop.f32.mrf.mxu0  ;;  %v4483_v50 = vpop.f32.mrf.mxu1 }
0x1d5a   :  { %v4466_v0 = vpop.f32.mrf.mxu0 }
0x1d5c   :  { %v3708_v51 = vpop.f32.mrf.mxu0 }
0x1d5e   :  { %v4467_v52 = vpop.f32.mrf.mxu0 }
0x1d60   :  { %v3749_v27 = vpop.f32.mrf.mxu0 }
0x1d61   :  { %v3750_v28 = vadd.f32 %v3749_v27, %v3705_v39 }
0x1d62   :  { %v4474_v53 = vpop.f32.mrf.mxu0 }
0x1d63   :  { %v3809_v55 = vadd.f32 %v3802_v41, %v3750_v28 }
0x1d64   :  { %v3752_v18 = vpop.f32.mrf.mxu0 }
0x1d65   :  { %v3812_v3 = vadd.f32 %v3811_v40, %v3809_v55  ;;  %v3753_v48 = vadd.f32 %v3752_v18, %v3708_v51 }
0x1d66   :  { %v4475_v17 = vpop.f32.mrf.mxu0 }
0x1d67   :  { %3814 = vst.msk [vmem:[%s5677_s5] sm:$0xff] %vm260_vm2, %v3812_v3  ;;  %v3810_v54 = vadd.f32 %v3805_v56, %v3753_v48 }
0x1d69   :  { %v3813_v63 = vadd.f32 %v3811_v40, %v3810_v54 }
0x1d6b   :  { %3815 = vst.msk [vmem:[%s5677_s5 + $0x8] sm:$0x3f] %vm3612_vm8, %v3813_v63 }
0x1d6c   :  { %3820 = vsyncpa [#allocation4], 1 }
0x1d6d   :  { %3821 = vsyncpa [#allocation6], 1 }

</bundles_post_ra>
